<compile_context>
chip_gen: v7x
topology: tpu7x:2x2x1
jax: 0.10.0
libtpu: 0.0.40
codegen_flags: <defaults>
</compile_context>

<pallas_src>
import jax
import jax.numpy as jnp
from jax.experimental import pallas as pl
from jax.experimental.pallas import tpu as pltpu

_LANE = 128   # output channels padded to this so stores are unmasked vst
_NB = 8       # max batch elements fused per grid step


def _concat_fused_kernel(x_ref, w_ref, b_ref, o_ref):
    """NB batch elements: im2col once, one fused matmul, one lane-dense store.

    x_ref : (NB, H, W, Cin)       input images (NHWC)
    w_ref : (9*Cin, Cp)           combined weight (branch0 center-tap + branch1)
    b_ref : (1, Cp)               combined bias (zeros in padded columns)
    o_ref : (NB, Ho*Wo, Cp)       concatenated, padded, spatially-flat output
    """
    x = x_ref[...]                              # (NB, H, W, Cin)
    NB, H, W, Cin = x.shape
    Ho, Wo = H - 2, W - 2                       # valid 3x3 spatial extent
    Cp = w_ref.shape[1]                         # padded output channels

    # ---- im2col: build the (NB*Ho*Wo, 9*Cin) patch matrix once ----
    taps = [x[:, kh:kh + Ho, kw:kw + Wo, :]
            for kh in range(3) for kw in range(3)]
    patches = jnp.concatenate(taps, axis=-1).reshape(NB * Ho * Wo, 9 * Cin)

    # ---- single fused MXU matmul: branch0(cropped) || branch1, biases folded ----
    y = jnp.dot(patches, w_ref[...],
                preferred_element_type=jnp.float32) + b_ref[...]

    # ---- single unmasked, lane-dense store (Cp is a multiple of 128) ----
    o_ref[...] = y.reshape(NB, Ho * Wo, Cp).astype(o_ref.dtype)


def _build_fused_params(w0, b0, w1, b1, dtype):
    """Combined weight/bias reproducing crop+concat of both branches.

    w0: (Cin, C0)  1x1 conv.   w1: (3, 3, Cin, C1)  3x3 valid conv (HWIO).
    Returns w_cat (9*Cin, Cp), b_cat (1, Cp), C0, C1, Cp.
    """
    Cin, C0 = w0.shape
    C1 = w1.shape[3]
    Cout = C0 + C1
    Cp = ((Cout + _LANE - 1) // _LANE) * _LANE

    w_cat = jnp.zeros((9 * Cin, Cp), dtype=dtype)
    # branch0: 1x1 conv on the center-cropped image == center tap (kh=1, kw=1)
    # of the 3x3 im2col window -> rows [4*Cin, 5*Cin).
    w_cat = w_cat.at[4 * Cin:5 * Cin, :C0].set(w0.astype(dtype))
    # branch1: full 3x3 kernel, rows ordered (kh, kw, cin) to match im2col.
    w_cat = w_cat.at[:, C0:Cout].set(w1.reshape(9 * Cin, C1).astype(dtype))

    b_cat = jnp.zeros((1, Cp), dtype=dtype)
    b_cat = b_cat.at[0, :C0].set(b0.astype(dtype))
    b_cat = b_cat.at[0, C0:Cout].set(b1.astype(dtype))
    return w_cat, b_cat, C0, C1, Cp


def concat_forward_nhwc(x_nhwc, w0, b0, w1, b1):
    """Hot path. x_nhwc: (N, H, W, Cin). Returns (N, Ho, Wo, C0+C1) NHWC."""
    N, H, W, Cin = x_nhwc.shape
    Ho, Wo = H - 2, W - 2
    w_cat, b_cat, C0, C1, Cp = _build_fused_params(w0, b0, w1, b1, x_nhwc.dtype)
    Cout = C0 + C1

    # Batch tiling: NB images per grid step (pad batch if it doesn't divide).
    nb = min(N, _NB)
    n_steps = pl.cdiv(N, nb)
    n_pad = n_steps * nb
    if n_pad != N:
        x_nhwc = jnp.pad(x_nhwc, ((0, n_pad - N), (0, 0), (0, 0), (0, 0)))

    out_padded = pl.pallas_call(
        _concat_fused_kernel,
        out_shape=jax.ShapeDtypeStruct((n_pad, Ho * Wo, Cp), x_nhwc.dtype),
        grid_spec=pltpu.PrefetchScalarGridSpec(
            num_scalar_prefetch=0,
            grid=(n_steps,),
            in_specs=[
                pl.BlockSpec((nb, H, W, Cin), lambda n: (n, 0, 0, 0)),
                pl.BlockSpec((9 * Cin, Cp), lambda n: (0, 0)),
                pl.BlockSpec((1, Cp), lambda n: (0, 0)),
            ],
            out_specs=pl.BlockSpec((nb, Ho * Wo, Cp), lambda n: (n, 0, 0)),
        ),
        compiler_params=pltpu.CompilerParams(
            dimension_semantics=("parallel",)),
    )(x_nhwc, w_cat, b_cat)

    # Drop batch padding + lane padding, restore spatial dims (metadata only).
    return out_padded[:N, :, :Cout].reshape(N, Ho, Wo, Cout)


def concat_forward(x_nchw, w0, b0, w1, b1):
    """PyTorch-parity wrapper. x_nchw: (N, Cin, H, W). Returns NCHW output."""
    x_nhwc = jnp.transpose(x_nchw, (0, 2, 3, 1))
    out_nhwc = concat_forward_nhwc(x_nhwc, w0, b0, w1, b1)
    return jnp.transpose(out_nhwc, (0, 3, 1, 2))


def _reference(x_nchw, w0, b0, w1, b1):
    """Pure-JAX reference replicating the PyTorch Concat forward."""
    y0 = jax.lax.conv_general_dilated(
        x_nchw, jnp.transpose(w0, (1, 0)).reshape(w0.shape[1], w0.shape[0], 1, 1),
        window_strides=(1, 1), padding="VALID",
        dimension_numbers=("NCHW", "OIHW", "NCHW")) + b0.reshape(1, -1, 1, 1)
    y1 = jax.lax.conv_general_dilated(
        x_nchw, jnp.transpose(w1, (3, 2, 0, 1)),
        window_strides=(1, 1), padding="VALID",
        dimension_numbers=("NCHW", "OIHW", "NCHW")) + b1.reshape(1, -1, 1, 1)
    t2 = min(y0.shape[2], y1.shape[2])
    t3 = min(y0.shape[3], y1.shape[3])
    outs = []
    for inp in (y0, y1):
        d2 = (inp.shape[2] - t2) // 2
        d3 = (inp.shape[3] - t3) // 2
        outs.append(inp[:, :, d2:d2 + t2, d3:d3 + t3])
    return jnp.concatenate(outs, axis=1)


if __name__ == "__main__":
    key = jax.random.PRNGKey(0)
    kx, k0w, k0b, k1w, k1b = jax.random.split(key, 5)

    N, Cin, H, W = 2, 4, 16, 16
    C0, C1 = 6, 5

    x = jax.random.normal(kx, (N, Cin, H, W), dtype=jnp.float32)
    # Deterministic parameter init (synthetic, not a checkpoint load).
    w0 = jax.random.normal(k0w, (Cin, C0), dtype=jnp.float32) * 0.1        # 1x1 conv
    b0 = jax.random.normal(k0b, (C0,), dtype=jnp.float32) * 0.1
    w1 = jax.random.normal(k1w, (3, 3, Cin, C1), dtype=jnp.float32) * 0.1  # 3x3 HWIO
    b1 = jax.random.normal(k1b, (C1,), dtype=jnp.float32) * 0.1

    out = concat_forward(x, w0, b0, w1, b1)
    out = jax.block_until_ready(out)

    ref = _reference(x, w0, b0, w1, b1)
    assert out.shape == (N, C0 + C1, H - 2, W - 2), out.shape
    assert jnp.allclose(out, ref, rtol=1e-5, atol=1e-5), float(jnp.max(jnp.abs(out - ref)))

    print("KERNEL_OK")
</pallas_src>

<mosaic_0001>
module attributes {stable_mosaic.version = 11 : i64} {
  func.func @_concat_fused_kernel(%arg0: i32, %arg1: memref<2x16x16x4xf32, #tpu.memory_space<vmem>>, %arg2: memref<36x128xf32, #tpu.memory_space<vmem>>, %arg3: memref<1x128xf32, #tpu.memory_space<vmem>>, %arg4: memref<2x196x128xf32, #tpu.memory_space<vmem>>) attributes {dimension_semantics = [#tpu.dimension_semantics<parallel>], iteration_bounds = array<i64: 1>, scalar_prefetch = 0 : i64, scratch_operands = 0 : i64, tpu.core_type = #tpu.core_type<tc>, window_params = [{transform_indices = @transform_0, window_bounds = array<i64: 2, 16, 16, 4>}, {pipeline_mode = #tpu.pipeline_mode<synchronous>, transform_indices = @transform_1, window_bounds = array<i64: 36, 128>}, {pipeline_mode = #tpu.pipeline_mode<synchronous>, transform_indices = @transform_2, window_bounds = array<i64: 1, 128>}, {transform_indices = @transform_3, window_bounds = array<i64: 2, 196, 128>}]} {
    %c0 = arith.constant 0 : index
    %c0_0 = arith.constant 0 : index
    %c0_1 = arith.constant 0 : index
    %c0_2 = arith.constant 0 : index
    %0 = vector.load %arg1[%c0, %c0_0, %c0_1, %c0_2] : memref<2x16x16x4xf32, #tpu.memory_space<vmem>>, vector<2x16x16x4xf32>
    %1 = vector.extract_strided_slice %0 {offsets = [0, 0, 0, 0], sizes = [2, 14, 14, 4], strides = [1, 1, 1, 1]} : vector<2x16x16x4xf32> to vector<2x14x14x4xf32>
    %2 = vector.extract_strided_slice %0 {offsets = [0, 0, 1, 0], sizes = [2, 14, 14, 4], strides = [1, 1, 1, 1]} : vector<2x16x16x4xf32> to vector<2x14x14x4xf32>
    %3 = vector.extract_strided_slice %0 {offsets = [0, 0, 2, 0], sizes = [2, 14, 14, 4], strides = [1, 1, 1, 1]} : vector<2x16x16x4xf32> to vector<2x14x14x4xf32>
    %4 = vector.extract_strided_slice %0 {offsets = [0, 1, 0, 0], sizes = [2, 14, 14, 4], strides = [1, 1, 1, 1]} : vector<2x16x16x4xf32> to vector<2x14x14x4xf32>
    %5 = vector.extract_strided_slice %0 {offsets = [0, 1, 1, 0], sizes = [2, 14, 14, 4], strides = [1, 1, 1, 1]} : vector<2x16x16x4xf32> to vector<2x14x14x4xf32>
    %6 = vector.extract_strided_slice %0 {offsets = [0, 1, 2, 0], sizes = [2, 14, 14, 4], strides = [1, 1, 1, 1]} : vector<2x16x16x4xf32> to vector<2x14x14x4xf32>
    %7 = vector.extract_strided_slice %0 {offsets = [0, 2, 0, 0], sizes = [2, 14, 14, 4], strides = [1, 1, 1, 1]} : vector<2x16x16x4xf32> to vector<2x14x14x4xf32>
    %8 = vector.extract_strided_slice %0 {offsets = [0, 2, 1, 0], sizes = [2, 14, 14, 4], strides = [1, 1, 1, 1]} : vector<2x16x16x4xf32> to vector<2x14x14x4xf32>
    %9 = vector.extract_strided_slice %0 {offsets = [0, 2, 2, 0], sizes = [2, 14, 14, 4], strides = [1, 1, 1, 1]} : vector<2x16x16x4xf32> to vector<2x14x14x4xf32>
    %10 = tpu.concatenate %1, %2, %3, %4, %5, %6, %7, %8, %9 in 3 : vector<2x14x14x4xf32>, vector<2x14x14x4xf32>, vector<2x14x14x4xf32>, vector<2x14x14x4xf32>, vector<2x14x14x4xf32>, vector<2x14x14x4xf32>, vector<2x14x14x4xf32>, vector<2x14x14x4xf32>, vector<2x14x14x4xf32> -> vector<2x14x14x36xf32>
    %11 = vector.shape_cast %10 : vector<2x14x14x36xf32> to vector<392x36xf32>
    %c0_3 = arith.constant 0 : index
    %c0_4 = arith.constant 0 : index
    %12 = vector.load %arg2[%c0_3, %c0_4] : memref<36x128xf32, #tpu.memory_space<vmem>>, vector<36x128xf32>
    %cst = arith.constant dense<0.000000e+00> : vector<392x128xf32>
    %13 = tpu.matmul %11, %12, %cst {dimension_numbers = #tpu.dot_dimension_numbers<[1], [0], [0], [1], [0, 0, 1, 1], [], []>} : vector<392x36xf32>, vector<36x128xf32>, vector<392x128xf32> -> vector<392x128xf32>
    %c0_5 = arith.constant 0 : index
    %c0_6 = arith.constant 0 : index
    %14 = vector.load %arg3[%c0_5, %c0_6] : memref<1x128xf32, #tpu.memory_space<vmem>>, vector<1x128xf32>
    %15 = vector.broadcast %14 : vector<1x128xf32> to vector<392x128xf32>
    %16 = arith.addf %13, %15 : vector<392x128xf32>
    %17 = vector.shape_cast %16 : vector<392x128xf32> to vector<2x196x128xf32>
    %c0_7 = arith.constant 0 : index
    %c0_8 = arith.constant 0 : index
    %c0_9 = arith.constant 0 : index
    %18 = vector.load %arg4[%c0_7, %c0_8, %c0_9] : memref<2x196x128xf32, #tpu.memory_space<vmem>>, vector<2x196x128xf32>
    tpu.vector_store %arg4[%c0_7, %c0_8, %c0_9], %17 {strides = array<i32>} : memref<2x196x128xf32, #tpu.memory_space<vmem>>, vector<2x196x128xf32>,
    return
  }
  func.func @transform_0(%arg0: i32) -> (i32, i32, i32, i32) {
    %c0_i32 = arith.constant 0 : i32
    %c0_i32_0 = arith.constant 0 : i32
    %c0_i32_1 = arith.constant 0 : i32
    %c0_i32_2 = arith.constant 0 : i32
    return %arg0, %c0_i32, %c0_i32_0, %c0_i32_1 : i32, i32, i32, i32
  }
  func.func @transform_1(%arg0: i32) -> (i32, i32) {
    %c0_i32 = arith.constant 0 : i32
    %c0_i32_0 = arith.constant 0 : i32
    %c0_i32_1 = arith.constant 0 : i32
    return %c0_i32, %c0_i32_0 : i32, i32
  }
  func.func @transform_2(%arg0: i32) -> (i32, i32) {
    %c0_i32 = arith.constant 0 : i32
    %c0_i32_0 = arith.constant 0 : i32
    %c0_i32_1 = arith.constant 0 : i32
    return %c0_i32, %c0_i32_0 : i32, i32
  }
  func.func @transform_3(%arg0: i32) -> (i32, i32, i32) {
    %c0_i32 = arith.constant 0 : i32
    %c0_i32_0 = arith.constant 0 : i32
    %c0_i32_1 = arith.constant 0 : i32
    return %arg0, %c0_i32, %c0_i32_0 : i32, i32, i32
  }
}

</mosaic_0001>

<bundles_post_ra>
// kernel: tpu_custom_call.1
= control target key start
LH: loop header
LB: loop body
LE: loop exit
PB: predicated region body
PF: predicated region fallthrough
CT: control target
= control target key end

     0   :  { %vm134_vm0 = vcmask 1046528   ;;  %s5008_s24 = smov 4   ;;  %vm387_vm1 = vcmask 1045504   ;;  %s5009_s20 = smov 8   ;;  %vm4060_vm2 = vcmask 1043456   ;;  %vm5018_vm3 = vmmov 0   ;;  %s8905_s0 = inlined_call_operand.vmem [shape: f32[2,16,16,4], index: 0, kind: input, shape index: {}]   ;;  %s8906_s1 = inlined_call_operand.vmem [shape: f32[36,128], index: 1, kind: input, shape index: {}]   ;;  %s8907_s2 = inlined_call_operand.vmem [shape: f32[1,128], index: 2, kind: input, shape index: {}]   ;;  %s8908_s3 = inlined_call_operand.vmem [shape: f32[2,196,128], index: 3, kind: output, shape index: {}]  }
   0x1   :  { %v5043_v0 = vld [vmem:[%s8905_s0 + $0x18] sm:$0xff]  ;;  %v5048_v1 = vld [vmem:[%s8905_s0 + $0x8] sm:$0xff]  ;;  %v5053_v2 = vld [vmem:[%s8905_s0 + $0x10] sm:$0xff]  ;;  %s5011_s30 = smov 16   ;;  %s5012_s4 = smov 20   ;;  %vm1737_vm4 = vcmask 64512  }
   0x2   :  { %v5056_v3 = vrot.slane %v5043_v0, 1  ;;  %v136_v4 = vrot.slane %v5048_v1, 1  ;;  %v138_v5 = vrot.slane %v5053_v2, 1  ;;  %v5063_v6 = vld [vmem:[%s8905_s0] sm:$0xff]  ;;  %v5068_v7 = vld [vmem:[%s8905_s0 + $0x28] sm:$0xff]  ;;  %v5091_v14 = vld [vmem:[%s8905_s0 + $0x38] sm:$0xff] }
   0x3   :  { %v5073_v8 = vld [vmem:[%s8905_s0 + $0x20] sm:$0xff]  ;;  %v135_v9 = vrot.slane %v5063_v6, 1  ;;  %v5085_v12 = vrot.slane %v5068_v7, 1  ;;  %v5096_v15 = vld [vmem:[%s8905_s0 + $0x30] sm:$0xff]  ;;  %v5106_v17 = vrot.slane %v5091_v14, 1  ;;  %v5112_v19 = vld [vmem:[%s8905_s0 + $0x48] sm:$0xff] }
   0x4   :  { %9117 = vst [vmem:[#allocation2_spill] sm:$0xff] %v5056_v3  ;;  %225 = vrot.lane.b32.xlu1 %v5056_v3, %s5008_s24  ;;  %221 = vrot.lane.b32.xlu0 %v136_v4, %s5008_s24  ;;  %v5081_v10 = vsel %vm134_vm0, %v138_v5, %v5056_v3  ;;  %v141_v13 = vrot.slane %v5073_v8, 1  ;;  %v144_v18 = vrot.slane %v5096_v15, 1  ;;  %v5117_v20 = vld [vmem:[%s8905_s0 + $0x40] sm:$0xff]  ;;  %v5128_v22 = vrot.slane %v5112_v19, 1  ;;  %v5134_v24 = vld [vmem:[%s8905_s0 + $0x58] sm:$0xff] }
   0x5   :  { %9118 = vst [vmem:[#allocation3_spill] sm:$0xff] %v5081_v10  ;;  %v137_v11 = vsel %vm134_vm0, %v135_v9, %v136_v4  ;;  %9119 = vst [vmem:[#allocation4_spill] sm:$0xff] %v5085_v12  ;;  %v147_v23 = vrot.slane %v5117_v20, 1  ;;  %v5139_v25 = vld [vmem:[%s8905_s0 + $0x50] sm:$0xff]  ;;  %v5150_v27 = vrot.slane %v5134_v24, 1  ;;  %v5156_v29 = vld [vmem:[%s8905_s0 + $0x68] sm:$0xff] }
   0x6   :  { %v5103_v16 = vsel %vm134_vm0, %v141_v13, %v5085_v12  ;;  %9121 = vst [vmem:[#allocation6_spill] sm:$0xff] %v5106_v17  ;;  %v5125_v21 = vsel %vm134_vm0, %v144_v18, %v5106_v17  ;;  %9123 = vst [vmem:[#allocation8_spill] sm:$0xff] %v5128_v22  ;;  %v150_v28 = vrot.slane %v5139_v25, 1  ;;  %v5161_v30 = vld [vmem:[%s8905_s0 + $0x60] sm:$0xff]  ;;  %v5172_v32 = vrot.slane %v5156_v29, 1  ;;  %v5178_v34 = vld [vmem:[%s8905_s0 + $0x78] sm:$0xff] }
   0x7   :  { %9120 = vst [vmem:[#allocation5_spill] sm:$0xff] %v5103_v16  ;;  %9122 = vst [vmem:[#allocation7_spill] sm:$0xff] %v5125_v21  ;;  %v5147_v26 = vsel %vm134_vm0, %v147_v23, %v5128_v22  ;;  %v153_v33 = vrot.slane %v5161_v30, 1  ;;  %v5183_v35 = vld [vmem:[%s8905_s0 + $0x70] sm:$0xff]  ;;  %v5194_v37 = vrot.slane %v5178_v34, 1  ;;  %v5200_v39 = vld [vmem:[%s8905_s0 + $0x88] sm:$0xff] }
   0x8   :  { %223 = vrot.lane.b32.xlu1 %v5081_v10, %s5008_s24  ;;  %219 = vrot.lane.b32.xlu0 %v137_v11, %s5008_s24  ;;  %9124 = vst [vmem:[#allocation9_spill] sm:$0xff] %v5147_v26  ;;  %9125 = vst [vmem:[#allocation10_spill] sm:$0xff] %v5150_v27  ;;  %v5169_v31 = vsel %vm134_vm0, %v150_v28, %v5150_v27  ;;  %v156_v38 = vrot.slane %v5183_v35, 1  ;;  %v5205_v40 = vld [vmem:[%s8905_s0 + $0x80] sm:$0xff]  ;;  %v5216_v42 = vrot.slane %v5200_v39, 1  ;;  %v5222_v44 = vld [vmem:[%s8905_s0 + $0x98] sm:$0xff] }
   0x9   :  { %9126 = vst [vmem:[#allocation11_spill] sm:$0xff] %v5169_v31  ;;  %9127 = vst [vmem:[#allocation12_spill] sm:$0xff] %v5172_v32  ;;  %v5191_v36 = vsel %vm134_vm0, %v153_v33, %v5172_v32  ;;  %v159_v43 = vrot.slane %v5205_v40, 1  ;;  %v5227_v45 = vld [vmem:[%s8905_s0 + $0x90] sm:$0xff]  ;;  %v5238_v47 = vrot.slane %v5222_v44, 1  ;;  %v5244_v49 = vld [vmem:[%s8905_s0 + $0xa8] sm:$0xff] }
   0xa   :  { %9128 = vst [vmem:[#allocation13_spill] sm:$0xff] %v5191_v36  ;;  %9129 = vst [vmem:[#allocation14_spill] sm:$0xff] %v5194_v37  ;;  %v5213_v41 = vsel %vm134_vm0, %v156_v38, %v5194_v37  ;;  %v162_v48 = vrot.slane %v5227_v45, 1  ;;  %v5249_v50 = vld [vmem:[%s8905_s0 + $0xa0] sm:$0xff]  ;;  %v5260_v52 = vrot.slane %v5244_v49, 1  ;;  %v5266_v54 = vld [vmem:[%s8905_s0 + $0xb8] sm:$0xff] }
   0xb   :  { %9130 = vst [vmem:[#allocation15_spill] sm:$0xff] %v5213_v41  ;;  %9131 = vst [vmem:[#allocation16_spill] sm:$0xff] %v5216_v42  ;;  %v5235_v46 = vsel %vm134_vm0, %v159_v43, %v5216_v42  ;;  %v165_v53 = vrot.slane %v5249_v50, 1  ;;  %v5271_v55 = vld [vmem:[%s8905_s0 + $0xb0] sm:$0xff]  ;;  %v5282_v57 = vrot.slane %v5266_v54, 1  ;;  %v5288_v59 = vld [vmem:[%s8905_s0 + $0xc8] sm:$0xff] }
   0xc   :  { %229 = vrot.lane.b32.xlu1 %v5085_v12, %s5008_s24  ;;  %227 = vrot.lane.b32.xlu0 %v5103_v16, %s5008_s24  ;;  %9132 = vst [vmem:[#allocation17_spill] sm:$0xff] %v5235_v46  ;;  %9133 = vst [vmem:[#allocation18_spill] sm:$0xff] %v5238_v47  ;;  %v5257_v51 = vsel %vm134_vm0, %v162_v48, %v5238_v47  ;;  %v168_v58 = vrot.slane %v5271_v55, 1  ;;  %v5293_v60 = vld [vmem:[%s8905_s0 + $0xc0] sm:$0xff]  ;;  %v5304_v62 = vrot.slane %v5288_v59, 1  ;;  %v5310_v4 = vld [vmem:[%s8905_s0 + $0xd8] sm:$0xff] }
   0xd   :  { %9134 = vst [vmem:[#allocation19_spill] sm:$0xff] %v5257_v51  ;;  %9135 = vst [vmem:[#allocation20_spill] sm:$0xff] %v5260_v52  ;;  %v5279_v56 = vsel %vm134_vm0, %v165_v53, %v5260_v52  ;;  %v171_v63 = vrot.slane %v5293_v60, 1  ;;  %v5315_v5 = vld [vmem:[%s8905_s0 + $0xd0] sm:$0xff]  ;;  %v5326_v11 = vrot.slane %v5310_v4, 1  ;;  %v5332_v18 = vld [vmem:[%s8905_s0 + $0x108] sm:$0xff] }
   0xe   :  { %9136 = vst [vmem:[#allocation21_spill] sm:$0xff] %v5279_v56  ;;  %9137 = vst [vmem:[#allocation22_spill] sm:$0xff] %v5282_v57  ;;  %v5301_v61 = vsel %vm134_vm0, %v168_v58, %v5282_v57  ;;  %v174_v13 = vrot.slane %v5315_v5, 1  ;;  %v5337_v23 = vld [vmem:[%s8905_s0 + $0x100] sm:$0xff]  ;;  %v178_v33 = vrot.slane %v5332_v18, 1  ;;  %v5352_v43 = vld [vmem:[%s8905_s0 + $0x118] sm:$0xff] }
   0xf   :  { %9138 = vst [vmem:[#allocation23_spill] sm:$0xff] %v5301_v61  ;;  %9139 = vst [vmem:[#allocation24_spill] sm:$0xff] %v5304_v62  ;;  %v5323_v9 = vsel %vm134_vm0, %v171_v63, %v5304_v62  ;;  %v177_v38 = vrot.slane %v5337_v23, 1  ;;  %v5357_v48 = vld [vmem:[%s8905_s0 + $0x110] sm:$0xff]  ;;  %v5365_v58 = vrot.slane %v5352_v43, 1  ;;  %v5611_v12 = vld [vmem:[%s8905_s0 + $0x1d8] sm:$0xff] }
  0x10   :  { %233 = vrot.lane.b32.xlu1 %v5106_v17, %s5008_s24  ;;  %231 = vrot.lane.b32.xlu0 %v5125_v21, %s5008_s24  ;;  %9140 = vst [vmem:[#allocation25_spill] sm:$0xff] %v5315_v5  ;;  %9141 = vst [vmem:[#allocation26_spill] sm:$0xff] %v5323_v9  ;;  %v5345_v28 = vsel %vm134_vm0, %v174_v13, %v5326_v11  ;;  %v180_v63 = vrot.slane %v5357_v48, 1  ;;  %v5371_v13 = vld [vmem:[%s8905_s0 + $0x128] sm:$0xff]  ;;  %v5646_v3 = vrot.slane %v5043_v0, 2  ;;  %s5014_s15 = smov 24  }
  0x11   :  { %9142 = vst [vmem:[#allocation27_spill] sm:$0xff] %v5326_v11  ;;  %9143 = vst [vmem:[#allocation28_spill] sm:$0xff] %v5345_v28  ;;  %v179_v53 = vsel %vm134_vm0, %v177_v38, %v178_v33  ;;  %v5589_v17 = vld [vmem:[%s8905_s0 + $0x1c8] sm:$0xff]  ;;  %s5016_s18 = smov 32   ;;  %s5017_s19 = smov 28   ;;  %vm1680_vm5 = vcmask 31744  }
  0x12   :  { %9144 = vst [vmem:[#allocation29_spill] sm:$0xff] %v5365_v58  ;;  %v5382_v38 = vsel %vm134_vm0, %v180_v63, %v5365_v58  ;;  %9170 = vst [vmem:[#allocation55_spill] sm:$0xff] %v5646_v3  ;;  %vm1794_vm6 = vcmask 97280   ;;  %vm1851_vm7 = vcmask 130048   ;;  %vm1908_vm8 = vcmask 162816  }
  0x13   :  { %9145 = vst [vmem:[#allocation30_spill] sm:$0xff] %v5382_v38  ;;  %vm1965_vm9 = vcmask 195584   ;;  %vm2022_vm10 = vcmask 228352   ;;  %vm2079_vm11 = vcmask 261120   ;;  %vm3961_vm12 = vcmask 293888  }
  0x14   :  { %237 = vrot.lane.b32.xlu1 %v5128_v22, %s5008_s24  ;;  %235 = vrot.lane.b32.xlu0 %v5147_v26, %s5008_s24  ;;  %v5567_v22 = vld [vmem:[%s8905_s0 + $0x1b8] sm:$0xff] }
  0x18   :  { %241 = vrot.lane.b32.xlu1 %v5150_v27, %s5008_s24  ;;  %239 = vrot.lane.b32.xlu0 %v5169_v31, %s5008_s24  ;;  %v5545_v27 = vld [vmem:[%s8905_s0 + $0x1a8] sm:$0xff] }
  0x1c   :  { %245 = vrot.lane.b32.xlu1 %v5172_v32, %s5008_s24  ;;  %243 = vrot.lane.b32.xlu0 %v5191_v36, %s5008_s24  ;;  %v5523_v32 = vld [vmem:[%s8905_s0 + $0x198] sm:$0xff] }
  0x20   :  { %249 = vrot.lane.b32.xlu1 %v5194_v37, %s5008_s24  ;;  %247 = vrot.lane.b32.xlu0 %v5213_v41, %s5008_s24  ;;  %v5501_v37 = vld [vmem:[%s8905_s0 + $0x188] sm:$0xff] }
  0x24   :  { %253 = vrot.lane.b32.xlu1 %v5216_v42, %s5008_s24  ;;  %251 = vrot.lane.b32.xlu0 %v5235_v46, %s5008_s24  ;;  %v5479_v42 = vld [vmem:[%s8905_s0 + $0x178] sm:$0xff] }
  0x28   :  { %257 = vrot.lane.b32.xlu1 %v5238_v47, %s5008_s24  ;;  %255 = vrot.lane.b32.xlu0 %v5257_v51, %s5008_s24  ;;  %v5457_v47 = vld [vmem:[%s8905_s0 + $0x168] sm:$0xff] }
  0x2c   :  { %261 = vrot.lane.b32.xlu1 %v5260_v52, %s5008_s24  ;;  %259 = vrot.lane.b32.xlu0 %v5279_v56, %s5008_s24  ;;  %v5435_v52 = vld [vmem:[%s8905_s0 + $0x158] sm:$0xff] }
  0x30   :  { %265 = vrot.lane.b32.xlu1 %v5282_v57, %s5008_s24  ;;  %263 = vrot.lane.b32.xlu0 %v5301_v61, %s5008_s24  ;;  %v5413_v57 = vld [vmem:[%s8905_s0 + $0x148] sm:$0xff] }
  0x34   :  { %269 = vrot.lane.b32.xlu1 %v5304_v62, %s5008_s24  ;;  %267 = vrot.lane.b32.xlu0 %v5323_v9, %s5008_s24  ;;  %v5376_v9 = vld [vmem:[%s8905_s0 + $0x120] sm:$0xff]  ;;  %v5391_v62 = vld [vmem:[%s8905_s0 + $0x138] sm:$0xff] }
  0x35   :  { %v5407_v63 = vrot.slane %v5391_v62, 1 }
  0x37   :  { %9148 = vst [vmem:[#allocation33_spill] sm:$0xff] %v5407_v63 }
  0x38   :  { %273 = vrot.lane.b32.xlu1 %v5326_v11, %s5008_s24  ;;  %271 = vrot.lane.b32.xlu0 %v5345_v28, %s5008_s24  ;;  %v5385_v28 = vrot.slane %v5371_v13, 1  ;;  %v183_v11 = vrot.slane %v5376_v9, 1 }
  0x3a   :  { %9146 = vst [vmem:[#allocation31_spill] sm:$0xff] %v5385_v28 }
  0x3c   :  { %277 = vrot.lane.b32.xlu1 %v178_v33, %s5008_s24  ;;  %275 = vrot.lane.b32.xlu0 %v179_v53, %s5008_s24  ;;  %v5396_v33 = vld [vmem:[%s8905_s0 + $0x130] sm:$0xff]  ;;  %v5404_v53 = vsel %vm134_vm0, %v183_v11, %v5385_v28 }
  0x3d   :  { %9147 = vst [vmem:[#allocation32_spill] sm:$0xff] %v5404_v53  ;;  %v186_v61 = vrot.slane %v5396_v33, 1 }
  0x3f   :  { %v5426_v11 = vsel %vm134_vm0, %v186_v61, %v5407_v63 }
  0x40   :  { %281 = vrot.lane.b32.xlu1 %v5365_v58, %s5008_s24  ;;  %279 = vrot.lane.b32.xlu0 %v5382_v38, %s5008_s24  ;;  %v5418_v58 = vld [vmem:[%s8905_s0 + $0x140] sm:$0xff]  ;;  %9149 = vst [vmem:[#allocation34_spill] sm:$0xff] %v5426_v11  ;;  %v5429_v38 = vrot.slane %v5413_v57, 1 }
  0x41   :  { %v189_v56 = vrot.slane %v5418_v58, 1 }
  0x42   :  { %9150 = vst [vmem:[#allocation35_spill] sm:$0xff] %v5429_v38 }
  0x43   :  { %v5448_v61 = vsel %vm134_vm0, %v189_v56, %v5429_v38 }
  0x44   :  { %285 = vrot.lane.b32.xlu1 %v5385_v28, %s5008_s24  ;;  %283 = vrot.lane.b32.xlu0 %v5404_v53, %s5008_s24  ;;  %v5440_v28 = vld [vmem:[%s8905_s0 + $0x150] sm:$0xff]  ;;  %9151 = vst [vmem:[#allocation36_spill] sm:$0xff] %v5448_v61  ;;  %v5451_v53 = vrot.slane %v5435_v52, 1 }
  0x45   :  { %v192_v51 = vrot.slane %v5440_v28, 1 }
  0x46   :  { %9152 = vst [vmem:[#allocation37_spill] sm:$0xff] %v5451_v53 }
  0x47   :  { %v5470_v56 = vsel %vm134_vm0, %v192_v51, %v5451_v53 }
  0x48   :  { %289 = vrot.lane.b32.xlu1 %v5407_v63, %s5008_s24  ;;  %287 = vrot.lane.b32.xlu0 %v5426_v11, %s5008_s24  ;;  %v5462_v63 = vld [vmem:[%s8905_s0 + $0x160] sm:$0xff]  ;;  %9153 = vst [vmem:[#allocation38_spill] sm:$0xff] %v5470_v56  ;;  %v5473_v11 = vrot.slane %v5457_v47, 1 }
  0x49   :  { %v195_v46 = vrot.slane %v5462_v63, 1 }
  0x4a   :  { %9154 = vst [vmem:[#allocation39_spill] sm:$0xff] %v5473_v11 }
  0x4b   :  { %v5492_v51 = vsel %vm134_vm0, %v195_v46, %v5473_v11 }
  0x4c   :  { %293 = vrot.lane.b32.xlu1 %v5429_v38, %s5008_s24  ;;  %291 = vrot.lane.b32.xlu0 %v5448_v61, %s5008_s24  ;;  %v5484_v38 = vld [vmem:[%s8905_s0 + $0x170] sm:$0xff]  ;;  %9155 = vst [vmem:[#allocation40_spill] sm:$0xff] %v5492_v51  ;;  %v5495_v61 = vrot.slane %v5479_v42, 1 }
  0x4d   :  { %v198_v41 = vrot.slane %v5484_v38, 1 }
  0x4e   :  { %9156 = vst [vmem:[#allocation41_spill] sm:$0xff] %v5495_v61 }
  0x4f   :  { %v5514_v46 = vsel %vm134_vm0, %v198_v41, %v5495_v61 }
  0x50   :  { %297 = vrot.lane.b32.xlu1 %v5451_v53, %s5008_s24  ;;  %295 = vrot.lane.b32.xlu0 %v5470_v56, %s5008_s24  ;;  %v5506_v53 = vld [vmem:[%s8905_s0 + $0x180] sm:$0xff]  ;;  %9157 = vst [vmem:[#allocation42_spill] sm:$0xff] %v5514_v46  ;;  %v5517_v56 = vrot.slane %v5501_v37, 1 }
  0x51   :  { %v201_v36 = vrot.slane %v5506_v53, 1 }
  0x52   :  { %9158 = vst [vmem:[#allocation43_spill] sm:$0xff] %v5517_v56 }
  0x53   :  { %v5536_v41 = vsel %vm134_vm0, %v201_v36, %v5517_v56 }
  0x54   :  { %301 = vrot.lane.b32.xlu1 %v5473_v11, %s5008_s24  ;;  %299 = vrot.lane.b32.xlu0 %v5492_v51, %s5008_s24  ;;  %v5528_v11 = vld [vmem:[%s8905_s0 + $0x190] sm:$0xff]  ;;  %9159 = vst [vmem:[#allocation44_spill] sm:$0xff] %v5536_v41  ;;  %v5539_v51 = vrot.slane %v5523_v32, 1 }
  0x55   :  { %v204_v31 = vrot.slane %v5528_v11, 1 }
  0x56   :  { %9160 = vst [vmem:[#allocation45_spill] sm:$0xff] %v5539_v51 }
  0x57   :  { %v5558_v36 = vsel %vm134_vm0, %v204_v31, %v5539_v51 }
  0x58   :  { %305 = vrot.lane.b32.xlu1 %v5495_v61, %s5008_s24  ;;  %303 = vrot.lane.b32.xlu0 %v5514_v46, %s5008_s24  ;;  %v5550_v61 = vld [vmem:[%s8905_s0 + $0x1a0] sm:$0xff]  ;;  %9161 = vst [vmem:[#allocation46_spill] sm:$0xff] %v5558_v36  ;;  %v5561_v46 = vrot.slane %v5545_v27, 1 }
  0x59   :  { %v207_v26 = vrot.slane %v5550_v61, 1 }
  0x5a   :  { %9162 = vst [vmem:[#allocation47_spill] sm:$0xff] %v5561_v46 }
  0x5b   :  { %v5580_v31 = vsel %vm134_vm0, %v207_v26, %v5561_v46 }
  0x5c   :  { %309 = vrot.lane.b32.xlu1 %v5517_v56, %s5008_s24  ;;  %307 = vrot.lane.b32.xlu0 %v5536_v41, %s5008_s24  ;;  %v5572_v56 = vld [vmem:[%s8905_s0 + $0x1b0] sm:$0xff]  ;;  %9163 = vst [vmem:[#allocation48_spill] sm:$0xff] %v5580_v31  ;;  %v5583_v41 = vrot.slane %v5567_v22, 1 }
  0x5d   :  { %v210_v21 = vrot.slane %v5572_v56, 1 }
  0x5e   :  { %9164 = vst [vmem:[#allocation49_spill] sm:$0xff] %v5583_v41 }
  0x5f   :  { %v5602_v26 = vsel %vm134_vm0, %v210_v21, %v5583_v41 }
  0x60   :  { %313 = vrot.lane.b32.xlu1 %v5539_v51, %s5008_s24  ;;  %311 = vrot.lane.b32.xlu0 %v5558_v36, %s5008_s24  ;;  %v5594_v51 = vld [vmem:[%s8905_s0 + $0x1c0] sm:$0xff]  ;;  %9165 = vst [vmem:[#allocation50_spill] sm:$0xff] %v5602_v26  ;;  %v5605_v36 = vrot.slane %v5589_v17, 1 }
  0x61   :  { %v213_v16 = vrot.slane %v5594_v51, 1 }
  0x62   :  { %9166 = vst [vmem:[#allocation51_spill] sm:$0xff] %v5605_v36 }
  0x63   :  { %v5624_v21 = vsel %vm134_vm0, %v213_v16, %v5605_v36  ;;  %v388_v16 = vrot.slane %v5063_v6, 2  ;;  %v5656_v6 = vrot.slane %v5068_v7, 2 }
  0x64   :  { %317 = vrot.lane.b32.xlu1 %v5561_v46, %s5008_s24  ;;  %315 = vrot.lane.b32.xlu0 %v5580_v31, %s5008_s24  ;;  %v5616_v46 = vld [vmem:[%s8905_s0 + $0x1d0] sm:$0xff]  ;;  %9167 = vst [vmem:[#allocation52_spill] sm:$0xff] %v5624_v21  ;;  %v5627_v31 = vrot.slane %v5611_v12, 1 }
  0x65   :  { %v216_v10 = vrot.slane %v5616_v46, 1  ;;  %9172 = vst [vmem:[#allocation57_spill] sm:$0xff] %v5656_v6 }
  0x66   :  { %9168 = vst [vmem:[#allocation53_spill] sm:$0xff] %v5627_v31 }
  0x68   :  { %321 = vrot.lane.b32.xlu1 %v5583_v41, %s5008_s24  ;;  %319 = vrot.lane.b32.xlu0 %v5602_v26, %s5008_s24  ;;  %v5636_v41 = vsel %vm134_vm0, %v216_v10, %v5627_v31  ;;  %v389_v26 = vrot.slane %v5048_v1, 2  ;;  %v394_v10 = vrot.slane %v5073_v8, 2 }
  0x69   :  { %9169 = vst [vmem:[#allocation54_spill] sm:$0xff] %v5636_v41 }
  0x6c   :  { %325 = vrot.lane.b32.xlu1 %v5605_v36, %s5008_s24  ;;  %323 = vrot.lane.b32.xlu0 %v5624_v21, %s5008_s24  ;;  %v390_v36 = vsel %vm387_vm1, %v388_v16, %v389_v26  ;;  %v391_v21 = vrot.slane %v5053_v2, 2 }
  0x6e   :  { %v5653_v1 = vsel %vm387_vm1, %v391_v21, %v5646_v3  ;;  %v397_v21 = vrot.slane %v5096_v15, 2 }
  0x6f   :  { %9171 = vst [vmem:[#allocation56_spill] sm:$0xff] %v5653_v1 }
  0x70   :  { %329 = vrot.lane.b32.xlu1 %v5627_v31, %s5008_s24  ;;  %327 = vrot.lane.b32.xlu0 %v5636_v41, %s5008_s24  ;;  %s5010_s24 = smov 12  }
  0x74   :  { %474 = vrot.lane.b32.xlu1 %v389_v26, %s5009_s20  ;;  %472 = vrot.lane.b32.xlu0 %v390_v36, %s5009_s20  ;;  %v5669_v36 = vsel %vm387_vm1, %v394_v10, %v5656_v6  ;;  %v5672_v26 = vrot.slane %v5091_v14, 2  ;;  %v5688_v10 = vrot.slane %v5112_v19, 2 }
  0x75   :  { %9175 = vst [vmem:[#allocation60_spill] sm:$0xff] %v5669_v36 }
  0x76   :  { %v5659_v16 = vpop.permute.xlu1 %225  ;;  %v5661_v41 = vpop.permute.xlu0 %221  ;;  %9176 = vst [vmem:[#allocation61_spill] sm:$0xff] %v5672_v26  ;;  %9180 = vst [vmem:[#allocation65_spill] sm:$0xff] %v5688_v10 }
  0x77   :  { %9173 = vst [vmem:[#allocation58_spill] sm:$0xff] %v5659_v16  ;;  %9174 = vst [vmem:[#allocation59_spill] sm:$0xff] %v5661_v41  ;;  %v5685_v41 = vsel %vm387_vm1, %v397_v21, %v5672_v26  ;;  %v5704_v21 = vrot.slane %v5134_v24, 2 }
  0x78   :  { %478 = vrot.lane.b32.xlu1 %v5646_v3, %s5009_s20  ;;  %476 = vrot.lane.b32.xlu0 %v5653_v1, %s5009_s20  ;;  %9179 = vst [vmem:[#allocation64_spill] sm:$0xff] %v5685_v41  ;;  %v400_v1 = vrot.slane %v5117_v20, 2 }
  0x79   :  { %9184 = vst [vmem:[#allocation69_spill] sm:$0xff] %v5704_v21 }
  0x7a   :  { %v5675_v31 = vpop.permute.xlu1 %223  ;;  %v5677_v16 = vpop.permute.xlu0 %219 }
  0x7b   :  { %9177 = vst [vmem:[#allocation62_spill] sm:$0xff] %v5675_v31  ;;  %9178 = vst [vmem:[#allocation63_spill] sm:$0xff] %v5677_v16  ;;  %v5701_v16 = vsel %vm387_vm1, %v400_v1, %v5688_v10  ;;  %v5720_v1 = vrot.slane %v5156_v29, 2 }
  0x7c   :  { %482 = vrot.lane.b32.xlu1 %v5656_v6, %s5009_s20  ;;  %480 = vrot.lane.b32.xlu0 %v5669_v36, %s5009_s20  ;;  %9183 = vst [vmem:[#allocation68_spill] sm:$0xff] %v5701_v16  ;;  %v403_v36 = vrot.slane %v5139_v25, 2 }
  0x7d   :  { %9188 = vst [vmem:[#allocation73_spill] sm:$0xff] %v5720_v1 }
  0x7e   :  { %v5691_v3 = vpop.permute.xlu1 %229  ;;  %v5693_v31 = vpop.permute.xlu0 %227 }
  0x7f   :  { %9181 = vst [vmem:[#allocation66_spill] sm:$0xff] %v5691_v3  ;;  %9182 = vst [vmem:[#allocation67_spill] sm:$0xff] %v5693_v31  ;;  %v5717_v31 = vsel %vm387_vm1, %v403_v36, %v5704_v21  ;;  %v5736_v36 = vrot.slane %v5178_v34, 2 }
  0x80   :  { %486 = vrot.lane.b32.xlu1 %v5672_v26, %s5009_s20  ;;  %484 = vrot.lane.b32.xlu0 %v5685_v41, %s5009_s20  ;;  %9187 = vst [vmem:[#allocation72_spill] sm:$0xff] %v5717_v31  ;;  %v406_v41 = vrot.slane %v5161_v30, 2 }
  0x81   :  { %9192 = vst [vmem:[#allocation77_spill] sm:$0xff] %v5736_v36 }
  0x82   :  { %v5707_v6 = vpop.permute.xlu1 %233  ;;  %v5709_v3 = vpop.permute.xlu0 %231 }
  0x83   :  { %9185 = vst [vmem:[#allocation70_spill] sm:$0xff] %v5707_v6  ;;  %9186 = vst [vmem:[#allocation71_spill] sm:$0xff] %v5709_v3  ;;  %v5733_v3 = vsel %vm387_vm1, %v406_v41, %v5720_v1  ;;  %v5752_v41 = vrot.slane %v5200_v39, 2 }
  0x84   :  { %490 = vrot.lane.b32.xlu1 %v5688_v10, %s5009_s20  ;;  %488 = vrot.lane.b32.xlu0 %v5701_v16, %s5009_s20  ;;  %9191 = vst [vmem:[#allocation76_spill] sm:$0xff] %v5733_v3  ;;  %v409_v16 = vrot.slane %v5183_v35, 2 }
  0x85   :  { %9196 = vst [vmem:[#allocation81_spill] sm:$0xff] %v5752_v41 }
  0x86   :  { %v5723_v26 = vpop.permute.xlu1 %237  ;;  %v5725_v6 = vpop.permute.xlu0 %235 }
  0x87   :  { %9189 = vst [vmem:[#allocation74_spill] sm:$0xff] %v5723_v26  ;;  %9190 = vst [vmem:[#allocation75_spill] sm:$0xff] %v5725_v6  ;;  %v5749_v6 = vsel %vm387_vm1, %v409_v16, %v5736_v36  ;;  %v5768_v16 = vrot.slane %v5222_v44, 2 }
  0x88   :  { %494 = vrot.lane.b32.xlu1 %v5704_v21, %s5009_s20  ;;  %492 = vrot.lane.b32.xlu0 %v5717_v31, %s5009_s20  ;;  %9195 = vst [vmem:[#allocation80_spill] sm:$0xff] %v5749_v6  ;;  %v412_v31 = vrot.slane %v5205_v40, 2 }
  0x89   :  { %9200 = vst [vmem:[#allocation85_spill] sm:$0xff] %v5768_v16 }
  0x8a   :  { %v5739_v10 = vpop.permute.xlu1 %241  ;;  %v5741_v26 = vpop.permute.xlu0 %239 }
  0x8b   :  { %9193 = vst [vmem:[#allocation78_spill] sm:$0xff] %v5739_v10  ;;  %9194 = vst [vmem:[#allocation79_spill] sm:$0xff] %v5741_v26  ;;  %v5765_v26 = vsel %vm387_vm1, %v412_v31, %v5752_v41  ;;  %v5784_v31 = vrot.slane %v5244_v49, 2 }
  0x8c   :  { %498 = vrot.lane.b32.xlu1 %v5720_v1, %s5009_s20  ;;  %496 = vrot.lane.b32.xlu0 %v5733_v3, %s5009_s20  ;;  %9199 = vst [vmem:[#allocation84_spill] sm:$0xff] %v5765_v26  ;;  %v415_v3 = vrot.slane %v5227_v45, 2 }
  0x8d   :  { %9204 = vst [vmem:[#allocation89_spill] sm:$0xff] %v5784_v31 }
  0x8e   :  { %v5755_v21 = vpop.permute.xlu1 %245  ;;  %v5757_v10 = vpop.permute.xlu0 %243 }
  0x8f   :  { %9197 = vst [vmem:[#allocation82_spill] sm:$0xff] %v5755_v21  ;;  %9198 = vst [vmem:[#allocation83_spill] sm:$0xff] %v5757_v10  ;;  %v5781_v10 = vsel %vm387_vm1, %v415_v3, %v5768_v16  ;;  %v5800_v3 = vrot.slane %v5266_v54, 2 }
  0x90   :  { %502 = vrot.lane.b32.xlu1 %v5736_v36, %s5009_s20  ;;  %500 = vrot.lane.b32.xlu0 %v5749_v6, %s5009_s20  ;;  %9203 = vst [vmem:[#allocation88_spill] sm:$0xff] %v5781_v10  ;;  %v418_v6 = vrot.slane %v5249_v50, 2 }
  0x91   :  { %9208 = vst [vmem:[#allocation93_spill] sm:$0xff] %v5800_v3 }
  0x92   :  { %v5771_v1 = vpop.permute.xlu1 %249  ;;  %v5773_v21 = vpop.permute.xlu0 %247 }
  0x93   :  { %9201 = vst [vmem:[#allocation86_spill] sm:$0xff] %v5771_v1  ;;  %9202 = vst [vmem:[#allocation87_spill] sm:$0xff] %v5773_v21  ;;  %v5797_v21 = vsel %vm387_vm1, %v418_v6, %v5784_v31  ;;  %v5816_v6 = vrot.slane %v5288_v59, 2 }
  0x94   :  { %506 = vrot.lane.b32.xlu1 %v5752_v41, %s5009_s20  ;;  %504 = vrot.lane.b32.xlu0 %v5765_v26, %s5009_s20  ;;  %9207 = vst [vmem:[#allocation92_spill] sm:$0xff] %v5797_v21  ;;  %v421_v26 = vrot.slane %v5271_v55, 2 }
  0x95   :  { %9212 = vst [vmem:[#allocation97_spill] sm:$0xff] %v5816_v6 }
  0x96   :  { %v5787_v36 = vpop.permute.xlu1 %253  ;;  %v5789_v1 = vpop.permute.xlu0 %251 }
  0x97   :  { %9205 = vst [vmem:[#allocation90_spill] sm:$0xff] %v5787_v36  ;;  %9206 = vst [vmem:[#allocation91_spill] sm:$0xff] %v5789_v1  ;;  %v5813_v1 = vsel %vm387_vm1, %v421_v26, %v5800_v3  ;;  %v5832_v26 = vrot.slane %v5310_v4, 2 }
  0x98   :  { %510 = vrot.lane.b32.xlu1 %v5768_v16, %s5009_s20  ;;  %508 = vrot.lane.b32.xlu0 %v5781_v10, %s5009_s20  ;;  %9211 = vst [vmem:[#allocation96_spill] sm:$0xff] %v5813_v1  ;;  %v424_v10 = vrot.slane %v5293_v60, 2 }
  0x99   :  { %9216 = vst [vmem:[#allocation101_spill] sm:$0xff] %v5832_v26 }
  0x9a   :  { %v5803_v41 = vpop.permute.xlu1 %257  ;;  %v5805_v36 = vpop.permute.xlu0 %255 }
  0x9b   :  { %9209 = vst [vmem:[#allocation94_spill] sm:$0xff] %v5803_v41  ;;  %9210 = vst [vmem:[#allocation95_spill] sm:$0xff] %v5805_v36  ;;  %v5829_v36 = vsel %vm387_vm1, %v424_v10, %v5816_v6  ;;  %v431_v10 = vrot.slane %v5332_v18, 2 }
  0x9c   :  { %514 = vrot.lane.b32.xlu1 %v5784_v31, %s5009_s20  ;;  %512 = vrot.lane.b32.xlu0 %v5797_v21, %s5009_s20  ;;  %9215 = vst [vmem:[#allocation100_spill] sm:$0xff] %v5829_v36  ;;  %v427_v21 = vrot.slane %v5315_v5, 2 }
  0x9e   :  { %v5819_v16 = vpop.permute.xlu1 %261  ;;  %v5821_v41 = vpop.permute.xlu0 %259 }
  0x9f   :  { %9213 = vst [vmem:[#allocation98_spill] sm:$0xff] %v5819_v16  ;;  %9214 = vst [vmem:[#allocation99_spill] sm:$0xff] %v5821_v41  ;;  %v5845_v41 = vsel %vm387_vm1, %v427_v21, %v5832_v26  ;;  %v433_v21 = vrot.slane %v5357_v48, 2 }
  0xa0   :  { %518 = vrot.lane.b32.xlu1 %v5800_v3, %s5009_s20  ;;  %516 = vrot.lane.b32.xlu0 %v5813_v1, %s5009_s20  ;;  %9219 = vst [vmem:[#allocation104_spill] sm:$0xff] %v5845_v41  ;;  %v430_v1 = vrot.slane %v5337_v23, 2 }
  0xa2   :  { %v5835_v31 = vpop.permute.xlu1 %265  ;;  %v5837_v16 = vpop.permute.xlu0 %263 }
  0xa3   :  { %9217 = vst [vmem:[#allocation102_spill] sm:$0xff] %v5835_v31  ;;  %9218 = vst [vmem:[#allocation103_spill] sm:$0xff] %v5837_v16  ;;  %v432_v31 = vsel %vm387_vm1, %v430_v1, %v431_v10  ;;  %v5859_v16 = vrot.slane %v5352_v43, 2  ;;  %v436_v1 = vrot.slane %v5376_v9, 2 }
  0xa4   :  { %522 = vrot.lane.b32.xlu1 %v5816_v6, %s5009_s20  ;;  %520 = vrot.lane.b32.xlu0 %v5829_v36, %s5009_s20 }
  0xa6   :  { %v5849_v3 = vpop.permute.xlu1 %269  ;;  %v5851_v5 = vpop.permute.xlu0 %267 }
  0xa7   :  { %9220 = vst [vmem:[#allocation105_spill] sm:$0xff] %v5849_v3  ;;  %9221 = vst [vmem:[#allocation106_spill] sm:$0xff] %v5851_v5  ;;  %v5870_v3 = vsel %vm387_vm1, %v433_v21, %v5859_v16  ;;  %v5873_v5 = vrot.slane %v5371_v13, 2  ;;  %v439_v21 = vrot.slane %v5396_v33, 2 }
  0xa8   :  { %526 = vrot.lane.b32.xlu1 %v5832_v26, %s5009_s20  ;;  %524 = vrot.lane.b32.xlu0 %v5845_v41, %s5009_s20  ;;  %9224 = vst [vmem:[#allocation109_spill] sm:$0xff] %v5870_v3 }
  0xa9   :  { %9225 = vst [vmem:[#allocation110_spill] sm:$0xff] %v5873_v5 }
  0xaa   :  { %v5862_v18 = vpop.permute.xlu1 %273  ;;  %v5864_v23 = vpop.permute.xlu0 %271 }
  0xab   :  { %9222 = vst [vmem:[#allocation107_spill] sm:$0xff] %v5862_v18  ;;  %9223 = vst [vmem:[#allocation108_spill] sm:$0xff] %v5864_v23 }
  0xac   :  { %530 = vrot.lane.b32.xlu1 %v431_v10, %s5009_s20  ;;  %528 = vrot.lane.b32.xlu0 %v432_v31, %s5009_s20  ;;  %v5886_v31 = vsel %vm387_vm1, %v436_v1, %v5873_v5  ;;  %v5889_v10 = vrot.slane %v5391_v62, 2  ;;  %v5905_v1 = vrot.slane %v5413_v57, 2 }
  0xad   :  { %9228 = vst [vmem:[#allocation113_spill] sm:$0xff] %v5886_v31 }
  0xae   :  { %v5876_v41 = vpop.permute.xlu1 %277  ;;  %v5878_v26 = vpop.permute.xlu0 %275  ;;  %9229 = vst [vmem:[#allocation114_spill] sm:$0xff] %v5889_v10  ;;  %9233 = vst [vmem:[#allocation118_spill] sm:$0xff] %v5905_v1 }
  0xaf   :  { %9226 = vst [vmem:[#allocation111_spill] sm:$0xff] %v5876_v41  ;;  %9227 = vst [vmem:[#allocation112_spill] sm:$0xff] %v5878_v26  ;;  %v5902_v41 = vsel %vm387_vm1, %v439_v21, %v5889_v10  ;;  %v442_v26 = vrot.slane %v5418_v58, 2  ;;  %v5921_v21 = vrot.slane %v5435_v52, 2 }
  0xb0   :  { %534 = vrot.lane.b32.xlu1 %v5859_v16, %s5009_s20  ;;  %532 = vrot.lane.b32.xlu0 %v5870_v3, %s5009_s20  ;;  %9232 = vst [vmem:[#allocation117_spill] sm:$0xff] %v5902_v41 }
  0xb1   :  { %9237 = vst [vmem:[#allocation122_spill] sm:$0xff] %v5921_v21 }
  0xb2   :  { %v5892_v18 = vpop.permute.xlu1 %281  ;;  %v5894_v23 = vpop.permute.xlu0 %279 }
  0xb3   :  { %9230 = vst [vmem:[#allocation115_spill] sm:$0xff] %v5892_v18  ;;  %9231 = vst [vmem:[#allocation116_spill] sm:$0xff] %v5894_v23  ;;  %v5918_v23 = vsel %vm387_vm1, %v442_v26, %v5905_v1  ;;  %v5937_v26 = vrot.slane %v5457_v47, 2 }
  0xb4   :  { %538 = vrot.lane.b32.xlu1 %v5873_v5, %s5009_s20  ;;  %536 = vrot.lane.b32.xlu0 %v5886_v31, %s5009_s20  ;;  %9236 = vst [vmem:[#allocation121_spill] sm:$0xff] %v5918_v23  ;;  %v445_v5 = vrot.slane %v5440_v28, 2 }
  0xb5   :  { %9241 = vst [vmem:[#allocation126_spill] sm:$0xff] %v5937_v26 }
  0xb6   :  { %v5908_v3 = vpop.permute.xlu1 %285  ;;  %v5910_v18 = vpop.permute.xlu0 %283 }
  0xb7   :  { %9234 = vst [vmem:[#allocation119_spill] sm:$0xff] %v5908_v3  ;;  %9235 = vst [vmem:[#allocation120_spill] sm:$0xff] %v5910_v18  ;;  %v5934_v18 = vsel %vm387_vm1, %v445_v5, %v5921_v21  ;;  %v5953_v5 = vrot.slane %v5479_v42, 2 }
  0xb8   :  { %542 = vrot.lane.b32.xlu1 %v5889_v10, %s5009_s20  ;;  %540 = vrot.lane.b32.xlu0 %v5902_v41, %s5009_s20  ;;  %9240 = vst [vmem:[#allocation125_spill] sm:$0xff] %v5934_v18  ;;  %v448_v10 = vrot.slane %v5462_v63, 2 }
  0xb9   :  { %9245 = vst [vmem:[#allocation130_spill] sm:$0xff] %v5953_v5 }
  0xba   :  { %v5924_v31 = vpop.permute.xlu1 %289  ;;  %v5926_v3 = vpop.permute.xlu0 %287 }
  0xbb   :  { %9238 = vst [vmem:[#allocation123_spill] sm:$0xff] %v5924_v31  ;;  %9239 = vst [vmem:[#allocation124_spill] sm:$0xff] %v5926_v3  ;;  %v5950_v3 = vsel %vm387_vm1, %v448_v10, %v5937_v26  ;;  %v5969_v10 = vrot.slane %v5501_v37, 2 }
  0xbc   :  { %546 = vrot.lane.b32.xlu1 %v5905_v1, %s5009_s20  ;;  %544 = vrot.lane.b32.xlu0 %v5918_v23, %s5009_s20  ;;  %9244 = vst [vmem:[#allocation129_spill] sm:$0xff] %v5950_v3  ;;  %v451_v1 = vrot.slane %v5484_v38, 2 }
  0xbd   :  { %9249 = vst [vmem:[#allocation134_spill] sm:$0xff] %v5969_v10 }
  0xbe   :  { %v5940_v41 = vpop.permute.xlu1 %293  ;;  %v5942_v31 = vpop.permute.xlu0 %291 }
  0xbf   :  { %9242 = vst [vmem:[#allocation127_spill] sm:$0xff] %v5940_v41  ;;  %9243 = vst [vmem:[#allocation128_spill] sm:$0xff] %v5942_v31  ;;  %v5966_v31 = vsel %vm387_vm1, %v451_v1, %v5953_v5  ;;  %v5985_v1 = vrot.slane %v5523_v32, 2 }
  0xc0   :  { %550 = vrot.lane.b32.xlu1 %v5921_v21, %s5009_s20  ;;  %548 = vrot.lane.b32.xlu0 %v5934_v18, %s5009_s20  ;;  %9248 = vst [vmem:[#allocation133_spill] sm:$0xff] %v5966_v31  ;;  %v454_v21 = vrot.slane %v5506_v53, 2 }
  0xc1   :  { %9253 = vst [vmem:[#allocation138_spill] sm:$0xff] %v5985_v1 }
  0xc2   :  { %v5956_v23 = vpop.permute.xlu1 %297  ;;  %v5958_v41 = vpop.permute.xlu0 %295 }
  0xc3   :  { %9246 = vst [vmem:[#allocation131_spill] sm:$0xff] %v5956_v23  ;;  %9247 = vst [vmem:[#allocation132_spill] sm:$0xff] %v5958_v41  ;;  %v5982_v41 = vsel %vm387_vm1, %v454_v21, %v5969_v10  ;;  %v6001_v21 = vrot.slane %v5545_v27, 2 }
  0xc4   :  { %554 = vrot.lane.b32.xlu1 %v5937_v26, %s5009_s20  ;;  %552 = vrot.lane.b32.xlu0 %v5950_v3, %s5009_s20  ;;  %9252 = vst [vmem:[#allocation137_spill] sm:$0xff] %v5982_v41  ;;  %v457_v26 = vrot.slane %v5528_v11, 2 }
  0xc5   :  { %9257 = vst [vmem:[#allocation142_spill] sm:$0xff] %v6001_v21 }
  0xc6   :  { %v5972_v18 = vpop.permute.xlu1 %301  ;;  %v5974_v23 = vpop.permute.xlu0 %299 }
  0xc7   :  { %9250 = vst [vmem:[#allocation135_spill] sm:$0xff] %v5972_v18  ;;  %9251 = vst [vmem:[#allocation136_spill] sm:$0xff] %v5974_v23  ;;  %v5998_v23 = vsel %vm387_vm1, %v457_v26, %v5985_v1  ;;  %v6017_v26 = vrot.slane %v5567_v22, 2 }
  0xc8   :  { %558 = vrot.lane.b32.xlu1 %v5953_v5, %s5009_s20  ;;  %556 = vrot.lane.b32.xlu0 %v5966_v31, %s5009_s20  ;;  %9256 = vst [vmem:[#allocation141_spill] sm:$0xff] %v5998_v23  ;;  %v460_v5 = vrot.slane %v5550_v61, 2 }
  0xc9   :  { %9261 = vst [vmem:[#allocation146_spill] sm:$0xff] %v6017_v26 }
  0xca   :  { %v5988_v3 = vpop.permute.xlu1 %305  ;;  %v5990_v18 = vpop.permute.xlu0 %303 }
  0xcb   :  { %9254 = vst [vmem:[#allocation139_spill] sm:$0xff] %v5988_v3  ;;  %9255 = vst [vmem:[#allocation140_spill] sm:$0xff] %v5990_v18  ;;  %v6014_v18 = vsel %vm387_vm1, %v460_v5, %v6001_v21  ;;  %v6033_v5 = vrot.slane %v5589_v17, 2 }
  0xcc   :  { %562 = vrot.lane.b32.xlu1 %v5969_v10, %s5009_s20  ;;  %560 = vrot.lane.b32.xlu0 %v5982_v41, %s5009_s20  ;;  %9260 = vst [vmem:[#allocation145_spill] sm:$0xff] %v6014_v18  ;;  %v463_v10 = vrot.slane %v5572_v56, 2 }
  0xcd   :  { %9265 = vst [vmem:[#allocation150_spill] sm:$0xff] %v6033_v5 }
  0xce   :  { %v6004_v31 = vpop.permute.xlu1 %309  ;;  %v6006_v3 = vpop.permute.xlu0 %307 }
  0xcf   :  { %9258 = vst [vmem:[#allocation143_spill] sm:$0xff] %v6004_v31  ;;  %9259 = vst [vmem:[#allocation144_spill] sm:$0xff] %v6006_v3  ;;  %v6030_v3 = vsel %vm387_vm1, %v463_v10, %v6017_v26  ;;  %v6049_v10 = vrot.slane %v5611_v12, 2 }
  0xd0   :  { %566 = vrot.lane.b32.xlu1 %v5985_v1, %s5009_s20  ;;  %564 = vrot.lane.b32.xlu0 %v5998_v23, %s5009_s20  ;;  %9264 = vst [vmem:[#allocation149_spill] sm:$0xff] %v6030_v3  ;;  %v466_v1 = vrot.slane %v5594_v51, 2 }
  0xd1   :  { %9269 = vst [vmem:[#allocation154_spill] sm:$0xff] %v6049_v10 }
  0xd2   :  { %v6020_v41 = vpop.permute.xlu1 %313  ;;  %v6022_v31 = vpop.permute.xlu0 %311 }
  0xd3   :  { %9262 = vst [vmem:[#allocation147_spill] sm:$0xff] %v6020_v41  ;;  %9263 = vst [vmem:[#allocation148_spill] sm:$0xff] %v6022_v31  ;;  %v6046_v31 = vsel %vm387_vm1, %v466_v1, %v6033_v5 }
  0xd4   :  { %570 = vrot.lane.b32.xlu1 %v6001_v21, %s5009_s20  ;;  %568 = vrot.lane.b32.xlu0 %v6014_v18, %s5009_s20  ;;  %9268 = vst [vmem:[#allocation153_spill] sm:$0xff] %v6046_v31  ;;  %v469_v21 = vrot.slane %v5616_v46, 2 }
  0xd6   :  { %v6036_v23 = vpop.permute.xlu1 %317  ;;  %v6038_v41 = vpop.permute.xlu0 %315 }
  0xd7   :  { %9266 = vst [vmem:[#allocation151_spill] sm:$0xff] %v6036_v23  ;;  %9267 = vst [vmem:[#allocation152_spill] sm:$0xff] %v6038_v41  ;;  %v6062_v41 = vsel %vm387_vm1, %v469_v21, %v6049_v10 }
  0xd8   :  { %574 = vrot.lane.b32.xlu1 %v6017_v26, %s5009_s20  ;;  %572 = vrot.lane.b32.xlu0 %v6030_v3, %s5009_s20  ;;  %9272 = vst [vmem:[#allocation157_spill] sm:$0xff] %v6062_v41  ;;  %v9361_v3 = vld [vmem:[#allocation21_spill] sm:$0xff] }
  0xda   :  { %v6052_v18 = vpop.permute.xlu1 %321  ;;  %v6054_v23 = vpop.permute.xlu0 %319 }
  0xdb   :  { %9270 = vst [vmem:[#allocation155_spill] sm:$0xff] %v6052_v18  ;;  %9271 = vst [vmem:[#allocation156_spill] sm:$0xff] %v6054_v23 }
  0xdc   :  { %578 = vrot.lane.b32.xlu1 %v6033_v5, %s5009_s20  ;;  %576 = vrot.lane.b32.xlu0 %v6046_v31, %s5009_s20 }
  0xde   :  { %v6064_v1 = vpop.permute.xlu1 %325  ;;  %v6066_v26 = vpop.permute.xlu0 %323 }
  0xdf   :  { %9273 = vst [vmem:[#allocation158_spill] sm:$0xff] %v6064_v1  ;;  %9274 = vst [vmem:[#allocation159_spill] sm:$0xff] %v6066_v26 }
  0xe0   :  { %582 = vrot.lane.b32.xlu1 %v6049_v10, %s5009_s20  ;;  %580 = vrot.lane.b32.xlu0 %v6062_v41, %s5009_s20  ;;  %v9344_v10 = vld [vmem:[#allocation12_spill] sm:$0xff]  ;;  %v9348_v41 = vld [vmem:[#allocation14_spill] sm:$0xff] }
  0xe2   :  { %v6072_v18 = vpop.permute.xlu1 %329  ;;  %v6074_v23 = vpop.permute.xlu0 %327 }
  0xe3   :  { %9275 = vst [vmem:[#allocation160_spill] sm:$0xff] %v6072_v18  ;;  %9276 = vst [vmem:[#allocation161_spill] sm:$0xff] %v6074_v23 }
  0xe4   :  { %646 = vrot.lane.b32.xlu1 %v5043_v0, %s5010_s24  ;;  %644 = vrot.lane.b32.xlu0 %v5053_v2, %s5010_s24 }
  0xe6   :  { %v6080_v21 = vpop.permute.xlu1 %474  ;;  %v6082_v1 = vpop.permute.xlu0 %472 }
  0xe8   :  { %650 = vrot.lane.b32.xlu1 %v5068_v7, %s5010_s24  ;;  %648 = vrot.lane.b32.xlu0 %v5073_v8, %s5010_s24 }
  0xea   :  { %v6088_v18 = vpop.permute.xlu1 %478  ;;  %v6090_v23 = vpop.permute.xlu0 %476 }
  0xec   :  { %654 = vrot.lane.b32.xlu1 %v5091_v14, %s5010_s24  ;;  %652 = vrot.lane.b32.xlu0 %v5096_v15, %s5010_s24 }
  0xee   :  { %v6096_v0 = vpop.permute.xlu1 %482  ;;  %v6098_v2 = vpop.permute.xlu0 %480 }
  0xef   :  { %9277 = vst [vmem:[#allocation162_spill] sm:$0xff] %v6096_v0  ;;  %9278 = vst [vmem:[#allocation163_spill] sm:$0xff] %v6098_v2  ;;  %v9447_v0 = vld [vmem:[#allocation72_spill] sm:$0xff] }
  0xf0   :  { %658 = vrot.lane.b32.xlu1 %v5112_v19, %s5010_s24  ;;  %656 = vrot.lane.b32.xlu0 %v5117_v20, %s5010_s24  ;;  %v9459_v2 = vld [vmem:[#allocation84_spill] sm:$0xff] }
  0xf2   :  { %v6104_v7 = vpop.permute.xlu1 %486  ;;  %v6106_v8 = vpop.permute.xlu0 %484 }
  0xf3   :  { %9279 = vst [vmem:[#allocation164_spill] sm:$0xff] %v6104_v7  ;;  %9280 = vst [vmem:[#allocation165_spill] sm:$0xff] %v6106_v8  ;;  %v9403_v7 = vld [vmem:[#allocation42_spill] sm:$0xff] }
  0xf4   :  { %662 = vrot.lane.b32.xlu1 %v5134_v24, %s5010_s24  ;;  %660 = vrot.lane.b32.xlu0 %v5139_v25, %s5010_s24 }
  0xf6   :  { %v6112_v14 = vpop.permute.xlu1 %490  ;;  %v6114_v15 = vpop.permute.xlu0 %488 }
  0xf7   :  { %9281 = vst [vmem:[#allocation166_spill] sm:$0xff] %v6112_v14  ;;  %9282 = vst [vmem:[#allocation167_spill] sm:$0xff] %v6114_v15  ;;  %v9391_v14 = vld [vmem:[#allocation36_spill] sm:$0xff] }
  0xf8   :  { %666 = vrot.lane.b32.xlu1 %v5156_v29, %s5010_s24  ;;  %664 = vrot.lane.b32.xlu0 %v5161_v30, %s5010_s24 }
  0xfa   :  { %v6120_v19 = vpop.permute.xlu1 %494  ;;  %v6122_v20 = vpop.permute.xlu0 %492 }
  0xfb   :  { %9283 = vst [vmem:[#allocation168_spill] sm:$0xff] %v6120_v19  ;;  %9284 = vst [vmem:[#allocation169_spill] sm:$0xff] %v6122_v20  ;;  %v9373_v20 = vld [vmem:[#allocation27_spill] sm:$0xff] }
  0xfc   :  { %670 = vrot.lane.b32.xlu1 %v5178_v34, %s5010_s24  ;;  %668 = vrot.lane.b32.xlu0 %v5183_v35, %s5010_s24 }
  0xfe   :  { %v6128_v24 = vpop.permute.xlu1 %498  ;;  %v6130_v25 = vpop.permute.xlu0 %496 }
  0xff   :  { %9285 = vst [vmem:[#allocation170_spill] sm:$0xff] %v6128_v24  ;;  %9286 = vst [vmem:[#allocation171_spill] sm:$0xff] %v6130_v25  ;;  %v9356_v24 = vld [vmem:[#allocation18_spill] sm:$0xff] }
 0x100   :  { %674 = vrot.lane.b32.xlu1 %v5200_v39, %s5010_s24  ;;  %672 = vrot.lane.b32.xlu0 %v5205_v40, %s5010_s24 }
 0x102   :  { %v6136_v29 = vpop.permute.xlu1 %502  ;;  %v6138_v30 = vpop.permute.xlu0 %500 }
 0x103   :  { %9287 = vst [vmem:[#allocation172_spill] sm:$0xff] %v6136_v29  ;;  %9288 = vst [vmem:[#allocation173_spill] sm:$0xff] %v6138_v30  ;;  %v9353_v30 = vld [vmem:[#allocation17_spill] sm:$0xff] }
 0x104   :  { %678 = vrot.lane.b32.xlu1 %v5222_v44, %s5010_s24  ;;  %676 = vrot.lane.b32.xlu0 %v5227_v45, %s5010_s24 }
 0x106   :  { %v6144_v34 = vpop.permute.xlu1 %506  ;;  %v6146_v35 = vpop.permute.xlu0 %504 }
 0x107   :  { %9289 = vst [vmem:[#allocation174_spill] sm:$0xff] %v6144_v34  ;;  %9290 = vst [vmem:[#allocation175_spill] sm:$0xff] %v6146_v35 }
 0x108   :  { %682 = vrot.lane.b32.xlu1 %v5244_v49, %s5010_s24  ;;  %680 = vrot.lane.b32.xlu0 %v5249_v50, %s5010_s24 }
 0x10a   :  { %v6152_v39 = vpop.permute.xlu1 %510  ;;  %v6154_v40 = vpop.permute.xlu0 %508 }
 0x10b   :  { %9291 = vst [vmem:[#allocation176_spill] sm:$0xff] %v6152_v39  ;;  %9292 = vst [vmem:[#allocation177_spill] sm:$0xff] %v6154_v40  ;;  %v9340_v39 = vld [vmem:[#allocation10_spill] sm:$0xff] }
 0x10c   :  { %686 = vrot.lane.b32.xlu1 %v5266_v54, %s5010_s24  ;;  %684 = vrot.lane.b32.xlu0 %v5271_v55, %s5010_s24  ;;  %v9297_v54 = vld [vmem:[#allocation25_spill] sm:$0xff]  ;;  %v6179_v55 = vld [vmem:[%s8905_s0 + $0xe8] sm:$0xff] }
 0x10e   :  { %v6160_v44 = vpop.permute.xlu1 %514  ;;  %v6162_v45 = vpop.permute.xlu0 %512 }
 0x10f   :  { %9293 = vst [vmem:[#allocation178_spill] sm:$0xff] %v6160_v44  ;;  %9294 = vst [vmem:[#allocation179_spill] sm:$0xff] %v6162_v45 }
 0x110   :  { %690 = vrot.lane.b32.xlu1 %v5288_v59, %s5010_s24  ;;  %688 = vrot.lane.b32.xlu0 %v5293_v60, %s5010_s24  ;;  %v6184_v59 = vld [vmem:[%s8905_s0 + $0xe0] sm:$0xff] }
 0x112   :  { %v6168_v49 = vpop.permute.xlu1 %518  ;;  %v6170_v50 = vpop.permute.xlu0 %516 }
 0x113   :  { %9295 = vst [vmem:[#allocation180_spill] sm:$0xff] %v6168_v49  ;;  %9296 = vst [vmem:[#allocation181_spill] sm:$0xff] %v6170_v50  ;;  %v9332_v50 = vld [vmem:[#allocation6_spill] sm:$0xff] }
 0x114   :  { %694 = vrot.lane.b32.xlu1 %v5310_v4, %s5010_s24  ;;  %692 = vrot.lane.b32.xlu0 %v9297_v54, %s5010_s24 }
 0x116   :  { %v6186_v60 = vpop.permute.xlu1 %522  ;;  %v6188_v26 = vpop.permute.xlu0 %520 }
 0x117   :  { %9298 = vst [vmem:[#allocation25_spill] sm:$0xff] %v6186_v60  ;;  %9299 = vst [vmem:[#allocation182_spill] sm:$0xff] %v6188_v26 }
 0x118   :  { %698 = vrot.lane.b32.xlu1 %v6179_v55, %s5010_s24  ;;  %696 = vrot.lane.b32.xlu0 %v6184_v59, %s5010_s24 }
 0x11a   :  { %v6194_v4 = vpop.permute.xlu1 %526  ;;  %v6196_v54 = vpop.permute.xlu0 %524 }
 0x11b   :  { %9300 = vst [vmem:[#allocation183_spill] sm:$0xff] %v6194_v4  ;;  %9301 = vst [vmem:[#allocation184_spill] sm:$0xff] %v6196_v54  ;;  %v9328_v54 = vld [vmem:[#allocation2_spill] sm:$0xff] }
 0x11c   :  { %702 = vrot.lane.b32.xlu1 %v5352_v43, %s5010_s24  ;;  %700 = vrot.lane.b32.xlu0 %v5357_v48, %s5010_s24 }
 0x11e   :  { %v6202_v49 = vpop.permute.xlu1 %530  ;;  %v6204_v60 = vpop.permute.xlu0 %528 }
 0x120   :  { %706 = vrot.lane.b32.xlu1 %v5371_v13, %s5010_s24  ;;  %704 = vrot.lane.b32.xlu0 %v5376_v9, %s5010_s24 }
 0x122   :  { %v6210_v26 = vpop.permute.xlu1 %534  ;;  %v6212_v4 = vpop.permute.xlu0 %532 }
 0x123   :  { %9302 = vst [vmem:[#allocation185_spill] sm:$0xff] %v6210_v26  ;;  %9303 = vst [vmem:[#allocation186_spill] sm:$0xff] %v6212_v4  ;;  %v9451_v26 = vld [vmem:[#allocation76_spill] sm:$0xff] }
 0x124   :  { %710 = vrot.lane.b32.xlu1 %v5391_v62, %s5010_s24  ;;  %708 = vrot.lane.b32.xlu0 %v5396_v33, %s5010_s24  ;;  %v9463_v4 = vld [vmem:[#allocation88_spill] sm:$0xff] }
 0x126   :  { %v6218_v43 = vpop.permute.xlu1 %538  ;;  %v6220_v48 = vpop.permute.xlu0 %536 }
 0x127   :  { %9304 = vst [vmem:[#allocation187_spill] sm:$0xff] %v6218_v43  ;;  %9305 = vst [vmem:[#allocation188_spill] sm:$0xff] %v6220_v48  ;;  %v9407_v43 = vld [vmem:[#allocation44_spill] sm:$0xff] }
 0x128   :  { %714 = vrot.lane.b32.xlu1 %v5413_v57, %s5010_s24  ;;  %712 = vrot.lane.b32.xlu0 %v5418_v58, %s5010_s24 }
 0x12a   :  { %v6226_v9 = vpop.permute.xlu1 %542  ;;  %v6228_v13 = vpop.permute.xlu0 %540 }
 0x12b   :  { %9306 = vst [vmem:[#allocation189_spill] sm:$0xff] %v6226_v9  ;;  %9307 = vst [vmem:[#allocation190_spill] sm:$0xff] %v6228_v13  ;;  %v9394_v9 = vld [vmem:[#allocation37_spill] sm:$0xff]  ;;  %v9398_v13 = vld [vmem:[#allocation39_spill] sm:$0xff] }
 0x12c   :  { %718 = vrot.lane.b32.xlu1 %v5435_v52, %s5010_s24  ;;  %716 = vrot.lane.b32.xlu0 %v5440_v28, %s5010_s24 }
 0x12e   :  { %v6234_v62 = vpop.permute.xlu1 %546  ;;  %v6236_v33 = vpop.permute.xlu0 %544 }
 0x12f   :  { %9308 = vst [vmem:[#allocation191_spill] sm:$0xff] %v6234_v62  ;;  %9309 = vst [vmem:[#allocation192_spill] sm:$0xff] %v6236_v33  ;;  %v9369_v62 = vld [vmem:[#allocation26_spill] sm:$0xff] }
 0x130   :  { %722 = vrot.lane.b32.xlu1 %v5457_v47, %s5010_s24  ;;  %720 = vrot.lane.b32.xlu0 %v5462_v63, %s5010_s24 }
 0x132   :  { %v6242_v57 = vpop.permute.xlu1 %550  ;;  %v6244_v58 = vpop.permute.xlu0 %548 }
 0x133   :  { %9310 = vst [vmem:[#allocation193_spill] sm:$0xff] %v6242_v57  ;;  %9311 = vst [vmem:[#allocation194_spill] sm:$0xff] %v6244_v58  ;;  %v9357_v57 = vld [vmem:[#allocation19_spill] sm:$0xff] }
 0x134   :  { %726 = vrot.lane.b32.xlu1 %v5479_v42, %s5010_s24  ;;  %724 = vrot.lane.b32.xlu0 %v5484_v38, %s5010_s24 }
 0x136   :  { %v6250_v52 = vpop.permute.xlu1 %554  ;;  %v6252_v28 = vpop.permute.xlu0 %552 }
 0x137   :  { %9312 = vst [vmem:[#allocation195_spill] sm:$0xff] %v6250_v52  ;;  %9313 = vst [vmem:[#allocation196_spill] sm:$0xff] %v6252_v28  ;;  %v9352_v52 = vld [vmem:[#allocation16_spill] sm:$0xff] }
 0x138   :  { %730 = vrot.lane.b32.xlu1 %v5501_v37, %s5010_s24  ;;  %728 = vrot.lane.b32.xlu0 %v5506_v53, %s5010_s24 }
 0x13a   :  { %v6258_v47 = vpop.permute.xlu1 %558  ;;  %v6260_v63 = vpop.permute.xlu0 %556 }
 0x13b   :  { %9314 = vst [vmem:[#allocation197_spill] sm:$0xff] %v6258_v47  ;;  %9315 = vst [vmem:[#allocation198_spill] sm:$0xff] %v6260_v63  ;;  %v9349_v63 = vld [vmem:[#allocation15_spill] sm:$0xff] }
 0x13c   :  { %734 = vrot.lane.b32.xlu1 %v5523_v32, %s5010_s24  ;;  %732 = vrot.lane.b32.xlu0 %v5528_v11, %s5010_s24 }
 0x13e   :  { %v6266_v42 = vpop.permute.xlu1 %562  ;;  %v6268_v38 = vpop.permute.xlu0 %560 }
 0x13f   :  { %9316 = vst [vmem:[#allocation199_spill] sm:$0xff] %v6266_v42  ;;  %9317 = vst [vmem:[#allocation200_spill] sm:$0xff] %v6268_v38  ;;  %v9341_v42 = vld [vmem:[#allocation11_spill] sm:$0xff]  ;;  %v9345_v38 = vld [vmem:[#allocation13_spill] sm:$0xff] }
 0x140   :  { %738 = vrot.lane.b32.xlu1 %v5545_v27, %s5010_s24  ;;  %736 = vrot.lane.b32.xlu0 %v5550_v61, %s5010_s24 }
 0x142   :  { %v6274_v37 = vpop.permute.xlu1 %566  ;;  %v6276_v53 = vpop.permute.xlu0 %564 }
 0x143   :  { %9318 = vst [vmem:[#allocation201_spill] sm:$0xff] %v6274_v37  ;;  %9319 = vst [vmem:[#allocation202_spill] sm:$0xff] %v6276_v53  ;;  %v9337_v37 = vld [vmem:[#allocation9_spill] sm:$0xff] }
 0x144   :  { %742 = vrot.lane.b32.xlu1 %v5567_v22, %s5010_s24  ;;  %740 = vrot.lane.b32.xlu0 %v5572_v56, %s5010_s24  ;;  %v6301_v22 = vld [vmem:[%s8905_s0 + $0x1e8] sm:$0xff] }
 0x146   :  { %v6282_v32 = vpop.permute.xlu1 %570  ;;  %v6284_v11 = vpop.permute.xlu0 %568 }
 0x147   :  { %9320 = vst [vmem:[#allocation203_spill] sm:$0xff] %v6282_v32  ;;  %9321 = vst [vmem:[#allocation204_spill] sm:$0xff] %v6284_v11  ;;  %v9331_v32 = vld [vmem:[#allocation5_spill] sm:$0xff]  ;;  %v9336_v11 = vld [vmem:[#allocation8_spill] sm:$0xff] }
 0x148   :  { %746 = vrot.lane.b32.xlu1 %v5589_v17, %s5010_s24  ;;  %744 = vrot.lane.b32.xlu0 %v5594_v51, %s5010_s24  ;;  %v6306_v17 = vld [vmem:[%s8905_s0 + $0x1e0] sm:$0xff] }
 0x14a   :  { %v6290_v27 = vpop.permute.xlu1 %574  ;;  %v6292_v61 = vpop.permute.xlu0 %572 }
 0x14b   :  { %9322 = vst [vmem:[#allocation205_spill] sm:$0xff] %v6290_v27  ;;  %9323 = vst [vmem:[#allocation206_spill] sm:$0xff] %v6292_v61  ;;  %v9329_v27 = vld [vmem:[#allocation3_spill] sm:$0xff]  ;;  %v9330_v61 = vld [vmem:[#allocation4_spill] sm:$0xff] }
 0x14c   :  { %750 = vrot.lane.b32.xlu1 %v5611_v12, %s5010_s24  ;;  %748 = vrot.lane.b32.xlu0 %v5616_v46, %s5010_s24 }
 0x14e   :  { %v6308_v56 = vpop.permute.xlu1 %578  ;;  %v6310_v51 = vpop.permute.xlu0 %576 }
 0x14f   :  { %9324 = vst [vmem:[#allocation207_spill] sm:$0xff] %v6308_v56  ;;  %9325 = vst [vmem:[#allocation208_spill] sm:$0xff] %v6310_v51 }
 0x150   :  { %754 = vrot.lane.b32.xlu1 %v6301_v22, %s5010_s24  ;;  %752 = vrot.lane.b32.xlu0 %v6306_v17, %s5010_s24 }
 0x152   :  { %v6316_v12 = vpop.permute.xlu1 %582  ;;  %v6318_v46 = vpop.permute.xlu0 %580 }
 0x153   :  { %9326 = vst [vmem:[#allocation209_spill] sm:$0xff] %v6316_v12  ;;  %9327 = vst [vmem:[#allocation210_spill] sm:$0xff] %v6318_v46 }
 0x154   :  { %820 = vrot.lane.b32.xlu1 %v9328_v54, %s5011_s30  ;;  %818 = vrot.lane.b32.xlu0 %v9329_v27, %s5011_s30  ;;  %v9333_v54 = vld [vmem:[#allocation7_spill] sm:$0xff] }
 0x156   :  { %v6324_v56 = vpop.permute.xlu1 %646  ;;  %v6326_v51 = vpop.permute.xlu0 %644 }
 0x158   :  { %824 = vrot.lane.b32.xlu1 %v9330_v61, %s5011_s30  ;;  %822 = vrot.lane.b32.xlu0 %v9331_v32, %s5011_s30 }
 0x15a   :  { %v6332_v12 = vpop.permute.xlu1 %650  ;;  %v6334_v46 = vpop.permute.xlu0 %648 }
 0x15c   :  { %828 = vrot.lane.b32.xlu1 %v9332_v50, %s5011_s30  ;;  %826 = vrot.lane.b32.xlu0 %v9333_v54, %s5011_s30 }
 0x15e   :  { %v6340_v27 = vpop.permute.xlu1 %654  ;;  %v6342_v44 = vpop.permute.xlu0 %652 }
 0x15f   :  { %9334 = vst [vmem:[#allocation2_spill] sm:$0xff] %v6340_v27  ;;  %9335 = vst [vmem:[#allocation3_spill] sm:$0xff] %v6342_v44  ;;  %v9455_v44 = vld [vmem:[#allocation80_spill] sm:$0xff] }
 0x160   :  { %832 = vrot.lane.b32.xlu1 %v9336_v11, %s5011_s30  ;;  %830 = vrot.lane.b32.xlu0 %v9337_v37, %s5011_s30 }
 0x162   :  { %v6348_v45 = vpop.permute.xlu1 %658  ;;  %v6350_v53 = vpop.permute.xlu0 %656 }
 0x163   :  { %9338 = vst [vmem:[#allocation4_spill] sm:$0xff] %v6348_v45  ;;  %9339 = vst [vmem:[#allocation5_spill] sm:$0xff] %v6350_v53  ;;  %v9399_v45 = vld [vmem:[#allocation40_spill] sm:$0xff]  ;;  %v9411_v53 = vld [vmem:[#allocation46_spill] sm:$0xff] }
 0x164   :  { %836 = vrot.lane.b32.xlu1 %v9340_v39, %s5011_s30  ;;  %834 = vrot.lane.b32.xlu0 %v9341_v42, %s5011_s30 }
 0x166   :  { %v6356_v40 = vpop.permute.xlu1 %662  ;;  %v6358_v34 = vpop.permute.xlu0 %660 }
 0x167   :  { %9342 = vst [vmem:[#allocation6_spill] sm:$0xff] %v6356_v40  ;;  %9343 = vst [vmem:[#allocation7_spill] sm:$0xff] %v6358_v34  ;;  %v9390_v40 = vld [vmem:[#allocation35_spill] sm:$0xff]  ;;  %v9395_v34 = vld [vmem:[#allocation38_spill] sm:$0xff] }
 0x168   :  { %840 = vrot.lane.b32.xlu1 %v9344_v10, %s5011_s30  ;;  %838 = vrot.lane.b32.xlu0 %v9345_v38, %s5011_s30 }
 0x16a   :  { %v6364_v47 = vpop.permute.xlu1 %666  ;;  %v6366_v35 = vpop.permute.xlu0 %664 }
 0x16b   :  { %9346 = vst [vmem:[#allocation8_spill] sm:$0xff] %v6364_v47  ;;  %9347 = vst [vmem:[#allocation9_spill] sm:$0xff] %v6366_v35  ;;  %v9365_v47 = vld [vmem:[#allocation23_spill] sm:$0xff] }
 0x16c   :  { %844 = vrot.lane.b32.xlu1 %v9348_v41, %s5011_s30  ;;  %842 = vrot.lane.b32.xlu0 %v9349_v63, %s5011_s30 }
 0x16e   :  { %v6372_v29 = vpop.permute.xlu1 %670  ;;  %v6374_v5 = vpop.permute.xlu0 %668 }
 0x16f   :  { %9350 = vst [vmem:[#allocation10_spill] sm:$0xff] %v6372_v29  ;;  %9351 = vst [vmem:[#allocation11_spill] sm:$0xff] %v6374_v5  ;;  %v9360_v5 = vld [vmem:[#allocation20_spill] sm:$0xff] }
 0x170   :  { %848 = vrot.lane.b32.xlu1 %v9352_v52, %s5011_s30  ;;  %846 = vrot.lane.b32.xlu0 %v9353_v30, %s5011_s30  ;;  %v9443_v52 = vld [vmem:[#allocation68_spill] sm:$0xff] }
 0x172   :  { %v6380_v31 = vpop.permute.xlu1 %674  ;;  %v6382_v28 = vpop.permute.xlu0 %672 }
 0x173   :  { %9354 = vst [vmem:[#allocation12_spill] sm:$0xff] %v6380_v31  ;;  %9355 = vst [vmem:[#allocation13_spill] sm:$0xff] %v6382_v28  ;;  %v9364_v28 = vld [vmem:[#allocation22_spill] sm:$0xff] }
 0x174   :  { %852 = vrot.lane.b32.xlu1 %v9356_v24, %s5011_s30  ;;  %850 = vrot.lane.b32.xlu0 %v9357_v57, %s5011_s30 }
 0x176   :  { %v6388_v25 = vpop.permute.xlu1 %678  ;;  %v6390_v29 = vpop.permute.xlu0 %676 }
 0x177   :  { %9358 = vst [vmem:[#allocation14_spill] sm:$0xff] %v6388_v25  ;;  %9359 = vst [vmem:[#allocation15_spill] sm:$0xff] %v6390_v29  ;;  %v9368_v29 = vld [vmem:[#allocation24_spill] sm:$0xff] }
 0x178   :  { %856 = vrot.lane.b32.xlu1 %v9360_v5, %s5011_s30  ;;  %854 = vrot.lane.b32.xlu0 %v9361_v3, %s5011_s30 }
 0x17a   :  { %v6396_v58 = vpop.permute.xlu1 %682  ;;  %v6398_v31 = vpop.permute.xlu0 %680 }
 0x17b   :  { %9362 = vst [vmem:[#allocation211_spill] sm:$0xff] %v6396_v58  ;;  %9363 = vst [vmem:[#allocation212_spill] sm:$0xff] %v6398_v31  ;;  %v812_v58 = vrot.slane %v6184_v59, 1  ;;  %v6414_v31 = vrot.slane %v6179_v55, 1 }
 0x17c   :  { %860 = vrot.lane.b32.xlu1 %v9364_v28, %s5011_s30  ;;  %858 = vrot.lane.b32.xlu0 %v9365_v47, %s5011_s30 }
 0x17d   :  { %9370 = vst [vmem:[#allocation215_spill] sm:$0xff] %v6414_v31 }
 0x17e   :  { %v6404_v19 = vpop.permute.xlu1 %686  ;;  %v6406_v25 = vpop.permute.xlu0 %684 }
 0x17f   :  { %9366 = vst [vmem:[#allocation213_spill] sm:$0xff] %v6404_v19  ;;  %9367 = vst [vmem:[#allocation214_spill] sm:$0xff] %v6406_v25  ;;  %v9374_v19 = vld [vmem:[#allocation28_spill] sm:$0xff]  ;;  %v6426_v25 = vsel %vm134_vm0, %v812_v58, %v6414_v31  ;;  %v9381_v58 = vld [vmem:[#allocation30_spill] sm:$0xff] }
 0x180   :  { %864 = vrot.lane.b32.xlu1 %v9368_v29, %s5011_s30  ;;  %862 = vrot.lane.b32.xlu0 %v9369_v62, %s5011_s30  ;;  %9375 = vst [vmem:[#allocation218_spill] sm:$0xff] %v6426_v25 }
 0x182   :  { %v6416_v35 = vpop.permute.xlu1 %690  ;;  %v6418_v28 = vpop.permute.xlu0 %688 }
 0x183   :  { %9371 = vst [vmem:[#allocation216_spill] sm:$0xff] %v6416_v35  ;;  %9372 = vst [vmem:[#allocation217_spill] sm:$0xff] %v6418_v28 }
 0x184   :  { %868 = vrot.lane.b32.xlu1 %v9373_v20, %s5011_s30  ;;  %866 = vrot.lane.b32.xlu0 %v9374_v19, %s5011_s30  ;;  %v9380_v20 = vld [vmem:[#allocation29_spill] sm:$0xff] }
 0x186   :  { %v6428_v29 = vpop.permute.xlu1 %694  ;;  %v6430_v62 = vpop.permute.xlu0 %692 }
 0x187   :  { %9376 = vst [vmem:[#allocation219_spill] sm:$0xff] %v6428_v29  ;;  %9377 = vst [vmem:[#allocation220_spill] sm:$0xff] %v6430_v62  ;;  %v9382_v62 = vld [vmem:[#allocation31_spill] sm:$0xff] }
 0x188   :  { %872 = vrot.lane.b32.xlu1 %v6414_v31, %s5011_s30  ;;  %870 = vrot.lane.b32.xlu0 %v6426_v25, %s5011_s30  ;;  %v9383_v31 = vld [vmem:[#allocation32_spill] sm:$0xff] }
 0x18a   :  { %v6436_v35 = vpop.permute.xlu1 %698  ;;  %v6438_v28 = vpop.permute.xlu0 %696 }
 0x18b   :  { %9378 = vst [vmem:[#allocation221_spill] sm:$0xff] %v6436_v35  ;;  %9379 = vst [vmem:[#allocation222_spill] sm:$0xff] %v6438_v28  ;;  %v9386_v28 = vld [vmem:[#allocation33_spill] sm:$0xff] }
 0x18c   :  { %876 = vrot.lane.b32.xlu1 %v9380_v20, %s5011_s30  ;;  %874 = vrot.lane.b32.xlu0 %v9381_v58, %s5011_s30  ;;  %v9387_v20 = vld [vmem:[#allocation34_spill] sm:$0xff] }
 0x18e   :  { %v6444_v19 = vpop.permute.xlu1 %702  ;;  %v6446_v29 = vpop.permute.xlu0 %700 }
 0x190   :  { %880 = vrot.lane.b32.xlu1 %v9382_v62, %s5011_s30  ;;  %878 = vrot.lane.b32.xlu0 %v9383_v31, %s5011_s30 }
 0x192   :  { %v6452_v25 = vpop.permute.xlu1 %706  ;;  %v6454_v35 = vpop.permute.xlu0 %704 }
 0x193   :  { %9384 = vst [vmem:[#allocation29_spill] sm:$0xff] %v6452_v25  ;;  %9385 = vst [vmem:[#allocation30_spill] sm:$0xff] %v6454_v35 }
 0x194   :  { %884 = vrot.lane.b32.xlu1 %v9386_v28, %s5011_s30  ;;  %882 = vrot.lane.b32.xlu0 %v9387_v20, %s5011_s30 }
 0x196   :  { %v6460_v58 = vpop.permute.xlu1 %710  ;;  %v6462_v47 = vpop.permute.xlu0 %708 }
 0x197   :  { %9388 = vst [vmem:[#allocation31_spill] sm:$0xff] %v6460_v58  ;;  %9389 = vst [vmem:[#allocation32_spill] sm:$0xff] %v6462_v47 }
 0x198   :  { %888 = vrot.lane.b32.xlu1 %v9390_v40, %s5011_s30  ;;  %886 = vrot.lane.b32.xlu0 %v9391_v14, %s5011_s30 }
 0x19a   :  { %v6468_v5 = vpop.permute.xlu1 %714  ;;  %v6470_v33 = vpop.permute.xlu0 %712 }
 0x19b   :  { %9392 = vst [vmem:[#allocation33_spill] sm:$0xff] %v6468_v5  ;;  %9393 = vst [vmem:[#allocation34_spill] sm:$0xff] %v6470_v33  ;;  %v9402_v33 = vld [vmem:[#allocation41_spill] sm:$0xff] }
 0x19c   :  { %892 = vrot.lane.b32.xlu1 %v9394_v9, %s5011_s30  ;;  %890 = vrot.lane.b32.xlu0 %v9395_v34, %s5011_s30 }
 0x19e   :  { %v6476_v3 = vpop.permute.xlu1 %718  ;;  %v6478_v15 = vpop.permute.xlu0 %716 }
 0x19f   :  { %9396 = vst [vmem:[#allocation35_spill] sm:$0xff] %v6476_v3  ;;  %9397 = vst [vmem:[#allocation36_spill] sm:$0xff] %v6478_v15  ;;  %v9406_v15 = vld [vmem:[#allocation43_spill] sm:$0xff] }
 0x1a0   :  { %896 = vrot.lane.b32.xlu1 %v9398_v13, %s5011_s30  ;;  %894 = vrot.lane.b32.xlu0 %v9399_v45, %s5011_s30 }
 0x1a2   :  { %v6484_v24 = vpop.permute.xlu1 %722  ;;  %v6486_v5 = vpop.permute.xlu0 %720 }
 0x1a3   :  { %9400 = vst [vmem:[#allocation37_spill] sm:$0xff] %v6484_v24  ;;  %9401 = vst [vmem:[#allocation38_spill] sm:$0xff] %v6486_v5  ;;  %v9410_v5 = vld [vmem:[#allocation45_spill] sm:$0xff] }
 0x1a4   :  { %900 = vrot.lane.b32.xlu1 %v9402_v33, %s5011_s30  ;;  %898 = vrot.lane.b32.xlu0 %v9403_v7, %s5011_s30  ;;  %v9450_v33 = vld [vmem:[#allocation73_spill] sm:$0xff] }
 0x1a6   :  { %v6492_v58 = vpop.permute.xlu1 %726  ;;  %v6494_v3 = vpop.permute.xlu0 %724 }
 0x1a7   :  { %9404 = vst [vmem:[#allocation39_spill] sm:$0xff] %v6492_v58  ;;  %9405 = vst [vmem:[#allocation40_spill] sm:$0xff] %v6494_v3  ;;  %v9414_v3 = vld [vmem:[#allocation47_spill] sm:$0xff] }
 0x1a8   :  { %904 = vrot.lane.b32.xlu1 %v9406_v15, %s5011_s30  ;;  %902 = vrot.lane.b32.xlu0 %v9407_v43, %s5011_s30  ;;  %v9415_v15 = vld [vmem:[#allocation48_spill] sm:$0xff]  ;;  %v9446_v43 = vld [vmem:[#allocation69_spill] sm:$0xff] }
 0x1aa   :  { %v6500_v57 = vpop.permute.xlu1 %730  ;;  %v6502_v24 = vpop.permute.xlu0 %728 }
 0x1ab   :  { %9408 = vst [vmem:[#allocation42_spill] sm:$0xff] %v6500_v57  ;;  %9409 = vst [vmem:[#allocation223_spill] sm:$0xff] %v6502_v24  ;;  %v9418_v24 = vld [vmem:[#allocation49_spill] sm:$0xff] }
 0x1ac   :  { %908 = vrot.lane.b32.xlu1 %v9410_v5, %s5011_s30  ;;  %906 = vrot.lane.b32.xlu0 %v9411_v53, %s5011_s30  ;;  %v9419_v5 = vld [vmem:[#allocation50_spill] sm:$0xff] }
 0x1ae   :  { %v6508_v8 = vpop.permute.xlu1 %734  ;;  %v6510_v58 = vpop.permute.xlu0 %732 }
 0x1af   :  { %9412 = vst [vmem:[#allocation224_spill] sm:$0xff] %v6508_v8  ;;  %9413 = vst [vmem:[#allocation225_spill] sm:$0xff] %v6510_v58  ;;  %v9422_v58 = vld [vmem:[#allocation51_spill] sm:$0xff] }
 0x1b0   :  { %912 = vrot.lane.b32.xlu1 %v9414_v3, %s5011_s30  ;;  %910 = vrot.lane.b32.xlu0 %v9415_v15, %s5011_s30  ;;  %v9423_v3 = vld [vmem:[#allocation52_spill] sm:$0xff] }
 0x1b2   :  { %v6516_v47 = vpop.permute.xlu1 %738  ;;  %v6518_v57 = vpop.permute.xlu0 %736 }
 0x1b3   :  { %9416 = vst [vmem:[#allocation226_spill] sm:$0xff] %v6516_v47  ;;  %9417 = vst [vmem:[#allocation227_spill] sm:$0xff] %v6518_v57  ;;  %v815_v47 = vrot.slane %v6306_v17, 1  ;;  %v6534_v57 = vrot.slane %v6301_v22, 1 }
 0x1b4   :  { %916 = vrot.lane.b32.xlu1 %v9418_v24, %s5011_s30  ;;  %914 = vrot.lane.b32.xlu0 %v9419_v5, %s5011_s30  ;;  %v9427_v5 = vld [vmem:[#allocation53_spill] sm:$0xff] }
 0x1b5   :  { %9424 = vst [vmem:[#allocation230_spill] sm:$0xff] %v6534_v57 }
 0x1b6   :  { %v6524_v53 = vpop.permute.xlu1 %742  ;;  %v6526_v8 = vpop.permute.xlu0 %740 }
 0x1b7   :  { %9420 = vst [vmem:[#allocation228_spill] sm:$0xff] %v6524_v53  ;;  %9421 = vst [vmem:[#allocation229_spill] sm:$0xff] %v6526_v8  ;;  %v9428_v53 = vld [vmem:[#allocation54_spill] sm:$0xff]  ;;  %v6546_v8 = vsel %vm134_vm0, %v815_v47, %v6534_v57  ;;  %v9435_v47 = vld [vmem:[#allocation56_spill] sm:$0xff] }
 0x1b8   :  { %920 = vrot.lane.b32.xlu1 %v9422_v58, %s5011_s30  ;;  %918 = vrot.lane.b32.xlu0 %v9423_v3, %s5011_s30  ;;  %9429 = vst [vmem:[#allocation233_spill] sm:$0xff] %v6546_v8  ;;  %v9442_v3 = vld [vmem:[#allocation65_spill] sm:$0xff] }
 0x1ba   :  { %v6536_v15 = vpop.permute.xlu1 %746  ;;  %v6538_v24 = vpop.permute.xlu0 %744 }
 0x1bb   :  { %9425 = vst [vmem:[#allocation231_spill] sm:$0xff] %v6536_v15  ;;  %9426 = vst [vmem:[#allocation232_spill] sm:$0xff] %v6538_v24  ;;  %v9434_v24 = vld [vmem:[#allocation55_spill] sm:$0xff] }
 0x1bc   :  { %924 = vrot.lane.b32.xlu1 %v9427_v5, %s5011_s30  ;;  %922 = vrot.lane.b32.xlu0 %v9428_v53, %s5011_s30  ;;  %v9438_v5 = vld [vmem:[#allocation61_spill] sm:$0xff] }
 0x1be   :  { %v6548_v58 = vpop.permute.xlu1 %750  ;;  %v6550_v17 = vpop.permute.xlu0 %748 }
 0x1bf   :  { %9430 = vst [vmem:[#allocation234_spill] sm:$0xff] %v6548_v58  ;;  %9431 = vst [vmem:[#allocation235_spill] sm:$0xff] %v6550_v17 }
 0x1c0   :  { %928 = vrot.lane.b32.xlu1 %v6534_v57, %s5011_s30  ;;  %926 = vrot.lane.b32.xlu0 %v6546_v8, %s5011_s30  ;;  %v9436_v57 = vld [vmem:[#allocation57_spill] sm:$0xff]  ;;  %v9437_v8 = vld [vmem:[#allocation60_spill] sm:$0xff] }
 0x1c2   :  { %v6556_v22 = vpop.permute.xlu1 %754  ;;  %v6558_v15 = vpop.permute.xlu0 %752 }
 0x1c3   :  { %9432 = vst [vmem:[#allocation236_spill] sm:$0xff] %v6556_v22  ;;  %9433 = vst [vmem:[#allocation237_spill] sm:$0xff] %v6558_v15 }
 0x1c4   :  { %994 = vrot.lane.b32.xlu1 %v9434_v24, %s5012_s4  ;;  %992 = vrot.lane.b32.xlu0 %v9435_v47, %s5012_s4  ;;  %v9439_v24 = vld [vmem:[#allocation64_spill] sm:$0xff] }
 0x1c6   :  { %v6564_v58 = vpop.permute.xlu1 %820  ;;  %v6566_v17 = vpop.permute.xlu0 %818 }
 0x1c8   :  { %998 = vrot.lane.b32.xlu1 %v9436_v57, %s5012_s4  ;;  %996 = vrot.lane.b32.xlu0 %v9437_v8, %s5012_s4 }
 0x1ca   :  { %v6572_v22 = vpop.permute.xlu1 %824  ;;  %v6574_v15 = vpop.permute.xlu0 %822 }
 0x1cc   :  { %1002 = vrot.lane.b32.xlu1 %v9438_v5, %s5012_s4  ;;  %1000 = vrot.lane.b32.xlu0 %v9439_v24, %s5012_s4 }
 0x1ce   :  { %v6580_v47 = vpop.permute.xlu1 %828  ;;  %v6582_v53 = vpop.permute.xlu0 %826 }
 0x1cf   :  { %9440 = vst [vmem:[#allocation55_spill] sm:$0xff] %v6580_v47  ;;  %9441 = vst [vmem:[#allocation56_spill] sm:$0xff] %v6582_v53 }
 0x1d0   :  { %1006 = vrot.lane.b32.xlu1 %v9442_v3, %s5012_s4  ;;  %1004 = vrot.lane.b32.xlu0 %v9443_v52, %s5012_s4 }
 0x1d2   :  { %v6588_v27 = vpop.permute.xlu1 %832  ;;  %v6590_v48 = vpop.permute.xlu0 %830 }
 0x1d3   :  { %9444 = vst [vmem:[#allocation57_spill] sm:$0xff] %v6588_v27  ;;  %9445 = vst [vmem:[#allocation60_spill] sm:$0xff] %v6590_v48  ;;  %v9454_v48 = vld [vmem:[#allocation77_spill] sm:$0xff] }
 0x1d4   :  { %1010 = vrot.lane.b32.xlu1 %v9446_v43, %s5012_s4  ;;  %1008 = vrot.lane.b32.xlu0 %v9447_v0, %s5012_s4 }
 0x1d6   :  { %v6596_v25 = vpop.permute.xlu1 %836  ;;  %v6598_v47 = vpop.permute.xlu0 %834 }
 0x1d7   :  { %9448 = vst [vmem:[#allocation61_spill] sm:$0xff] %v6596_v25  ;;  %9449 = vst [vmem:[#allocation64_spill] sm:$0xff] %v6598_v47  ;;  %v9458_v47 = vld [vmem:[#allocation81_spill] sm:$0xff] }
 0x1d8   :  { %1014 = vrot.lane.b32.xlu1 %v9450_v33, %s5012_s4  ;;  %1012 = vrot.lane.b32.xlu0 %v9451_v26, %s5012_s4 }
 0x1da   :  { %v6604_v53 = vpop.permute.xlu1 %840  ;;  %v6606_v27 = vpop.permute.xlu0 %838 }
 0x1db   :  { %9452 = vst [vmem:[#allocation65_spill] sm:$0xff] %v6604_v53  ;;  %9453 = vst [vmem:[#allocation68_spill] sm:$0xff] %v6606_v27  ;;  %v9462_v27 = vld [vmem:[#allocation85_spill] sm:$0xff] }
 0x1dc   :  { %1018 = vrot.lane.b32.xlu1 %v9454_v48, %s5012_s4  ;;  %1016 = vrot.lane.b32.xlu0 %v9455_v44, %s5012_s4 }
 0x1de   :  { %v6612_v30 = vpop.permute.xlu1 %844  ;;  %v6614_v25 = vpop.permute.xlu0 %842 }
 0x1df   :  { %9456 = vst [vmem:[#allocation69_spill] sm:$0xff] %v6612_v30  ;;  %9457 = vst [vmem:[#allocation72_spill] sm:$0xff] %v6614_v25  ;;  %v9466_v25 = vld [vmem:[#allocation89_spill] sm:$0xff] }
 0x1e0   :  { %1022 = vrot.lane.b32.xlu1 %v9458_v47, %s5012_s4  ;;  %1020 = vrot.lane.b32.xlu0 %v9459_v2, %s5012_s4  ;;  %v9467_v47 = vld [vmem:[#allocation92_spill] sm:$0xff] }
 0x1e2   :  { %v6620_v35 = vpop.permute.xlu1 %848  ;;  %v6622_v53 = vpop.permute.xlu0 %846 }
 0x1e3   :  { %9460 = vst [vmem:[#allocation73_spill] sm:$0xff] %v6620_v35  ;;  %9461 = vst [vmem:[#allocation76_spill] sm:$0xff] %v6622_v53  ;;  %v9470_v53 = vld [vmem:[#allocation93_spill] sm:$0xff] }
 0x1e4   :  { %1026 = vrot.lane.b32.xlu1 %v9462_v27, %s5012_s4  ;;  %1024 = vrot.lane.b32.xlu0 %v9463_v4, %s5012_s4  ;;  %v9471_v27 = vld [vmem:[#allocation96_spill] sm:$0xff] }
 0x1e6   :  { %v6628_v48 = vpop.permute.xlu1 %852  ;;  %v6630_v30 = vpop.permute.xlu0 %850 }
 0x1e7   :  { %9464 = vst [vmem:[#allocation80_spill] sm:$0xff] %v6628_v48  ;;  %9465 = vst [vmem:[#allocation238_spill] sm:$0xff] %v6630_v30 }
 0x1e8   :  { %1030 = vrot.lane.b32.xlu1 %v9466_v25, %s5012_s4  ;;  %1028 = vrot.lane.b32.xlu0 %v9467_v47, %s5012_s4  ;;  %v6759_v25 = vld [vmem:[%s8905_s0 + $0x128] sm:$0xff] }
 0x1ea   :  { %v6636_v2 = vpop.permute.xlu1 %856  ;;  %v6638_v35 = vpop.permute.xlu0 %854 }
 0x1eb   :  { %9468 = vst [vmem:[#allocation239_spill] sm:$0xff] %v6636_v2  ;;  %9469 = vst [vmem:[#allocation240_spill] sm:$0xff] %v6638_v35  ;;  %v986_v2 = vrot.slane %v6184_v59, 2  ;;  %v6654_v35 = vrot.slane %v6179_v55, 2  ;;  %v3116_v55 = vld [vmem:[%s8906_s1] sm:$0xff] }
 0x1ec   :  { %1034 = vrot.lane.b32.xlu1 %v9470_v53, %s5012_s4  ;;  %1032 = vrot.lane.b32.xlu0 %v9471_v27, %s5012_s4  ;;  %v9477_v27 = vld [vmem:[#allocation101_spill] sm:$0xff] }
 0x1ed   :  { %9474 = vst [vmem:[#allocation243_spill] sm:$0xff] %v6654_v35 }
 0x1ee   :  { %v6644_v4 = vpop.permute.xlu1 %860  ;;  %v6646_v48 = vpop.permute.xlu0 %858 }
 0x1ef   :  { %9472 = vst [vmem:[#allocation241_spill] sm:$0xff] %v6644_v4  ;;  %9473 = vst [vmem:[#allocation242_spill] sm:$0xff] %v6646_v48  ;;  %v9478_v4 = vld [vmem:[#allocation104_spill] sm:$0xff]  ;;  %v6666_v48 = vsel %vm387_vm1, %v986_v2, %v6654_v35 }
 0x1f0   :  { %1038 = vrot.lane.b32.xlu1 %v5816_v6, %s5012_s4  ;;  %1036 = vrot.lane.b32.xlu0 %v5829_v36, %s5012_s4  ;;  %9479 = vst [vmem:[#allocation246_spill] sm:$0xff] %v6666_v48 }
 0x1f2   :  { %v6656_v30 = vpop.permute.xlu1 %864  ;;  %v6658_v53 = vpop.permute.xlu0 %862 }
 0x1f3   :  { %9475 = vst [vmem:[#allocation244_spill] sm:$0xff] %v6656_v30  ;;  %9476 = vst [vmem:[#allocation245_spill] sm:$0xff] %v6658_v53  ;;  %v3117_v30 = vld [vmem:[%s8906_s1 + $0x8] sm:$0xff] }
 0x1f4   :  { %1042 = vrot.lane.b32.xlu1 %v9477_v27, %s5012_s4  ;;  %1040 = vrot.lane.b32.xlu0 %v9478_v4, %s5012_s4 }
 0x1f6   :  { %v6668_v6 = vpop.permute.xlu1 %868  ;;  %v6670_v59 = vpop.permute.xlu0 %866 }
 0x1f7   :  { %9480 = vst [vmem:[#allocation247_spill] sm:$0xff] %v6668_v6  ;;  %9481 = vst [vmem:[#allocation248_spill] sm:$0xff] %v6670_v59  ;;  %v4886_v6 = vpack.c.bf16 %v3117_v30, %v3116_v55  ;;  %v5013_v59 = vmov 0.0|0.0  }
 0x1f8   :  { %1046 = vrot.lane.b32.xlu1 %v6654_v35, %s5012_s4  ;;  %1044 = vrot.lane.b32.xlu0 %v6666_v48, %s5012_s4  ;;  %v9484_v35 = vld [vmem:[#allocation109_spill] sm:$0xff]  ;;  %v3118_v48 = vld [vmem:[%s8906_s1 + $0x10] sm:$0xff] }
 0x1f9   :  { %4885 = vmatprep.subr.bf16.mxu0 %v5013_v59  ;;  %4891 = vmatprep.subr.bf16.mxu1 %v5013_v59 }
 0x1fa   :  { %v6682_v2 = vpop.permute.xlu1 %872  ;;  %v6684_v53 = vpop.permute.xlu0 %870  ;;  %4887 = vmatpush3.bf16.msra.mxu0 %v4886_v6  ;;  %4894 = vmatpush3.bf16.msra.mxu1 %v4886_v6 }
 0x1fb   :  { %9482 = vst [vmem:[#allocation249_spill] sm:$0xff] %v6682_v2  ;;  %9483 = vst [vmem:[#allocation250_spill] sm:$0xff] %v6684_v53  ;;  %v3119_v2 = vld [vmem:[%s8906_s1 + $0x18] sm:$0xff]  ;;  %4888 = vmatprep.subr.bf16.mxu0 %v5013_v59  ;;  %4892 = vmatprep.subr.bf16.mxu1 %v5013_v59  ;;  %v3120_v59 = vld [vmem:[%s8906_s1 + $0x20] sm:$0xf] }
 0x1fc   :  { %1050 = vrot.lane.b32.xlu1 %v5859_v16, %s5012_s4  ;;  %1048 = vrot.lane.b32.xlu0 %v9484_v35, %s5012_s4  ;;  %v4889_v53 = vpack.c.bf16 %v3119_v2, %v3118_v48  ;;  %v6703_v16 = vld [vmem:[%s8905_s0 + $0x20] sm:$0xff]  ;;  %v9485_v35 = vld [vmem:[#allocation113_spill] sm:$0xff]  ;;  %v9112_v48 = vmov 0.0  }
 0x1fd   :  { %4738 = vmatprep.mubr.msk.f32.mxu0 %vm5018_vm3, %v9112_v48  ;;  %4813 = vmatprep.mubr.msk.f32.mxu1 %vm5018_vm3, %v9112_v48 }
 0x1fe   :  { %v6696_v30 = vpop.permute.xlu1 %876  ;;  %v6698_v55 = vpop.permute.xlu0 %874  ;;  %4890 = vmatpush3.bf16.msra.mxu0 %v4889_v53  ;;  %4895 = vmatpush3.bf16.msra.mxu1 %v4889_v53 }
 0x1ff   :  { %4736 = vmatprep.subr.mxu0 %v9112_v48  ;;  %4893 = vmatprep.subr.mxu1 %v9112_v48 }
 0x200   :  { %1164 = vrot.lane.b32.xlu1 %v6703_v16, %s5014_s15  ;;  %1052 = vrot.lane.b32.xlu0 %v9485_v35, %s5012_s4 }
 0x202   :  { %v6709_v6 = vpop.permute.xlu1 %880  ;;  %v6711_v27 = vpop.permute.xlu0 %878  ;;  %4737 = vmatpush3.msk.msra.mxu0 %vm4060_vm2, %v3120_v59  ;;  %4896 = vmatpush3.msk.msra.mxu1 %vm4060_vm2, %v3120_v59 }
 0x204   :  { %1512 = vrot.lane.b32.xlu1 %v9437_v8, %s5016_s18  ;;  %1338 = vrot.lane.b32.xlu0 %v9331_v32, %s5017_s19  ;;  %v6733_v8 = vld [vmem:[%s8905_s0 + $0x120] sm:$0xff]  ;;  %v6740_v32 = vld [vmem:[%s8905_s0 + $0x28] sm:$0xff] }
 0x206   :  { %v6724_v53 = vpop.permute.xlu1 %884  ;;  %v6726_v2 = vpop.permute.xlu0 %882 }
 0x208   :  { %1220 = vrot.lane.b32.xlu1 %v6733_v8, %s5014_s15  ;;  %1166 = vrot.lane.b32.xlu0 %v6740_v32, %s5014_s15 }
 0x20a   :  { %v6744_v59 = vpop.permute.xlu1 %888  ;;  %v6746_v4 = vpop.permute.xlu0 %886 }
 0x20b   :  { %9486 = vst [vmem:[#allocation109_spill] sm:$0xff] %v6744_v59  ;;  %v6766_v59 = vld [vmem:[%s8905_s0 + $0x30] sm:$0xff] }
 0x20c   :  { %1394 = vrot.lane.b32.xlu1 %v9383_v31, %s5017_s19  ;;  %1340 = vrot.lane.b32.xlu0 %v9330_v61, %s5017_s19 }
 0x20e   :  { %v6752_v48 = vpop.permute.xlu1 %892  ;;  %v6754_v36 = vpop.permute.xlu0 %890 }
 0x20f   :  { %9487 = vst [vmem:[#allocation113_spill] sm:$0xff] %v6752_v48  ;;  %9488 = vst [vmem:[#allocation251_spill] sm:$0xff] %v6754_v36 }
 0x210   :  { %1222 = vrot.lane.b32.xlu1 %v6759_v25, %s5014_s15  ;;  %1168 = vrot.lane.b32.xlu0 %v6766_v59, %s5014_s15 }
 0x212   :  { %v6770_v31 = vpop.permute.xlu1 %896  ;;  %v6772_v61 = vpop.permute.xlu0 %894 }
 0x213   :  { %9489 = vst [vmem:[#allocation252_spill] sm:$0xff] %v6770_v31  ;;  %9490 = vst [vmem:[#allocation253_spill] sm:$0xff] %v6772_v61  ;;  %v9495_v61 = vld [vmem:[#allocation110_spill] sm:$0xff] }
 0x214   :  { %1568 = vrot.lane.b32.xlu1 %v9485_v35, %s5016_s18  ;;  %1514 = vrot.lane.b32.xlu0 %v9436_v57, %s5016_s18 }
 0x216   :  { %v6778_v48 = vpop.permute.xlu1 %900  ;;  %v6780_v36 = vpop.permute.xlu0 %898 }
 0x217   :  { %9491 = vst [vmem:[#allocation254_spill] sm:$0xff] %v6778_v48  ;;  %9492 = vst [vmem:[#allocation255_spill] sm:$0xff] %v6780_v36  ;;  %v9512_v48 = vld [vmem:[#allocation121_spill] sm:$0xff] }
 0x218   :  { %1396 = vrot.lane.b32.xlu1 %v9382_v62, %s5017_s19  ;;  %1342 = vrot.lane.b32.xlu0 %v9333_v54, %s5017_s19  ;;  %v6801_v62 = vld [vmem:[%s8905_s0 + $0x130] sm:$0xff]  ;;  %v6808_v54 = vld [vmem:[%s8905_s0 + $0x38] sm:$0xff] }
 0x21a   :  { %v6786_v47 = vpop.permute.xlu1 %904  ;;  %v6788_v31 = vpop.permute.xlu0 %902 }
 0x21b   :  { %9493 = vst [vmem:[#allocation256_spill] sm:$0xff] %v6786_v47  ;;  %9494 = vst [vmem:[#allocation257_spill] sm:$0xff] %v6788_v31  ;;  %v6829_v31 = vld [vmem:[%s8905_s0 + $0x40] sm:$0xff] }
 0x21c   :  { %1570 = vrot.lane.b32.xlu1 %v9495_v61, %s5016_s18  ;;  %1516 = vrot.lane.b32.xlu0 %v9439_v24, %s5016_s18 }
 0x21e   :  { %v6794_v57 = vpop.permute.xlu1 %908  ;;  %v6796_v35 = vpop.permute.xlu0 %906 }
 0x21f   :  { %9496 = vst [vmem:[#allocation110_spill] sm:$0xff] %v6794_v57  ;;  %9497 = vst [vmem:[#allocation258_spill] sm:$0xff] %v6796_v35 }
 0x220   :  { %1224 = vrot.lane.b32.xlu1 %v6801_v62, %s5014_s15  ;;  %1170 = vrot.lane.b32.xlu0 %v6808_v54, %s5014_s15 }
 0x222   :  { %v6812_v24 = vpop.permute.xlu1 %912  ;;  %v6814_v57 = vpop.permute.xlu0 %910 }
 0x223   :  { %9498 = vst [vmem:[#allocation259_spill] sm:$0xff] %v6812_v24  ;;  %9499 = vst [vmem:[#allocation260_spill] sm:$0xff] %v6814_v57 }
 0x224   :  { %1398 = vrot.lane.b32.xlu1 %v9387_v20, %s5017_s19  ;;  %1344 = vrot.lane.b32.xlu0 %v9332_v50, %s5017_s19  ;;  %v9504_v50 = vld [vmem:[#allocation117_spill] sm:$0xff] }
 0x226   :  { %v6820_v35 = vpop.permute.xlu1 %916  ;;  %v6822_v47 = vpop.permute.xlu0 %914 }
 0x227   :  { %9500 = vst [vmem:[#allocation261_spill] sm:$0xff] %v6820_v35  ;;  %9501 = vst [vmem:[#allocation262_spill] sm:$0xff] %v6822_v47  ;;  %v6848_v47 = vld [vmem:[%s8905_s0 + $0x138] sm:$0xff] }
 0x228   :  { %1518 = vrot.lane.b32.xlu1 %v9438_v5, %s5016_s18  ;;  %1172 = vrot.lane.b32.xlu0 %v6829_v31, %s5014_s15  ;;  %9507 = vst [vmem:[#allocation266_spill] sm:$0xff] %v6848_v47 }
 0x22a   :  { %v6833_v24 = vpop.permute.xlu1 %920  ;;  %v6835_v20 = vpop.permute.xlu0 %918 }
 0x22b   :  { %9502 = vst [vmem:[#allocation263_spill] sm:$0xff] %v6833_v24  ;;  %9503 = vst [vmem:[#allocation264_spill] sm:$0xff] %v6835_v20  ;;  %v4918_v20 = vld [vmem:[%s8905_s0 + $0x48] sm:$0xff] }
 0x22c   :  { %1054 = vrot.lane.b32.xlu1 %v9495_v61, %s5012_s4  ;;  %1572 = vrot.lane.b32.xlu0 %v9504_v50, %s5016_s18 }
 0x22e   :  { %v6841_v35 = vpop.permute.xlu1 %924  ;;  %v6843_v5 = vpop.permute.xlu0 %922 }
 0x22f   :  { %9505 = vst [vmem:[#allocation117_spill] sm:$0xff] %v6841_v35  ;;  %9506 = vst [vmem:[#allocation265_spill] sm:$0xff] %v6843_v5 }
 0x230   :  { %1226 = vrot.lane.b32.xlu1 %v6848_v47, %s5014_s15  ;;  %1346 = vrot.lane.b32.xlu0 %v9337_v37, %s5017_s19 }
 0x232   :  { %v6854_v24 = vpop.permute.xlu1 %928  ;;  %v6856_v61 = vpop.permute.xlu0 %926 }
 0x233   :  { %9508 = vst [vmem:[#allocation267_spill] sm:$0xff] %v6854_v24  ;;  %9509 = vst [vmem:[#allocation268_spill] sm:$0xff] %v6856_v61 }
 0x234   :  { %1056 = vrot.lane.b32.xlu1 %v9504_v50, %s5012_s4  ;;  %1520 = vrot.lane.b32.xlu0 %v9443_v52, %s5016_s18  ;;  %v9510_v50 = vld [vmem:[#allocation114_spill] sm:$0xff] }
 0x235   :  { %v6881_v52 = vld [vmem:[%s8905_s0 + $0x140] sm:$0xff] }
 0x236   :  { %v6862_v35 = vpop.permute.xlu1 %994  ;;  %v6864_v5 = vpop.permute.xlu0 %992  ;;  %9511 = vst [vmem:[#allocation114_spill] sm:$0xff] %v6881_v52 }
 0x238   :  { %1174 = vrot.lane.b32.xlu1 %v4918_v20, %s5014_s15  ;;  %1400 = vrot.lane.b32.xlu0 %v9386_v28, %s5017_s19 }
 0x23a   :  { %v6872_v37 = vpop.permute.xlu1 %998  ;;  %v6874_v24 = vpop.permute.xlu0 %996 }
 0x23c   :  { %1574 = vrot.lane.b32.xlu1 %v9510_v50, %s5016_s18  ;;  %1228 = vrot.lane.b32.xlu0 %v6881_v52, %s5014_s15 }
 0x23e   :  { %v6885_v61 = vpop.permute.xlu1 %1002  ;;  %v6887_v20 = vpop.permute.xlu0 %1000 }
 0x240   :  { %1402 = vrot.lane.b32.xlu1 %v9391_v14, %s5017_s19  ;;  %1348 = vrot.lane.b32.xlu0 %v9336_v11, %s5017_s19  ;;  %v4920_v14 = vld [vmem:[%s8905_s0 + $0x50] sm:$0xff] }
 0x242   :  { %v6893_v28 = vpop.permute.xlu1 %1006  ;;  %v6895_v57 = vpop.permute.xlu0 %1004 }
 0x244   :  { %1576 = vrot.lane.b32.xlu1 %v9512_v48, %s5016_s18  ;;  %1522 = vrot.lane.b32.xlu0 %v9442_v3, %s5016_s18  ;;  %v4921_v3 = vld [vmem:[%s8905_s0 + $0x148] sm:$0xff] }
 0x246   :  { %v6901_v36 = vpop.permute.xlu1 %1010  ;;  %v6903_v52 = vpop.permute.xlu0 %1008 }
 0x247   :  { %9513 = vst [vmem:[#allocation121_spill] sm:$0xff] %v6901_v36 }
 0x248   :  { %1058 = vrot.lane.b32.xlu1 %v9510_v50, %s5012_s4  ;;  %1176 = vrot.lane.b32.xlu0 %v4920_v14, %s5014_s15 }
 0x24a   :  { %v6911_v11 = vpop.permute.xlu1 %1014  ;;  %v6913_v47 = vpop.permute.xlu0 %1012 }
 0x24b   :  { %9514 = vst [vmem:[#allocation269_spill] sm:$0xff] %v6911_v11  ;;  %9515 = vst [vmem:[#allocation270_spill] sm:$0xff] %v6913_v47 }
 0x24c   :  { %1230 = vrot.lane.b32.xlu1 %v4921_v3, %s5014_s15  ;;  %1350 = vrot.lane.b32.xlu0 %v9341_v42, %s5017_s19  ;;  %v4922_v3 = vld [vmem:[%s8905_s0 + $0x58] sm:$0xff] }
 0x24e   :  { %v6921_v50 = vpop.permute.xlu1 %1018  ;;  %v6923_v36 = vpop.permute.xlu0 %1016 }
 0x24f   :  { %9516 = vst [vmem:[#allocation271_spill] sm:$0xff] %v6921_v50  ;;  %9517 = vst [vmem:[#allocation272_spill] sm:$0xff] %v6923_v36 }
 0x250   :  { %1060 = vrot.lane.b32.xlu1 %v9512_v48, %s5012_s4  ;;  %1524 = vrot.lane.b32.xlu0 %v9447_v0, %s5016_s18  ;;  %v9522_v48 = vld [vmem:[#allocation118_spill] sm:$0xff]  ;;  %v4923_v0 = vld [vmem:[%s8905_s0 + $0x150] sm:$0xff] }
 0x252   :  { %v6929_v14 = vpop.permute.xlu1 %1022  ;;  %v6931_v11 = vpop.permute.xlu0 %1020 }
 0x253   :  { %9518 = vst [vmem:[#allocation273_spill] sm:$0xff] %v6929_v14  ;;  %9519 = vst [vmem:[#allocation274_spill] sm:$0xff] %v6931_v11 }
 0x254   :  { %1178 = vrot.lane.b32.xlu1 %v4922_v3, %s5014_s15  ;;  %1404 = vrot.lane.b32.xlu0 %v9390_v40, %s5017_s19 }
 0x256   :  { %v6939_v42 = vpop.permute.xlu1 %1026  ;;  %v6941_v50 = vpop.permute.xlu0 %1024 }
 0x257   :  { %9520 = vst [vmem:[#allocation275_spill] sm:$0xff] %v6939_v42  ;;  %9521 = vst [vmem:[#allocation276_spill] sm:$0xff] %v6941_v50 }
 0x258   :  { %1578 = vrot.lane.b32.xlu1 %v9522_v48, %s5016_s18  ;;  %1232 = vrot.lane.b32.xlu0 %v4923_v0, %s5014_s15  ;;  %v4924_v0 = vld [vmem:[%s8905_s0 + $0x60] sm:$0xff] }
 0x25a   :  { %v6949_v14 = vpop.permute.xlu1 %1030  ;;  %v6951_v11 = vpop.permute.xlu0 %1028 }
 0x25b   :  { %9523 = vst [vmem:[#allocation118_spill] sm:$0xff] %v6949_v14  ;;  %9524 = vst [vmem:[#allocation277_spill] sm:$0xff] %v6951_v11 }
 0x25c   :  { %1406 = vrot.lane.b32.xlu1 %v9395_v34, %s5017_s19  ;;  %1352 = vrot.lane.b32.xlu0 %v9340_v39, %s5017_s19  ;;  %v9529_v34 = vld [vmem:[#allocation125_spill] sm:$0xff] }
 0x25e   :  { %v6957_v40 = vpop.permute.xlu1 %1034  ;;  %v6959_v3 = vpop.permute.xlu0 %1032 }
 0x25f   :  { %9525 = vst [vmem:[#allocation278_spill] sm:$0xff] %v6957_v40  ;;  %9526 = vst [vmem:[#allocation279_spill] sm:$0xff] %v6959_v3 }
 0x260   :  { %1526 = vrot.lane.b32.xlu1 %v9446_v43, %s5016_s18  ;;  %1180 = vrot.lane.b32.xlu0 %v4924_v0, %s5014_s15  ;;  %v4925_v43 = vld [vmem:[%s8905_s0 + $0x158] sm:$0xff] }
 0x262   :  { %v6967_v14 = vpop.permute.xlu1 %1038  ;;  %v6969_v11 = vpop.permute.xlu0 %1036 }
 0x263   :  { %9527 = vst [vmem:[#allocation280_spill] sm:$0xff] %v6967_v14  ;;  %9528 = vst [vmem:[#allocation281_spill] sm:$0xff] %v6969_v11 }
 0x264   :  { %1062 = vrot.lane.b32.xlu1 %v9522_v48, %s5012_s4  ;;  %1580 = vrot.lane.b32.xlu0 %v9529_v34, %s5016_s18  ;;  %v5019_v48 = vmov 1983009808  }
 0x266   :  { %v6975_v39 = vpop.permute.xlu1 %1042  ;;  %v6977_v40 = vpop.permute.xlu0 %1040 }
 0x267   :  { %9530 = vst [vmem:[#allocation125_spill] sm:$0xff] %v6975_v39  ;;  %9531 = vst [vmem:[#allocation282_spill] sm:$0xff] %v6977_v40  ;;  %v2194_v39 = vunpack.c.l.s4 %v5019_v48  ;;  %v2196_v40 = vlaneseq }
 0x268   :  { %1234 = vrot.lane.b32.xlu1 %v4925_v43, %s5014_s15  ;;  %1354 = vrot.lane.b32.xlu0 %v9345_v38, %s5017_s19  ;;  %v4926_v38 = vld [vmem:[%s8905_s0 + $0x160] sm:$0xff] }
 0x269   :  { %v2195_v48 = vunpack.c.0.s8 %v2194_v39  ;;  %v9535_v39 = vld [vmem:[#allocation122_spill] sm:$0xff] }
 0x26a   :  { %v6985_v0 = vpop.permute.xlu1 %1046  ;;  %v6987_v14 = vpop.permute.xlu0 %1044 }
 0x26b   :  { %9532 = vst [vmem:[#allocation283_spill] sm:$0xff] %v6985_v0  ;;  %9533 = vst [vmem:[#allocation284_spill] sm:$0xff] %v6987_v14  ;;  %v2197_v0 = vshrl.u32 %v2196_v40, 7 }
 0x26c   :  { %1064 = vrot.lane.b32.xlu1 %v9529_v34, %s5012_s4  ;;  %1528 = vrot.lane.b32.xlu0 %v9451_v26, %s5016_s18  ;;  %v4927_v26 = vld [vmem:[%s8905_s0] sm:$0xff]  ;;  %v9534_v34 = vld [vmem:[#allocation63_spill] sm:$0xff] }
 0x26d   :  { %v1681_v43 = vsel %vm1680_vm5, %v4927_v26, %v9534_v34  ;;  %v7022_v40 = vsub.s32 %v2195_v48, %v2197_v0 }
 0x26e   :  { %v6993_v11 = vpop.permute.xlu1 %1050  ;;  %v6995_v3 = vpop.permute.xlu0 %1048  ;;  %v1738_v14 = vsel %vm1737_vm4, %v1681_v43, %v6082_v1  ;;  %v4928_v43 = vld [vmem:[%s8905_s0 + $0x68] sm:$0xff] }
 0x270   :  { %1236 = vrot.lane.b32.xlu1 %v4926_v38, %s5014_s15  ;;  %1408 = vrot.lane.b32.xlu0 %v9394_v9, %s5017_s19  ;;  %v1795_v9 = vsel %vm1794_vm6, %v1738_v14, %v6326_v51 }
 0x271   :  { %v1852_v38 = vsel %vm1851_vm7, %v1795_v9, %v6566_v17 }
 0x272   :  { %v1165_v42 = vpop.permute.xlu1 %1164  ;;  %v7010_v50 = vpop.permute.xlu0 %1052  ;;  %v1909_v1 = vsel %vm1908_vm8, %v1852_v38, %v6864_v5 }
 0x273   :  { %v1966_v26 = vsel %vm1965_vm9, %v1909_v1, %v1165_v42 }
 0x274   :  { %1410 = vrot.lane.b32.xlu1 %v9399_v45, %s5017_s19  ;;  %1582 = vrot.lane.b32.xlu0 %v9535_v39, %s5016_s18  ;;  %v9536_v45 = vld [vmem:[#allocation129_spill] sm:$0xff] }
 0x276   :  { %v1513_v51 = vpop.permute.xlu1 %1512  ;;  %v1339_v14 = vpop.permute.xlu0 %1338 }
 0x277   :  { %v2023_v34 = vsel %vm2022_vm10, %v1966_v26, %v1339_v14 }
 0x278   :  { %v2080_v17 = vsel %vm2079_vm11, %v2023_v34, %v1513_v51  ;;  %1584 = vrot.lane.b32.xlu1 %v9536_v45, %s5016_s18  ;;  %1182 = vrot.lane.b32.xlu0 %v4928_v43, %s5014_s15  ;;  %v9537_v43 = vld [vmem:[#allocation59_spill] sm:$0xff] }
 0x279   :  { %v2192_v5 = vcombine.high %v2080_v17, %v2080_v17  ;;  %v2199_v0 = vrot.slane %v2080_v17, %v7022_v40  ;;  %v4929_v17 = vld [vmem:[%s8905_s0 + $0x8] sm:$0xff] }
 0x27a   :  { %v1221_v48 = vpop.permute.xlu1 %1220  ;;  %v1167_v42 = vpop.permute.xlu0 %1166  ;;  %v1682_v36 = vsel %vm1680_vm5, %v4929_v17, %v9537_v43 }
 0x27b   :  { %v2206_v9 = vrot.slane %v2192_v5, %v7022_v40  ;;  %v2207_v38 = vcombine.high %v2199_v0, %v2199_v0  ;;  %v4930_v5 = vld [vmem:[%s8905_s0 + $0x100] sm:$0xff] }
 0x27c   :  { %1356 = vrot.lane.b32.xlu1 %v9344_v10, %s5017_s19  ;;  %1066 = vrot.lane.b32.xlu0 %v9535_v39, %s5012_s4  ;;  %v9538_v10 = vld [vmem:[#allocation112_spill] sm:$0xff]  ;;  %v4931_v39 = vld [vmem:[%s8905_s0 + $0x168] sm:$0xff] }
 0x27d   :  { %v2208_v1 = vcombine.high %v2206_v9, %v2206_v9  ;;  %v3128_v26 = vcombine.low %v2199_v0, %v2207_v38  ;;  %v1709_v47 = vsel %vm1680_vm5, %v4930_v5, %v9538_v10  ;;  %v4932_v0 = vld [vmem:[%s8905_s0 + $0x70] sm:$0xff] }
 0x27e   :  { %v1395_v51 = vpop.permute.xlu1 %1394  ;;  %v1341_v14 = vpop.permute.xlu0 %1340  ;;  %v1766_v38 = vsel %vm1737_vm4, %v1709_v47, %v6204_v60 }
 0x27f   :  { %v3129_v34 = vcombine.low %v2206_v9, %v2208_v1  ;;  %v1739_v9 = vsel %vm1737_vm4, %v1682_v36, %v6080_v21  ;;  %v3136_v1 = vrot.slane %v3128_v26, %v7022_v40  ;;  %v1823_v5 = vsel %vm1794_vm6, %v1766_v38, %v6446_v29 }
 0x280   :  { %1238 = vrot.lane.b32.xlu1 %v4931_v39, %s5014_s15  ;;  %1184 = vrot.lane.b32.xlu0 %v4932_v0, %s5014_s15  ;;  %v1796_v43 = vsel %vm1794_vm6, %v1739_v9, %v6324_v56  ;;  %v1880_v36 = vsel %vm1851_vm7, %v1823_v5, %v6698_v55 }
 0x281   :  { %v3143_v17 = vrot.slane %v3129_v34, %v7022_v40  ;;  %v1853_v0 = vsel %vm1851_vm7, %v1796_v43, %v6564_v58  ;;  %v1937_v47 = vsel %vm1908_vm8, %v1880_v36, %v6995_v3  ;;  %v9539_v34 = vmov 0.0   ;;  %v4933_v3 = vld [vmem:[%s8905_s0 + $0x10] sm:$0xff] }
 0x282   :  { %v1223_v10 = vpop.permute.xlu1 %1222  ;;  %v1169_v39 = vpop.permute.xlu0 %1168  ;;  %v1910_v60 = vsel %vm1908_vm8, %v1853_v0, %v6862_v35  ;;  %v1994_v29 = vsel %vm1965_vm9, %v1937_v47, %v1221_v48  ;;  %v9540_v48 = vld [vmem:[#allocation62_spill] sm:$0xff] }
 0x283   :  { %v3144_v21 = vcombine.low %v3136_v1, %v3143_v17  ;;  %v1967_v56 = vsel %vm1965_vm9, %v1910_v60, %v1167_v42  ;;  %v2051_v58 = vsel %vm2022_vm10, %v1994_v29, %v1395_v51  ;;  %v1683_v42 = vsel %vm1680_vm5, %v4933_v3, %v9540_v48  ;;  %v4934_v51 = vld [vmem:[%s8905_s0 + $0x108] sm:$0xff]  ;;  %v4936_v3 = vld [vmem:[%s8905_s0 + $0x78] sm:$0xff] }
 0x284   :  { %1358 = vrot.lane.b32.xlu1 %v9349_v63, %s5017_s19  ;;  %1530 = vrot.lane.b32.xlu0 %v9450_v33, %s5016_s18  ;;  %v2024_v55 = vsel %vm2022_vm10, %v1967_v56, %v1341_v14  ;;  %v9541_v14 = vld [vmem:[#allocation111_spill] sm:$0xff]  ;;  %v1740_v1 = vsel %vm1737_vm4, %v1683_v42, %v6090_v23 }
 0x285   :  { %4739 = vmatmul.mubr.msk.f32.vlgmr.msra.gmra.mrb[0].mxu0 %vm3961_vm12, %v3144_v21  ;;  %v1710_v9 = vsel %vm1680_vm5, %v4934_v51, %v9541_v14  ;;  %v1797_v5 = vsel %vm1794_vm6, %v1740_v1, %v6334_v46  ;;  %v9543_v1 = vld [vmem:[#allocation58_spill] sm:$0xff] }
 0x286   :  { %v1569_v35 = vpop.permute.xlu1 %1568  ;;  %v1515_v26 = vpop.permute.xlu0 %1514  ;;  %4741 = vmatprep.mubr.msk.f32.mxu0 %vm5018_vm3, %v9539_v34  ;;  %v1767_v17 = vsel %vm1737_vm4, %v1710_v9, %v6202_v49  ;;  %v1854_v23 = vsel %vm1851_vm7, %v1797_v5, %v6574_v15  ;;  %v9542_v15 = vld [vmem:[#allocation126_spill] sm:$0xff] }
 0x287   :  { %v7087_v63 = vsel %vm2079_vm11, %v2051_v58, %v1569_v35  ;;  %v2081_v33 = vsel %vm2079_vm11, %v2024_v55, %v1515_v26  ;;  %v1824_v0 = vsel %vm1794_vm6, %v1767_v17, %v6444_v19  ;;  %v1911_v60 = vsel %vm1908_vm8, %v1854_v23, %v6874_v24 }
 0x288   :  { %v2654_v38 = vcombine.high %v7087_v63, %v7087_v63  ;;  %1532 = vrot.lane.b32.xlu1 %v9455_v44, %s5016_s18  ;;  %v2216_v43 = vrot.slane %v2081_v33, %v7022_v40  ;;  %1412 = vrot.lane.b32.xlu0 %v9398_v13, %s5017_s19  ;;  %v1881_v49 = vsel %vm1851_vm7, %v1824_v0, %v6696_v30 }
 0x289   :  { %v1938_v13 = vsel %vm1908_vm8, %v1881_v49, %v6993_v11  ;;  %v1968_v46 = vsel %vm1965_vm9, %v1911_v60, %v1169_v39  ;;  %v2209_v47 = vcombine.high %v2081_v33, %v2081_v33  ;;  %v4935_v39 = vld [vmem:[%s8905_s0 + $0x170] sm:$0xff] }
 0x28a   :  { %v2668_v36 = vrot.slane %v2654_v38, %v7022_v40  ;;  %v1397_v44 = vpop.permute.xlu1 %1396  ;;  %v1343_v21 = vpop.permute.xlu0 %1342  ;;  %v1995_v19 = vsel %vm1965_vm9, %v1938_v13, %v1223_v10  ;;  %v2224_v29 = vcombine.high %v2216_v43, %v2216_v43  ;;  %v4937_v38 = vld [vmem:[%s8905_s0 + $0x18] sm:$0xff] }
 0x28b   :  { %v2052_v30 = vsel %vm2022_vm10, %v1995_v19, %v1397_v44  ;;  %v2025_v24 = vsel %vm2022_vm10, %v1968_v46, %v1343_v21  ;;  %v2223_v35 = vrot.slane %v2209_v47, %v7022_v40  ;;  %v1684_v17 = vsel %vm1680_vm5, %v4937_v38, %v9543_v1  ;;  %v4938_v19 = vld [vmem:[%s8905_s0 + $0x110] sm:$0xff]  ;;  %v9548_v38 = vld [vmem:[#allocation133_spill] sm:$0xff] }
 0x28c   :  { %1068 = vrot.lane.b32.xlu1 %v9536_v45, %s5012_s4  ;;  %1586 = vrot.lane.b32.xlu0 %v9542_v15, %s5016_s18  ;;  %v2670_v56 = vcombine.high %v2668_v36, %v2668_v36  ;;  %v3145_v26 = vcombine.low %v2216_v43, %v2224_v29  ;;  %v1741_v0 = vsel %vm1737_vm4, %v1684_v17, %v6088_v18  ;;  %v9544_v46 = vld [vmem:[#allocation116_spill] sm:$0xff]  ;;  %v9545_v29 = vld [vmem:[#allocation77_spill] sm:$0xff] }
 0x28d   :  { %v1798_v21 = vsel %vm1794_vm6, %v1741_v0, %v6332_v12 }
 0x28e   :  { %v1571_v58 = vpop.permute.xlu1 %1570  ;;  %v1517_v55 = vpop.permute.xlu0 %1516  ;;  %v3553_v48 = vcombine.low %v2668_v36, %v2670_v56  ;;  %v3153_v36 = vrot.slane %v3145_v26, %v7022_v40 }
 0x28f   :  { %v7133_v11 = vsel %vm2079_vm11, %v2052_v30, %v1571_v58  ;;  %v2082_v45 = vsel %vm2079_vm11, %v2025_v24, %v1517_v55  ;;  %v9546_v30 = vld [vmem:[#allocation186_spill] sm:$0xff] }
 0x290   :  { %v2678_v10 = vrot.slane %v7133_v11, %v7022_v40  ;;  %1240 = vrot.lane.b32.xlu1 %v4935_v39, %s5014_s15  ;;  %v2232_v33 = vrot.slane %v2082_v45, %v7022_v40  ;;  %1186 = vrot.lane.b32.xlu0 %v4936_v3, %s5014_s15  ;;  %v2225_v5 = vcombine.high %v2082_v45, %v2082_v45  ;;  %v4939_v55 = vld [vmem:[%s8905_s0 + $0x80] sm:$0xff] }
 0x291   :  { %v3561_v23 = vrot.slane %v3553_v48, %v7022_v40  ;;  %v2671_v48 = vcombine.high %v7133_v11, %v7133_v11 }
 0x292   :  { %v2686_v42 = vcombine.high %v2678_v10, %v2678_v10  ;;  %v1225_v51 = vpop.permute.xlu1 %1224  ;;  %v1171_v14 = vpop.permute.xlu0 %1170  ;;  %v3146_v9 = vcombine.low %v2223_v35, %v2232_v33  ;;  %v2239_v47 = vrot.slane %v2225_v5, %v7022_v40  ;;  %v2240_v24 = vcombine.high %v2232_v33, %v2232_v33  ;;  %v9549_v5 = vld [vmem:[#allocation67_spill] sm:$0xff] }
 0x293   :  { %v1685_v11 = vsel %vm1680_vm5, %v6703_v16, %v9549_v5 }
 0x294   :  { %v3554_v43 = vcombine.low %v2678_v10, %v2686_v42  ;;  %1414 = vrot.lane.b32.xlu1 %v9403_v7, %s5017_s19  ;;  %v3160_v44 = vrot.slane %v3146_v9, %v7022_v40  ;;  %1360 = vrot.lane.b32.xlu0 %v9348_v41, %s5017_s19  ;;  %v1855_v7 = vsel %vm1851_vm7, %v1798_v21, %v6572_v22  ;;  %v4940_v21 = vld [vmem:[%s8905_s0 + $0x178] sm:$0xff] }
 0x295   :  { %v1711_v41 = vsel %vm1680_vm5, %v4938_v19, %v9544_v46  ;;  %v1912_v12 = vsel %vm1908_vm8, %v1855_v7, %v6872_v37  ;;  %v9547_v37 = vld [vmem:[#allocation30_spill] sm:$0xff]  ;;  %v2241_v42 = vcombine.high %v2239_v47, %v2239_v47  ;;  %v3162_v9 = vcombine.low %v2240_v24, %v2239_v47  ;;  %v9552_v7 = vld [vmem:[#allocation3_spill] sm:$0xff] }
 0x296   :  { %v3568_v49 = vrot.slane %v3554_v43, %v7022_v40  ;;  %v1399_v60 = vpop.permute.xlu1 %1398  ;;  %v1345_v13 = vpop.permute.xlu0 %1344  ;;  %v3161_v18 = vcombine.low %v3153_v36, %v3160_v44  ;;  %v1768_v22 = vsel %vm1737_vm4, %v1711_v41, %v9546_v30  ;;  %v1969_v58 = vsel %vm1965_vm9, %v1912_v12, %v1171_v14 }
 0x297   :  { %v1825_v45 = vsel %vm1794_vm6, %v1768_v22, %v9547_v37  ;;  %v2026_v10 = vsel %vm2022_vm10, %v1969_v58, %v1345_v13  ;;  %v2685_v36 = vrot.slane %v2671_v48, %v7022_v40  ;;  %v3170_v16 = vrot.slane %v3162_v9, %v7022_v40  ;;  %v9551_v13 = vld [vmem:[#allocation17_spill] sm:$0xff]  ;;  %v9554_v37 = vld [vmem:[#allocation84_spill] sm:$0xff]  ;;  %v9555_v48 = vld [vmem:[#allocation115_spill] sm:$0xff] }
 0x298   :  { %1534 = vrot.lane.b32.xlu1 %v9545_v29, %s5016_s18  ;;  %v3569_v56 = vcombine.low %v3561_v23, %v3568_v49  ;;  %1188 = vrot.lane.b32.xlu0 %v4939_v55, %s5014_s15  ;;  %v1882_v26 = vsel %vm1851_vm7, %v1825_v45, %v6711_v27  ;;  %v9550_v23 = vld [vmem:[#allocation163_spill] sm:$0xff]  ;;  %v9553_v29 = vld [vmem:[#allocation56_spill] sm:$0xff] }
 0x299   :  { %4742 = vmatmul.mubr.msk.f32.gmra.mrb[2].mxu0 %vm3961_vm12, %v3161_v18  ;;  %v1939_v3 = vsel %vm1908_vm8, %v1882_v26, %v7010_v50  ;;  %v1742_v49 = vsel %vm1737_vm4, %v1685_v11, %v9550_v23  ;;  %v4942_v9 = vld [vmem:[%s8905_s0 + $0x88] sm:$0xff]  ;;  %v9559_v23 = vld [vmem:[#allocation130_spill] sm:$0xff] }
 0x29a   :  { %v1519_v39 = vpop.permute.xlu1 %1518  ;;  %4814 = vmatmul.mubr.msk.f32.vlgmr.msra.gmra.mrb[0].mxu1 %vm3961_vm12, %v3569_v56  ;;  %v1173_v35 = vpop.permute.xlu0 %1172  ;;  %4744 = vmatprep.mubr.msk.f32.mxu0 %vm5018_vm3, %v9539_v34  ;;  %v1996_v27 = vsel %vm1965_vm9, %v1939_v3, %v1225_v51  ;;  %v1799_v18 = vsel %vm1794_vm6, %v1742_v49, %v9552_v7 }
 0x29b   :  { %v2083_v33 = vsel %vm2079_vm11, %v2026_v10, %v1519_v39  ;;  %4816 = vmatprep.mubr.msk.f32.mxu1 %vm5018_vm3, %v9539_v34  ;;  %v2053_v1 = vsel %vm2022_vm10, %v1996_v27, %v1399_v60  ;;  %v1856_v56 = vsel %vm1851_vm7, %v1799_v18, %v9553_v29 }
 0x29c   :  { %v2249_v14 = vrot.slane %v2083_v33, %v7022_v40  ;;  %1070 = vrot.lane.b32.xlu1 %v9542_v15, %s5012_s4  ;;  %1588 = vrot.lane.b32.xlu0 %v9548_v38, %s5016_s18  ;;  %v2242_v60 = vcombine.high %v2083_v33, %v2083_v33  ;;  %v1913_v22 = vsel %vm1908_vm8, %v1856_v56, %v6887_v20  ;;  %v9562_v56 = vld [vmem:[#allocation162_spill] sm:$0xff] }
 0x29d   :  { %v1970_v55 = vsel %vm1965_vm9, %v1913_v22, %v1173_v35  ;;  %v4941_v35 = vld [vmem:[%s8905_s0 + $0x118] sm:$0xff] }
 0x29e   :  { %v3163_v17 = vcombine.low %v2241_v42, %v2249_v14  ;;  %v1055_v43 = vpop.permute.xlu1 %1054  ;;  %v1573_v50 = vpop.permute.xlu0 %1572  ;;  %v2256_v58 = vrot.slane %v2242_v60, %v7022_v40  ;;  %v2257_v45 = vcombine.high %v2249_v14, %v2249_v14  ;;  %v1712_v42 = vsel %vm1680_vm5, %v4941_v35, %v9555_v48 }
 0x29f   :  { %v2110_v0 = vsel %vm2079_vm11, %v2053_v1, %v1573_v50  ;;  %v9558_v50 = vld [vmem:[#allocation29_spill] sm:$0xff] }
 0x2a0   :  { %v3177_v15 = vrot.slane %v3163_v17, %v7022_v40  ;;  %v2687_v44 = vcombine.high %v2110_v0, %v2110_v0  ;;  %v2694_v51 = vrot.slane %v2110_v0, %v7022_v40  ;;  %1242 = vrot.lane.b32.xlu1 %v4940_v21, %s5014_s15  ;;  %1362 = vrot.lane.b32.xlu0 %v9551_v13, %s5017_s19  ;;  %v9557_v17 = vld [vmem:[#allocation41_spill] sm:$0xff] }
 0x2a1   :  { %v3179_v11 = vcombine.low %v2257_v45, %v2256_v58  ;;  %v9563_v58 = vld [vmem:[#allocation44_spill] sm:$0xff] }
 0x2a2   :  { %v7226_v19 = vrot.slane %v2687_v44, %v7022_v40  ;;  %v2702_v46 = vcombine.high %v2694_v51, %v2694_v51  ;;  %v3570_v41 = vcombine.low %v2685_v36, %v2694_v51  ;;  %v1227_v12 = vpop.permute.xlu1 %1226  ;;  %v1347_v47 = vpop.permute.xlu0 %1346  ;;  %v3178_v30 = vcombine.low %v3170_v16, %v3177_v15  ;;  %v4943_v16 = vld [vmem:[%s8905_s0 + $0x180] sm:$0xff] }
 0x2a3   :  { %v2027_v20 = vsel %vm2022_vm10, %v1970_v55, %v1347_v47  ;;  %v3187_v60 = vrot.slane %v3179_v11, %v7022_v40 }
 0x2a4   :  { %v3571_v24 = vcombine.low %v2702_v46, %v7226_v19  ;;  %1072 = vrot.lane.b32.xlu1 %v9548_v38, %s5012_s4  ;;  %1536 = vrot.lane.b32.xlu0 %v9554_v37, %s5016_s18  ;;  %v3578_v10 = vrot.slane %v3570_v41, %v7022_v40  ;;  %v9556_v38 = vld [vmem:[#allocation185_spill] sm:$0xff]  ;;  %v9560_v46 = vld [vmem:[#allocation66_spill] sm:$0xff]  ;;  %v9564_v37 = vld [vmem:[#allocation188_spill] sm:$0xff] }
 0x2a5   :  { %4745 = vmatmul.mubr.msk.f32.gmra.mrb[4].mxu0 %vm3961_vm12, %v3178_v30  ;;  %v1769_v1 = vsel %vm1737_vm4, %v1712_v42, %v9556_v38  ;;  %v1686_v41 = vsel %vm1680_vm5, %v6740_v32, %v9560_v46  ;;  %v9565_v32 = vld [vmem:[#allocation2_spill] sm:$0xff] }
 0x2a6   :  { %v3585_v39 = vrot.slane %v3571_v24, %v7022_v40  ;;  %v1057_v26 = vpop.permute.xlu1 %1056  ;;  %v1521_v33 = vpop.permute.xlu0 %1520  ;;  %4747 = vmatprep.mubr.msk.f32.mxu0 %vm5018_vm3, %v9539_v34  ;;  %v1826_v5 = vsel %vm1794_vm6, %v1769_v1, %v9558_v50  ;;  %v1743_v30 = vsel %vm1737_vm4, %v1686_v41, %v9562_v56 }
 0x2a7   :  { %v2084_v3 = vsel %vm2079_vm11, %v2027_v20, %v1521_v33  ;;  %v1883_v44 = vsel %vm1851_vm7, %v1826_v5, %v6709_v6  ;;  %v9567_v20 = vld [vmem:[#allocation32_spill] sm:$0xff]  ;;  %v9569_v5 = vld [vmem:[#allocation137_spill] sm:$0xff] }
 0x2a8   :  { %v2265_v14 = vrot.slane %v2084_v3, %v7022_v40  ;;  %1190 = vrot.lane.b32.xlu1 %v4942_v9, %s5014_s15  ;;  %v3586_v27 = vcombine.low %v3578_v10, %v3585_v39  ;;  %1416 = vrot.lane.b32.xlu0 %v9557_v17, %s5017_s19  ;;  %v1940_v51 = vsel %vm1908_vm8, %v1883_v44, %v1055_v43  ;;  %v9566_v39 = vld [vmem:[#allocation16_spill] sm:$0xff]  ;;  %v9568_v9 = vld [vmem:[#allocation55_spill] sm:$0xff] }
 0x2a9   :  { %v1997_v49 = vsel %vm1965_vm9, %v1940_v51, %v1227_v12  ;;  %v2258_v6 = vcombine.high %v2084_v3, %v2084_v3  ;;  %v9561_v12 = vld [vmem:[#allocation120_spill] sm:$0xff]  ;;  %v1800_v10 = vsel %vm1794_vm6, %v1743_v30, %v9565_v32  ;;  %v9574_v32 = vld [vmem:[#allocation19_spill] sm:$0xff] }
 0x2aa   :  { %v2273_v0 = vcombine.high %v2265_v14, %v2265_v14  ;;  %v1175_v36 = vpop.permute.xlu1 %1174  ;;  %4817 = vmatmul.mubr.msk.f32.gmra.mrb[2].mxu1 %vm3961_vm12, %v3586_v27  ;;  %v1401_v15 = vpop.permute.xlu0 %1400  ;;  %v1713_v47 = vsel %vm1680_vm5, %v6733_v8, %v9561_v12  ;;  %v2703_v8 = vcombine.high %v7226_v19, %v7226_v19  ;;  %v1857_v27 = vsel %vm1851_vm7, %v1800_v10, %v9568_v9  ;;  %v9575_v10 = vld [vmem:[#allocation60_spill] sm:$0xff] }
 0x2ab   :  { %4819 = vmatprep.mubr.msk.f32.mxu1 %vm5018_vm3, %v9539_v34  ;;  %v2054_v7 = vsel %vm2022_vm10, %v1997_v49, %v1401_v15  ;;  %v1770_v45 = vsel %vm1737_vm4, %v1713_v47, %v9564_v37  ;;  %v2272_v3 = vrot.slane %v2258_v6, %v7022_v40  ;;  %v1914_v1 = vsel %vm1908_vm8, %v1857_v27, %v6885_v61  ;;  %v9570_v15 = vld [vmem:[#allocation81_spill] sm:$0xff] }
 0x2ac   :  { %v3180_v21 = vcombine.low %v2265_v14, %v2273_v0  ;;  %1590 = vrot.lane.b32.xlu1 %v9559_v23, %s5016_s18  ;;  %1244 = vrot.lane.b32.xlu0 %v4943_v16, %s5014_s15  ;;  %v1827_v33 = vsel %vm1794_vm6, %v1770_v45, %v9567_v20  ;;  %v1971_v11 = vsel %vm1965_vm9, %v1914_v1, %v1175_v36  ;;  %v9573_v37 = vld [vmem:[#allocation5_spill] sm:$0xff] }
 0x2ad   :  { %v1884_v19 = vsel %vm1851_vm7, %v1827_v33, %v6726_v2  ;;  %v2274_v2 = vcombine.high %v2272_v3, %v2272_v3 }
 0x2ae   :  { %v3194_v13 = vrot.slane %v3180_v21, %v7022_v40  ;;  %v1575_v43 = vpop.permute.xlu1 %1574  ;;  %v1229_v18 = vpop.permute.xlu0 %1228  ;;  %v1941_v17 = vsel %vm1908_vm8, %v1884_v19, %v1057_v26 }
 0x2af   :  { %v2111_v29 = vsel %vm2079_vm11, %v2054_v7, %v1575_v43  ;;  %v1998_v0 = vsel %vm1965_vm9, %v1941_v17, %v1229_v18  ;;  %v9571_v7 = vld [vmem:[#allocation71_spill] sm:$0xff]  ;;  %v4944_v18 = vld [vmem:[%s8905_s0 + $0x90] sm:$0xff]  ;;  %v3196_v41 = vcombine.low %v2272_v3, %v2274_v2  ;;  %v4946_v2 = vld [vmem:[%s8905_s0 + $0x98] sm:$0xff] }
 0x2b0   :  { %v2704_v22 = vcombine.high %v2111_v29, %v2111_v29  ;;  %v2711_v24 = vrot.slane %v2111_v29, %v7022_v40  ;;  %1418 = vrot.lane.b32.xlu1 %v9563_v58, %s5017_s19  ;;  %v3195_v55 = vcombine.low %v3187_v60, %v3194_v13  ;;  %1364 = vrot.lane.b32.xlu0 %v9566_v39, %s5017_s19 }
 0x2b1   :  { %v1687_v43 = vsel %vm1680_vm5, %v6766_v59, %v9571_v7  ;;  %v3204_v39 = vrot.slane %v3196_v41, %v7022_v40 }
 0x2b2   :  { %v2718_v35 = vrot.slane %v2704_v22, %v7022_v40  ;;  %v2719_v48 = vcombine.high %v2711_v24, %v2711_v24  ;;  %v1403_v42 = vpop.permute.xlu1 %1402  ;;  %4748 = vmatmul.mubr.msk.f32.gmra.mrb[6].mxu0 %vm3961_vm12, %v3195_v55  ;;  %v1349_v14 = vpop.permute.xlu0 %1348  ;;  %v3587_v38 = vcombine.low %v2703_v8, %v2711_v24  ;;  %v9572_v22 = vld [vmem:[#allocation165_spill] sm:$0xff]  ;;  %v4945_v55 = vld [vmem:[%s8905_s0 + $0x188] sm:$0xff] }
 0x2b3   :  { %4750 = vmatprep.mubr.msk.f32.mxu0 %vm5018_vm3, %v9539_v34  ;;  %v2055_v51 = vsel %vm2022_vm10, %v1998_v0, %v1403_v42  ;;  %v2028_v61 = vsel %vm2022_vm10, %v1971_v11, %v1349_v14 }
 0x2b4   :  { %v3588_v50 = vcombine.low %v2719_v48, %v2718_v35  ;;  %1592 = vrot.lane.b32.xlu1 %v9569_v5, %s5016_s18  ;;  %1538 = vrot.lane.b32.xlu0 %v9570_v15, %s5016_s18  ;;  %v3595_v49 = vrot.slane %v3587_v38, %v7022_v40  ;;  %v9576_v38 = vld [vmem:[#allocation88_spill] sm:$0xff] }
 0x2b6   :  { %v3602_v44 = vrot.slane %v3588_v50, %v7022_v40  ;;  %v1577_v21 = vpop.permute.xlu1 %1576  ;;  %v1523_v26 = vpop.permute.xlu0 %1522 }
 0x2b7   :  { %v2112_v16 = vsel %vm2079_vm11, %v2055_v51, %v1577_v21  ;;  %v2085_v36 = vsel %vm2079_vm11, %v2028_v61, %v1523_v26  ;;  %v9578_v51 = vld [vmem:[#allocation119_spill] sm:$0xff] }
 0x2b8   :  { %v2720_v60 = vcombine.high %v2112_v16, %v2112_v16  ;;  %v2727_v6 = vrot.slane %v2112_v16, %v7022_v40  ;;  %v2282_v13 = vrot.slane %v2085_v36, %v7022_v40  ;;  %1074 = vrot.lane.b32.xlu1 %v9559_v23, %s5012_s4  ;;  %1192 = vrot.lane.b32.xlu0 %v4944_v18, %s5014_s15  ;;  %v9581_v18 = vld [vmem:[#allocation134_spill] sm:$0xff] }
 0x2b9   :  { %v3603_v46 = vcombine.low %v3595_v49, %v3602_v44  ;;  %v1744_v23 = vsel %vm1737_vm4, %v1687_v43, %v9572_v22  ;;  %v2275_v9 = vcombine.high %v2085_v36, %v2085_v36  ;;  %v9577_v44 = vld [vmem:[#allocation43_spill] sm:$0xff]  ;;  %v1714_v61 = vsel %vm1680_vm5, %v6759_v25, %v9578_v51  ;;  %v4947_v25 = vld [vmem:[%s8905_s0 + $0x190] sm:$0xff] }
 0x2ba   :  { %v2734_v12 = vrot.slane %v2720_v60, %v7022_v40  ;;  %v2735_v47 = vcombine.high %v2727_v6, %v2727_v6  ;;  %v2290_v29 = vcombine.high %v2282_v13, %v2282_v13  ;;  %v1059_v56 = vpop.permute.xlu1 %1058  ;;  %v1177_v30 = vpop.permute.xlu0 %1176  ;;  %v1801_v45 = vsel %vm1794_vm6, %v1744_v23, %v9573_v37  ;;  %v9579_v60 = vld [vmem:[#allocation187_spill] sm:$0xff]  ;;  %v9582_v23 = vld [vmem:[#allocation70_spill] sm:$0xff] }
 0x2bb   :  { %4820 = vmatmul.mubr.msk.f32.gmra.mrb[4].mxu1 %vm3961_vm12, %v3603_v46  ;;  %v1858_v8 = vsel %vm1851_vm7, %v1801_v45, %v9575_v10  ;;  %v9585_v45 = vld [vmem:[#allocation18_spill] sm:$0xff] }
 0x2bc   :  { %v2736_v59 = vcombine.high %v2734_v12, %v2734_v12  ;;  %v3604_v24 = vcombine.low %v2727_v6, %v2735_v47  ;;  %v3197_v58 = vcombine.low %v2282_v13, %v2290_v29  ;;  %1246 = vrot.lane.b32.xlu1 %v4945_v55, %s5014_s15  ;;  %4822 = vmatprep.mubr.msk.f32.mxu1 %vm5018_vm3, %v9539_v34  ;;  %v9580_v13 = vld [vmem:[#allocation31_spill] sm:$0xff]  ;;  %v9584_v55 = vld [vmem:[#allocation164_spill] sm:$0xff] }
 0x2bd   :  { %1366 = vrot.lane.b32.xlu0 %v9574_v32, %s5017_s19  ;;  %v1915_v48 = vsel %vm1908_vm8, %v1858_v8, %v6895_v57  ;;  %v1771_v6 = vsel %vm1737_vm4, %v1714_v61, %v9579_v60  ;;  %v9586_v32 = vld [vmem:[#allocation4_spill] sm:$0xff]  ;;  %v9593_v60 = vld [vmem:[#allocation75_spill] sm:$0xff] }
 0x2be   :  { %v3605_v20 = vcombine.low %v2734_v12, %v2736_v59  ;;  %v3211_v33 = vrot.slane %v3197_v58, %v7022_v40  ;;  %v1231_v3 = vpop.permute.xlu1 %1230  ;;  %v1351_v35 = vpop.permute.xlu0 %1350  ;;  %v3612_v42 = vrot.slane %v3604_v24, %v7022_v40  ;;  %v1972_v19 = vsel %vm1965_vm9, %v1915_v48, %v1177_v30  ;;  %v9583_v24 = vld [vmem:[#allocation46_spill] sm:$0xff] }
 0x2bf   :  { %v2029_v1 = vsel %vm2022_vm10, %v1972_v19, %v1351_v35  ;;  %v1828_v7 = vsel %vm1794_vm6, %v1771_v6, %v9580_v13  ;;  %v9589_v35 = vld [vmem:[#allocation190_spill] sm:$0xff]  ;;  %v1689_v6 = vsel %vm1680_vm5, %v6829_v31, %v9593_v60  ;;  %v9596_v31 = vld [vmem:[#allocation7_spill] sm:$0xff] }
 0x2c0   :  { %v3619_v14 = vrot.slane %v3605_v20, %v7022_v40  ;;  %1076 = vrot.lane.b32.xlu1 %v9569_v5, %s5012_s4  ;;  %v3212_v27 = vcombine.low %v3204_v39, %v3211_v33  ;;  %v2289_v5 = vrot.slane %v2275_v9, %v7022_v40  ;;  %v1885_v46 = vsel %vm1851_vm7, %v1828_v7, %v6724_v53  ;;  %v9587_v39 = vld [vmem:[#allocation124_spill] sm:$0xff]  ;;  %v9588_v33 = vld [vmem:[#allocation57_spill] sm:$0xff] }
 0x2c1   :  { %1540 = vrot.lane.b32.xlu0 %v9576_v38, %s5016_s18  ;;  %v1942_v41 = vsel %vm1908_vm8, %v1885_v46, %v1059_v56  ;;  %v1688_v53 = vsel %vm1680_vm5, %v6808_v54, %v9582_v23  ;;  %v1715_v20 = vsel %vm1680_vm5, %v6801_v62, %v9587_v39  ;;  %v9590_v9 = vld [vmem:[#allocation85_spill] sm:$0xff]  ;;  %v4948_v38 = vld [vmem:[%s8905_s0 + $0xa0] sm:$0xff] }
 0x2c2   :  { %v1061_v17 = vpop.permute.xlu1 %1060  ;;  %4751 = vmatmul.mubr.msk.f32.gmra.mrb[8].mxu0 %vm3961_vm12, %v3212_v27  ;;  %v1525_v57 = vpop.permute.xlu0 %1524  ;;  %v3620_v50 = vcombine.low %v3612_v42, %v3619_v14  ;;  %v1999_v22 = vsel %vm1965_vm9, %v1942_v41, %v1231_v3  ;;  %v1745_v56 = vsel %vm1737_vm4, %v1688_v53, %v9584_v55  ;;  %v1772_v48 = vsel %vm1737_vm4, %v1715_v20, %v9589_v35  ;;  %v9591_v27 = vld [vmem:[#allocation34_spill] sm:$0xff]  ;;  %v9594_v41 = vld [vmem:[#allocation167_spill] sm:$0xff] }
 0x2c3   :  { %v2086_v11 = vsel %vm2079_vm11, %v2029_v1, %v1525_v57  ;;  %4753 = vmatprep.mubr.msk.f32.mxu0 %vm5018_vm3, %v9539_v34  ;;  %v1802_v10 = vsel %vm1794_vm6, %v1745_v56, %v9586_v32  ;;  %v1829_v62 = vsel %vm1794_vm6, %v1772_v48, %v9591_v27  ;;  %v9600_v35 = vld [vmem:[#allocation266_spill] sm:$0xff]  ;;  %v9601_v27 = vld [vmem:[#allocation189_spill] sm:$0xff] }
 0x2c4   :  { %v2291_v0 = vcombine.high %v2086_v11, %v2086_v11  ;;  %v2298_v15 = vrot.slane %v2086_v11, %v7022_v40  ;;  %1194 = vrot.lane.b32.xlu1 %v4946_v2, %s5014_s15  ;;  %4823 = vmatmul.mubr.msk.f32.gmra.mrb[6].mxu1 %vm3961_vm12, %v3620_v50  ;;  %v1859_v3 = vsel %vm1851_vm7, %v1802_v10, %v9588_v33  ;;  %v9598_v10 = vld [vmem:[#allocation92_spill] sm:$0xff] }
 0x2c5   :  { %1420 = vrot.lane.b32.xlu0 %v9577_v44, %s5017_s19  ;;  %4825 = vmatprep.mubr.msk.f32.mxu1 %vm5018_vm3, %v9539_v34  ;;  %v1916_v42 = vsel %vm1908_vm8, %v1859_v3, %v6893_v28  ;;  %v1886_v1 = vsel %vm1851_vm7, %v1829_v62, %v6746_v4  ;;  %v9592_v4 = vld [vmem:[#allocation141_spill] sm:$0xff]  ;;  %v9599_v3 = vld [vmem:[#allocation123_spill] sm:$0xff] }
 0x2c6   :  { %v2305_v21 = vrot.slane %v2291_v0, %v7022_v40  ;;  %v2306_v26 = vcombine.high %v2298_v15, %v2298_v15  ;;  %v3213_v49 = vcombine.low %v2289_v5, %v2298_v15  ;;  %v1179_v16 = vpop.permute.xlu1 %1178  ;;  %v1405_v36 = vpop.permute.xlu0 %1404  ;;  %v1943_v11 = vsel %vm1908_vm8, %v1886_v1, %v1061_v17  ;;  %v9604_v1 = vld [vmem:[#allocation114_spill] sm:$0xff] }
 0x2c7   :  { %v2056_v59 = vsel %vm2022_vm10, %v1999_v22, %v1405_v36  ;;  %v1973_v19 = vsel %vm1965_vm9, %v1916_v42, %v1179_v16  ;;  %v1716_v48 = vsel %vm1680_vm5, %v9600_v35, %v9599_v3 }
 0x2c8   :  { %v3214_v43 = vcombine.low %v2306_v26, %v2305_v21  ;;  %1594 = vrot.lane.b32.xlu1 %v9581_v18, %s5016_s18  ;;  %v3221_v12 = vrot.slane %v3213_v49, %v7022_v40  ;;  %v2307_v0 = vcombine.high %v2305_v21, %v2305_v21  ;;  %v1773_v62 = vsel %vm1737_vm4, %v1716_v48, %v9601_v27  ;;  %v9614_v27 = vld [vmem:[#allocation74_spill] sm:$0xff] }
 0x2c9   :  { %1248 = vrot.lane.b32.xlu0 %v4947_v25, %s5014_s15  ;;  %v4949_v25 = vld [vmem:[%s8905_s0 + $0x198] sm:$0xff] }
 0x2ca   :  { %v3228_v47 = vrot.slane %v3214_v43, %v7022_v40  ;;  %v1579_v29 = vpop.permute.xlu1 %1578  ;;  %v1233_v30 = vpop.permute.xlu0 %1232 }
 0x2cb   :  { %v2113_v37 = vsel %vm2079_vm11, %v2056_v59, %v1579_v29  ;;  %v2000_v61 = vsel %vm1965_vm9, %v1943_v11, %v1233_v30 }
 0x2cc   :  { %1422 = vrot.lane.b32.xlu1 %v9583_v24, %s5017_s19  ;;  %v3229_v58 = vcombine.low %v3221_v12, %v3228_v47  ;;  %v2744_v14 = vrot.slane %v2113_v37, %v7022_v40  ;;  %v2737_v15 = vcombine.high %v2113_v37, %v2113_v37  ;;  %v1746_v12 = vsel %vm1737_vm4, %v1689_v6, %v9594_v41  ;;  %v9595_v47 = vld [vmem:[#allocation21_spill] sm:$0xff]  ;;  %v9597_v24 = vld [vmem:[#allocation64_spill] sm:$0xff] }
 0x2cd   :  { %1368 = vrot.lane.b32.xlu0 %v9585_v45, %s5017_s19  ;;  %v1803_v29 = vsel %vm1794_vm6, %v1746_v12, %v9596_v31  ;;  %v9609_v6 = vld [vmem:[#allocation48_spill] sm:$0xff] }
 0x2ce   :  { %v1407_v8 = vpop.permute.xlu1 %1406  ;;  %4754 = vmatmul.mubr.msk.f32.gmra.mrb[10].mxu0 %vm3961_vm12, %v3229_v58  ;;  %v1353_v54 = vpop.permute.xlu0 %1352  ;;  %v2752_v2 = vcombine.high %v2744_v14, %v2744_v14  ;;  %v2751_v7 = vrot.slane %v2737_v15, %v7022_v40  ;;  %v1860_v58 = vsel %vm1851_vm7, %v1803_v29, %v9597_v24  ;;  %v9612_v24 = vld [vmem:[#allocation145_spill] sm:$0xff] }
 0x2cf   :  { %4756 = vmatprep.mubr.msk.f32.mxu0 %vm5018_vm3, %v9539_v34  ;;  %v2030_v28 = vsel %vm2022_vm10, %v1973_v19, %v1353_v54  ;;  %v2057_v26 = vsel %vm2022_vm10, %v2000_v61, %v1407_v8  ;;  %v1917_v55 = vsel %vm1908_vm8, %v1860_v58, %v6903_v52  ;;  %v9602_v19 = vld [vmem:[#allocation45_spill] sm:$0xff] }
 0x2d0   :  { %1542 = vrot.lane.b32.xlu1 %v9590_v9, %s5016_s18  ;;  %v3621_v43 = vcombine.low %v2744_v14, %v2752_v2  ;;  %v4950_v9 = vld [vmem:[%s8905_s0 + $0x1a0] sm:$0xff]  ;;  %v9606_v2 = vld [vmem:[#allocation192_spill] sm:$0xff] }
 0x2d1   :  { %1196 = vrot.lane.b32.xlu0 %v4948_v38, %s5014_s15  ;;  %v9603_v38 = vld [vmem:[#allocation128_spill] sm:$0xff] }
 0x2d2   :  { %v1527_v57 = vpop.permute.xlu1 %1526  ;;  %v1181_v50 = vpop.permute.xlu0 %1180  ;;  %v3629_v56 = vrot.slane %v3621_v43, %v7022_v40 }
 0x2d3   :  { %v2087_v5 = vsel %vm2079_vm11, %v2030_v28, %v1527_v57  ;;  %v1974_v32 = vsel %vm1965_vm9, %v1917_v55, %v1181_v50  ;;  %v1717_v28 = vsel %vm1680_vm5, %v9604_v1, %v9603_v38  ;;  %v9605_v57 = vld [vmem:[#allocation33_spill] sm:$0xff]  ;;  %v4951_v55 = vld [vmem:[%s8905_s0 + $0xa8] sm:$0xff]  ;;  %v9615_v1 = vld [vmem:[#allocation166_spill] sm:$0xff] }
 0x2d4   :  { %v2308_v44 = vcombine.high %v2087_v5, %v2087_v5  ;;  %v2315_v51 = vrot.slane %v2087_v5, %v7022_v40  ;;  %1078 = vrot.lane.b32.xlu1 %v9581_v18, %s5012_s4  ;;  %v1830_v50 = vsel %vm1794_vm6, %v1773_v62, %v9605_v57  ;;  %v4953_v38 = vld [vmem:[%s8905_s0 + $0x1a8] sm:$0xff]  ;;  %v4954_v57 = vld [vmem:[%s8905_s0 + $0xb0] sm:$0xff] }
 0x2d5   :  { %1596 = vrot.lane.b32.xlu0 %v9592_v4, %s5016_s18 }
 0x2d6   :  { %v2322_v17 = vrot.slane %v2308_v44, %v7022_v40  ;;  %v2323_v49 = vcombine.high %v2315_v51, %v2315_v51  ;;  %v3230_v16 = vcombine.low %v2307_v0, %v2315_v51  ;;  %v1063_v21 = vpop.permute.xlu1 %1062  ;;  %v1581_v36 = vpop.permute.xlu0 %1580  ;;  %v1774_v44 = vsel %vm1737_vm4, %v1717_v28, %v9606_v2  ;;  %v9607_v51 = vld [vmem:[#allocation109_spill] sm:$0xff] }
 0x2d7   :  { %v2114_v13 = vsel %vm2079_vm11, %v2057_v26, %v1581_v36  ;;  %v1887_v61 = vsel %vm1851_vm7, %v1830_v50, %v9607_v51  ;;  %v9616_v50 = vld [vmem:[#allocation6_spill] sm:$0xff] }
 0x2d8   :  { %v3231_v18 = vcombine.low %v2323_v49, %v2322_v17  ;;  %v2760_v46 = vrot.slane %v2114_v13, %v7022_v40  ;;  %1250 = vrot.lane.b32.xlu1 %v4949_v25, %s5014_s15  ;;  %v3238_v30 = vrot.slane %v3230_v16, %v7022_v40  ;;  %v2753_v20 = vcombine.high %v2114_v13, %v2114_v13  ;;  %v9608_v17 = vld [vmem:[#allocation36_spill] sm:$0xff]  ;;  %v9610_v13 = vld [vmem:[#allocation251_spill] sm:$0xff] }
 0x2d9   :  { %1370 = vrot.lane.b32.xlu0 %v9595_v47, %s5017_s19  ;;  %v1831_v49 = vsel %vm1794_vm6, %v1774_v44, %v9608_v17  ;;  %v1944_v16 = vsel %vm1908_vm8, %v1887_v61, %v1063_v21  ;;  %v9617_v44 = vld [vmem:[#allocation61_spill] sm:$0xff]  ;;  %v4955_v61 = vld [vmem:[%s8905_s0 + $0x50] sm:$0xff] }
 0x2da   :  { %v3245_v22 = vrot.slane %v3231_v18, %v7022_v40  ;;  %v3622_v23 = vcombine.low %v2751_v7, %v2760_v46  ;;  %v1235_v53 = vpop.permute.xlu1 %1234  ;;  %v1355_v59 = vpop.permute.xlu0 %1354  ;;  %v2768_v26 = vcombine.high %v2760_v46, %v2760_v46  ;;  %v1888_v7 = vsel %vm1851_vm7, %v1831_v49, %v9610_v13  ;;  %v9611_v18 = vld [vmem:[#allocation138_spill] sm:$0xff]  ;;  %v9619_v17 = vld [vmem:[#allocation121_spill] sm:$0xff] }
 0x2db   :  { %v2031_v8 = vsel %vm2022_vm10, %v1974_v32, %v1355_v59  ;;  %v2001_v43 = vsel %vm1965_vm9, %v1944_v16, %v1235_v53  ;;  %v9620_v16 = vld [vmem:[#allocation23_spill] sm:$0xff] }
 0x2dc   :  { %v3636_v37 = vrot.slane %v3622_v23, %v7022_v40  ;;  %1080 = vrot.lane.b32.xlu1 %v9592_v4, %s5012_s4  ;;  %v3246_v45 = vcombine.low %v3238_v30, %v3245_v22  ;;  %v2767_v4 = vrot.slane %v2753_v20, %v7022_v40 }
 0x2dd   :  { %1544 = vrot.lane.b32.xlu0 %v9598_v10, %s5016_s18 }
 0x2de   :  { %v1065_v54 = vpop.permute.xlu1 %1064  ;;  %4757 = vmatmul.mubr.msk.f32.gmra.mrb[12].mxu0 %vm3961_vm12, %v3246_v45  ;;  %v1529_v39 = vpop.permute.xlu0 %1528  ;;  %v3637_v52 = vcombine.low %v3629_v56, %v3636_v37  ;;  %v3638_v47 = vcombine.low %v2768_v26, %v2767_v4  ;;  %v2769_v29 = vcombine.high %v2767_v4, %v2767_v4  ;;  %v9618_v4 = vld [vmem:[#allocation79_spill] sm:$0xff] }
 0x2df   :  { %v2088_v33 = vsel %vm2079_vm11, %v2031_v8, %v1529_v39  ;;  %4759 = vmatprep.mubr.msk.f32.mxu0 %vm5018_vm3, %v9539_v34  ;;  %v1945_v46 = vsel %vm1908_vm8, %v1888_v7, %v1065_v54  ;;  %v1691_v26 = vsel %vm1680_vm5, %v4955_v61, %v9618_v4  ;;  %v9622_v7 = vld [vmem:[#allocation89_spill] sm:$0xff] }
 0x2e0   :  { %v2324_v42 = vcombine.high %v2088_v33, %v2088_v33  ;;  %v2331_v14 = vrot.slane %v2088_v33, %v7022_v40  ;;  %1252 = vrot.lane.b32.xlu1 %v4950_v9, %s5014_s15  ;;  %4826 = vmatmul.mubr.msk.f32.gmra.mrb[8].mxu1 %vm3961_vm12, %v3637_v52  ;;  %v3646_v39 = vrot.slane %v3638_v47, %v7022_v40  ;;  %v9613_v33 = vld [vmem:[#allocation20_spill] sm:$0xff]  ;;  %v4952_v9 = vld [vmem:[%s8905_s0 + $0x48] sm:$0xff] }
 0x2e1   :  { %1424 = vrot.lane.b32.xlu0 %v9602_v19, %s5017_s19  ;;  %4828 = vmatprep.mubr.msk.f32.mxu1 %vm5018_vm3, %v9539_v34  ;;  %v1690_v62 = vsel %vm1680_vm5, %v4952_v9, %v9614_v27 }
 0x2e2   :  { %v2338_v11 = vrot.slane %v2324_v42, %v7022_v40  ;;  %v2339_v5 = vcombine.high %v2331_v14, %v2331_v14  ;;  %v1237_v0 = vpop.permute.xlu1 %1236  ;;  %v1409_v15 = vpop.permute.xlu0 %1408  ;;  %v1747_v28 = vsel %vm1737_vm4, %v1690_v62, %v9615_v1 }
 0x2e3   :  { %v2058_v41 = vsel %vm2022_vm10, %v2001_v43, %v1409_v15  ;;  %v2002_v31 = vsel %vm1965_vm9, %v1945_v46, %v1237_v0  ;;  %v9623_v43 = vld [vmem:[#allocation9_spill] sm:$0xff] }
 0x2e4   :  { %v2340_v36 = vcombine.high %v2338_v11, %v2338_v11  ;;  %v3247_v60 = vcombine.low %v2331_v14, %v2339_v5  ;;  %1426 = vrot.lane.b32.xlu1 %v9609_v6, %s5017_s19 }
 0x2e5   :  { %1598 = vrot.lane.b32.xlu0 %v9611_v18, %s5016_s18 }
 0x2e6   :  { %v3248_v25 = vcombine.low %v2338_v11, %v2340_v36  ;;  %v1411_v12 = vpop.permute.xlu1 %1410  ;;  %v1583_v21 = vpop.permute.xlu0 %1582  ;;  %v3255_v22 = vrot.slane %v3247_v60, %v7022_v40  ;;  %v1804_v11 = vsel %vm1794_vm6, %v1747_v28, %v9616_v50  ;;  %v9621_v60 = vld [vmem:[#allocation169_spill] sm:$0xff] }
 0x2e7   :  { %v2115_v30 = vsel %vm2079_vm11, %v2058_v41, %v1583_v21  ;;  %v2059_v58 = vsel %vm2022_vm10, %v2002_v31, %v1411_v12  ;;  %v1861_v51 = vsel %vm1851_vm7, %v1804_v11, %v9617_v44  ;;  %v1748_v6 = vsel %vm1737_vm4, %v1691_v26, %v9621_v60  ;;  %v9624_v12 = vld [vmem:[#allocation68_spill] sm:$0xff]  ;;  %v9634_v60 = vld [vmem:[#allocation50_spill] sm:$0xff] }
 0x2e8   :  { %v3262_v23 = vrot.slane %v3248_v25, %v7022_v40  ;;  %v2770_v53 = vcombine.high %v2115_v30, %v2115_v30  ;;  %v2777_v59 = vrot.slane %v2115_v30, %v7022_v40  ;;  %1600 = vrot.lane.b32.xlu1 %v9612_v24, %s5016_s18  ;;  %v1918_v49 = vsel %vm1908_vm8, %v1861_v51, %v9619_v17  ;;  %v4959_v17 = vld [vmem:[%s8905_s0 + $0x58] sm:$0xff] }
 0x2e9   :  { %1198 = vrot.lane.b32.xlu0 %v4951_v55, %s5014_s15 }
 0x2ea   :  { %v2784_v56 = vrot.slane %v2770_v53, %v7022_v40  ;;  %v2785_v37 = vcombine.high %v2777_v59, %v2777_v59  ;;  %v3639_v45 = vcombine.low %v2769_v29, %v2777_v59  ;;  %v1585_v32 = vpop.permute.xlu1 %1584  ;;  %v1183_v10 = vpop.permute.xlu0 %1182  ;;  %v3263_v8 = vcombine.low %v3255_v22, %v3262_v23  ;;  %v9625_v29 = vld [vmem:[#allocation270_spill] sm:$0xff]  ;;  %v9626_v53 = vld [vmem:[#allocation96_spill] sm:$0xff]  ;;  %v4956_v59 = vld [vmem:[%s8905_s0 + $0x148] sm:$0xff] }
 0x2eb   :  { %v2116_v54 = vsel %vm2079_vm11, %v2059_v58, %v1585_v32  ;;  %v1975_v13 = vsel %vm1965_vm9, %v1918_v49, %v1183_v10  ;;  %v9627_v58 = vld [vmem:[#allocation127_spill] sm:$0xff]  ;;  %v9633_v49 = vld [vmem:[#allocation78_spill] sm:$0xff] }
 0x2ec   :  { %v3653_v52 = vrot.slane %v3639_v45, %v7022_v40  ;;  %v2793_v20 = vrot.slane %v2116_v54, %v7022_v40  ;;  %1372 = vrot.lane.b32.xlu1 %v9613_v33, %s5017_s19  ;;  %4760 = vmatmul.mubr.msk.f32.gmra.mrb[14].mxu0 %vm3961_vm12, %v3263_v8  ;;  %v3655_v3 = vcombine.low %v2785_v37, %v2784_v56  ;;  %v9628_v37 = vld [vmem:[#allocation47_spill] sm:$0xff] }
 0x2ed   :  { %1082 = vrot.lane.b32.xlu0 %v9611_v18, %s5012_s4  ;;  %4762 = vmatprep.mubr.msk.f32.mxu0 %vm5018_vm3, %v9539_v34  ;;  %v1805_v18 = vsel %vm1794_vm6, %v1748_v6, %v9623_v43  ;;  %v2786_v47 = vcombine.high %v2116_v54, %v2116_v54  ;;  %v1718_v55 = vsel %vm1680_vm5, %v4956_v59, %v9627_v58  ;;  %v9629_v45 = vld [vmem:[#allocation191_spill] sm:$0xff]  ;;  %v9635_v6 = vld [vmem:[#allocation168_spill] sm:$0xff]  ;;  %v9636_v43 = vld [vmem:[#allocation22_spill] sm:$0xff] }
 0x2ee   :  { %v2801_v35 = vcombine.high %v2793_v20, %v2793_v20  ;;  %v1357_v48 = vpop.permute.xlu1 %1356  ;;  %v1067_v42 = vpop.permute.xlu0 %1066  ;;  %v3654_v14 = vcombine.low %v3646_v39, %v3653_v52  ;;  %v3663_v5 = vrot.slane %v3655_v3, %v7022_v40  ;;  %v1862_v21 = vsel %vm1851_vm7, %v1805_v18, %v9624_v12  ;;  %v9630_v39 = vld [vmem:[#allocation35_spill] sm:$0xff]  ;;  %v9637_v18 = vld [vmem:[#allocation8_spill] sm:$0xff] }
 0x2ef   :  { %v2032_v46 = vsel %vm2022_vm10, %v1975_v13, %v1357_v48  ;;  %v1919_v30 = vsel %vm1908_vm8, %v1862_v21, %v9625_v29  ;;  %v1775_v32 = vsel %vm1737_vm4, %v1718_v55, %v9629_v45  ;;  %v4960_v29 = vld [vmem:[%s8905_s0 + $0x150] sm:$0xff]  ;;  %v9641_v55 = vld [vmem:[#allocation93_spill] sm:$0xff] }
 0x2f0   :  { %v3656_v19 = vcombine.low %v2793_v20, %v2801_v35  ;;  %1254 = vrot.lane.b32.xlu1 %v4953_v38, %s5014_s15  ;;  %4829 = vmatmul.mubr.msk.f32.gmra.mrb[10].mxu1 %vm3961_vm12, %v3654_v14  ;;  %v1832_v52 = vsel %vm1794_vm6, %v1775_v32, %v9630_v39  ;;  %v2800_v20 = vrot.slane %v2786_v47, %v7022_v40  ;;  %v9631_v35 = vld [vmem:[#allocation113_spill] sm:$0xff]  ;;  %v4961_v32 = vld [vmem:[%s8905_s0 + $0xc0] sm:$0xff] }
 0x2f1   :  { %1200 = vrot.lane.b32.xlu0 %v4954_v57, %s5014_s15  ;;  %4831 = vmatprep.mubr.msk.f32.mxu1 %vm5018_vm3, %v9539_v34  ;;  %v1889_v48 = vsel %vm1851_vm7, %v1832_v52, %v9631_v35 }
 0x2f2   :  { %v3670_v0 = vrot.slane %v3656_v19, %v7022_v40  ;;  %v1239_v15 = vpop.permute.xlu1 %1238  ;;  %v1185_v2 = vpop.permute.xlu0 %1184  ;;  %v1946_v62 = vsel %vm1908_vm8, %v1889_v48, %v1067_v42  ;;  %v9632_v19 = vld [vmem:[#allocation142_spill] sm:$0xff]  ;;  %v2802_v57 = vcombine.high %v2800_v20, %v2800_v20 }
 0x2f3   :  { %v1976_v56 = vsel %vm1965_vm9, %v1919_v30, %v1185_v2  ;;  %v2003_v38 = vsel %vm1965_vm9, %v1946_v62, %v1239_v15  ;;  %v4958_v15 = vld [vmem:[%s8905_s0 + $0xb8] sm:$0xff]  ;;  %v9639_v30 = vld [vmem:[#allocation132_spill] sm:$0xff] }
 0x2f4   :  { %1374 = vrot.lane.b32.xlu1 %v9620_v16, %s5017_s19  ;;  %v3671_v36 = vcombine.low %v3663_v5, %v3670_v0  ;;  %v3672_v61 = vcombine.low %v2800_v20, %v2802_v57  ;;  %v1692_v16 = vsel %vm1680_vm5, %v4959_v17, %v9633_v49  ;;  %v9644_v20 = vld [vmem:[#allocation253_spill] sm:$0xff] }
 0x2f5   :  { %1546 = vrot.lane.b32.xlu0 %v9622_v7, %s5016_s18  ;;  %v1749_v13 = vsel %vm1737_vm4, %v1692_v16, %v9635_v6 }
 0x2f6   :  { %v1359_v25 = vpop.permute.xlu1 %1358  ;;  %4832 = vmatmul.mubr.msk.f32.gmra.mrb[12].mxu1 %vm3961_vm12, %v3671_v36  ;;  %v1531_v41 = vpop.permute.xlu0 %1530  ;;  %v3680_v21 = vrot.slane %v3672_v61, %v7022_v40 }
 0x2f7   :  { %v2089_v31 = vsel %vm2079_vm11, %v2032_v46, %v1531_v41  ;;  %4834 = vmatprep.mubr.msk.f32.mxu1 %vm5018_vm3, %v9539_v34  ;;  %v2033_v10 = vsel %vm2022_vm10, %v1976_v56, %v1359_v25  ;;  %v1806_v46 = vsel %vm1794_vm6, %v1749_v13, %v9637_v18  ;;  %v9638_v41 = vld [vmem:[#allocation65_spill] sm:$0xff]  ;;  %v9642_v56 = vld [vmem:[#allocation194_spill] sm:$0xff] }
 0x2f8   :  { %v2341_v22 = vcombine.high %v2089_v31, %v2089_v31  ;;  %v2348_v23 = vrot.slane %v2089_v31, %v7022_v40  ;;  %1548 = vrot.lane.b32.xlu1 %v9626_v53, %s5016_s18  ;;  %v1863_v12 = vsel %vm1851_vm7, %v1806_v46, %v9638_v41  ;;  %v9650_v46 = vld [vmem:[#allocation72_spill] sm:$0xff] }
 0x2f9   :  { %1428 = vrot.lane.b32.xlu0 %v9628_v37, %s5017_s19  ;;  %v9651_v41 = vld [vmem:[#allocation272_spill] sm:$0xff] }
 0x2fa   :  { %v2356_v8 = vcombine.high %v2348_v23, %v2348_v23  ;;  %v1533_v54 = vpop.permute.xlu1 %1532  ;;  %v1413_v3 = vpop.permute.xlu0 %1412  ;;  %v2355_v14 = vrot.slane %v2341_v22, %v7022_v40  ;;  %v1719_v22 = vsel %vm1680_vm5, %v4960_v29, %v9639_v30 }
 0x2fb   :  { %v2090_v33 = vsel %vm2079_vm11, %v2033_v10, %v1533_v54  ;;  %v2060_v50 = vsel %vm2022_vm10, %v2003_v38, %v1413_v3  ;;  %v1776_v37 = vsel %vm1737_vm4, %v1719_v22, %v9642_v56  ;;  %v9645_v38 = vld [vmem:[#allocation149_spill] sm:$0xff]  ;;  %v9653_v56 = vld [vmem:[#allocation131_spill] sm:$0xff] }
 0x2fc   :  { %v3264_v9 = vcombine.low %v2348_v23, %v2356_v8  ;;  %v2364_v27 = vrot.slane %v2090_v33, %v7022_v40  ;;  %1084 = vrot.lane.b32.xlu1 %v9612_v24, %s5012_s4  ;;  %v4957_v24 = vld [vmem:[%s8905_s0 + $0x1b0] sm:$0xff]  ;;  %v2357_v36 = vcombine.high %v2090_v33, %v2090_v33  ;;  %v9640_v23 = vld [vmem:[#allocation269_spill] sm:$0xff]  ;;  %v9643_v8 = vld [vmem:[#allocation38_spill] sm:$0xff] }
 0x2fd   :  { %1602 = vrot.lane.b32.xlu0 %v9632_v19, %s5016_s18  ;;  %v1920_v53 = vsel %vm1908_vm8, %v1863_v12, %v9640_v23  ;;  %v1833_v54 = vsel %vm1794_vm6, %v1776_v37, %v9643_v8 }
 0x2fe   :  { %v3265_v1 = vcombine.low %v2355_v14, %v2364_v27  ;;  %v1069_v28 = vpop.permute.xlu1 %1068  ;;  %v1587_v11 = vpop.permute.xlu0 %1586  ;;  %v3272_v5 = vrot.slane %v3264_v9, %v7022_v40  ;;  %v2371_v59 = vrot.slane %v2357_v36, %v7022_v40  ;;  %v2372_v58 = vcombine.high %v2364_v27, %v2364_v27 }
 0x2ff   :  { %v7623_v2 = vsel %vm2079_vm11, %v2060_v50, %v1587_v11  ;;  %v1890_v33 = vsel %vm1851_vm7, %v1833_v54, %v9644_v20  ;;  %v9656_v20 = vld [vmem:[#allocation37_spill] sm:$0xff] }
 0x300   :  { %v3279_v0 = vrot.slane %v3265_v1, %v7022_v40  ;;  %1256 = vrot.lane.b32.xlu1 %v4957_v24, %s5014_s15  ;;  %v2810_v42 = vrot.slane %v7623_v2, %v7022_v40  ;;  %v3281_v48 = vcombine.low %v2372_v58, %v2371_v59  ;;  %v2373_v14 = vcombine.high %v2371_v59, %v2371_v59 }
 0x301   :  { %1202 = vrot.lane.b32.xlu0 %v4958_v15, %s5014_s15  ;;  %v1947_v27 = vsel %vm1908_vm8, %v1890_v33, %v1069_v28  ;;  %v2803_v62 = vcombine.high %v7623_v2, %v7623_v2  ;;  %v4962_v28 = vld [vmem:[%s8905_s0 + $0x1b8] sm:$0xff]  ;;  %v4963_v2 = vld [vmem:[%s8905_s0 + $0x60] sm:$0xff] }
 0x302   :  { %v1241_v44 = vpop.permute.xlu1 %1240  ;;  %v3280_v51 = vcombine.low %v3272_v5, %v3279_v0  ;;  %v2818_v4 = vcombine.high %v2810_v42, %v2810_v42  ;;  %v1187_v26 = vpop.permute.xlu0 %1186 }
 0x303   :  { %v1977_v45 = vsel %vm1965_vm9, %v1920_v53, %v1187_v26  ;;  %v2004_v1 = vsel %vm1965_vm9, %v1947_v27, %v1241_v44  ;;  %v2817_v44 = vrot.slane %v2803_v62, %v7022_v40  ;;  %v9648_v26 = vld [vmem:[#allocation171_spill] sm:$0xff] }
 0x304   :  { %1430 = vrot.lane.b32.xlu1 %v9634_v60, %s5017_s19  ;;  %4763 = vmatmul.mubr.msk.f32.gmra.mrb[16].mxu0 %vm3961_vm12, %v3280_v51  ;;  %v3673_v7 = vcombine.low %v2810_v42, %v2818_v4  ;;  %v9646_v42 = vld [vmem:[#allocation83_spill] sm:$0xff]  ;;  %v9647_v4 = vld [vmem:[#allocation26_spill] sm:$0xff] }
 0x305   :  { %1376 = vrot.lane.b32.xlu0 %v9636_v43, %s5017_s19  ;;  %4765 = vmatprep.mubr.msk.f32.mxu0 %vm5018_vm3, %v9539_v34  ;;  %v1693_v15 = vsel %vm1680_vm5, %v4963_v2, %v9646_v42  ;;  %v9649_v60 = vld [vmem:[#allocation11_spill] sm:$0xff] }
 0x306   :  { %v1415_v25 = vpop.permute.xlu1 %1414  ;;  %v3687_v47 = vrot.slane %v3673_v7, %v7022_v40  ;;  %v1361_v31 = vpop.permute.xlu0 %1360  ;;  %v1750_v17 = vsel %vm1737_vm4, %v1693_v15, %v9648_v26 }
 0x307   :  { %v2034_v39 = vsel %vm2022_vm10, %v1977_v45, %v1361_v31  ;;  %v2061_v11 = vsel %vm2022_vm10, %v2004_v1, %v1415_v25  ;;  %v1807_v6 = vsel %vm1794_vm6, %v1750_v17, %v9649_v60 }
 0x308   :  { %1550 = vrot.lane.b32.xlu1 %v9641_v55, %s5016_s18  ;;  %v3688_v10 = vcombine.low %v3680_v21, %v3687_v47  ;;  %v1864_v25 = vsel %vm1851_vm7, %v1807_v6, %v9650_v46  ;;  %v9652_v47 = vld [vmem:[#allocation100_spill] sm:$0xff]  ;;  %v4964_v55 = vld [vmem:[%s8905_s0 + $0x158] sm:$0xff] }
 0x309   :  { %1204 = vrot.lane.b32.xlu0 %v4961_v32, %s5014_s15  ;;  %v1921_v12 = vsel %vm1908_vm8, %v1864_v25, %v9651_v41  ;;  %v1720_v37 = vsel %vm1680_vm5, %v4964_v55, %v9653_v56  ;;  %v4965_v32 = vld [vmem:[%s8905_s0 + $0xc8] sm:$0xff]  ;;  %v9663_v6 = vld [vmem:[#allocation196_spill] sm:$0xff] }
 0x30a   :  { %v1535_v52 = vpop.permute.xlu1 %1534  ;;  %4835 = vmatmul.mubr.msk.f32.gmra.mrb[14].mxu1 %vm3961_vm12, %v3688_v10  ;;  %v1189_v35 = vpop.permute.xlu0 %1188  ;;  %v9654_v10 = vld [vmem:[#allocation193_spill] sm:$0xff]  ;;  %v9665_v46 = vld [vmem:[#allocation40_spill] sm:$0xff] }
 0x30b   :  { %v2091_v3 = vsel %vm2079_vm11, %v2034_v39, %v1535_v52  ;;  %4837 = vmatprep.mubr.msk.f32.mxu1 %vm5018_vm3, %v9539_v34  ;;  %v1978_v29 = vsel %vm1965_vm9, %v1921_v12, %v1189_v35  ;;  %v1777_v8 = vsel %vm1737_vm4, %v1720_v37, %v9654_v10  ;;  %v9655_v39 = vld [vmem:[#allocation49_spill] sm:$0xff]  ;;  %v9657_v35 = vld [vmem:[#allocation252_spill] sm:$0xff] }
 0x30c   :  { %v2381_v9 = vrot.slane %v2091_v3, %v7022_v40  ;;  %1086 = vrot.lane.b32.xlu1 %v9632_v19, %s5012_s4  ;;  %v3289_v19 = vrot.slane %v3281_v48, %v7022_v40  ;;  %v2374_v49 = vcombine.high %v2091_v3, %v2091_v3  ;;  %v1834_v33 = vsel %vm1794_vm6, %v1777_v8, %v9656_v20  ;;  %v9669_v37 = vld [vmem:[#allocation153_spill] sm:$0xff] }
 0x30d   :  { %1604 = vrot.lane.b32.xlu0 %v9645_v38, %s5016_s18  ;;  %v1891_v48 = vsel %vm1851_vm7, %v1834_v33, %v9657_v35  ;;  %v9671_v8 = vld [vmem:[#allocation97_spill] sm:$0xff] }
 0x30e   :  { %v3282_v57 = vcombine.low %v2373_v14, %v2381_v9  ;;  %v1071_v50 = vpop.permute.xlu1 %1070  ;;  %v1589_v5 = vpop.permute.xlu0 %1588  ;;  %v2388_v31 = vrot.slane %v2374_v49, %v7022_v40  ;;  %v2389_v22 = vcombine.high %v2381_v9, %v2381_v9 }
 0x30f   :  { %v2118_v24 = vsel %vm2079_vm11, %v2061_v11, %v1589_v5  ;;  %v1948_v62 = vsel %vm1908_vm8, %v1891_v48, %v1071_v50  ;;  %v4966_v11 = vld [vmem:[%s8905_s0 + $0x1c0] sm:$0xff]  ;;  %v4967_v5 = vld [vmem:[%s8905_s0 + $0x68] sm:$0xff] }
 0x310   :  { %v3296_v0 = vrot.slane %v3282_v57, %v7022_v40  ;;  %1258 = vrot.lane.b32.xlu1 %v4962_v28, %s5014_s15  ;;  %v2819_v51 = vcombine.high %v2118_v24, %v2118_v24  ;;  %v2826_v61 = vrot.slane %v2118_v24, %v7022_v40  ;;  %v3298_v14 = vcombine.low %v2389_v22, %v2388_v31  ;;  %v9659_v50 = vld [vmem:[#allocation82_spill] sm:$0xff] }
 0x311   :  { %1378 = vrot.lane.b32.xlu0 %v9647_v4, %s5017_s19 }
 0x312   :  { %v1243_v16 = vpop.permute.xlu1 %1242  ;;  %v3297_v36 = vcombine.low %v3289_v19, %v3296_v0  ;;  %v7712_v13 = vrot.slane %v2819_v51, %v7022_v40  ;;  %v2834_v7 = vcombine.high %v2826_v61, %v2826_v61  ;;  %v3689_v43 = vcombine.low %v2817_v44, %v2826_v61  ;;  %v1363_v18 = vpop.permute.xlu0 %1362  ;;  %v4968_v51 = vld [vmem:[%s8905_s0 + $0x160] sm:$0xff]  ;;  %v9660_v61 = vld [vmem:[#allocation136_spill] sm:$0xff] }
 0x313   :  { %v2035_v59 = vsel %vm2022_vm10, %v1978_v29, %v1363_v18  ;;  %v2005_v1 = vsel %vm1965_vm9, %v1948_v62, %v1243_v16  ;;  %v1694_v19 = vsel %vm1680_vm5, %v4967_v5, %v9659_v50  ;;  %v3306_v28 = vrot.slane %v3298_v14, %v7022_v40  ;;  %v9661_v16 = vld [vmem:[#allocation52_spill] sm:$0xff]  ;;  %v9667_v29 = vld [vmem:[#allocation255_spill] sm:$0xff] }
 0x314   :  { %1088 = vrot.lane.b32.xlu1 %v9645_v38, %s5012_s4  ;;  %4766 = vmatmul.mubr.msk.f32.gmra.mrb[18].mxu0 %vm3961_vm12, %v3297_v36  ;;  %v3690_v21 = vcombine.low %v2834_v7, %v7712_v13  ;;  %v3697_v23 = vrot.slane %v3689_v43, %v7022_v40  ;;  %v9658_v38 = vld [vmem:[#allocation146_spill] sm:$0xff]  ;;  %v1721_v4 = vsel %vm1680_vm5, %v4968_v51, %v9660_v61  ;;  %v9664_v43 = vld [vmem:[#allocation24_spill] sm:$0xff] }
 0x315   :  { %1552 = vrot.lane.b32.xlu0 %v9652_v47, %s5016_s18  ;;  %4768 = vmatprep.mubr.msk.f32.mxu0 %vm5018_vm3, %v9539_v34  ;;  %v2835_v26 = vcombine.high %v7712_v13, %v7712_v13  ;;  %v9662_v36 = vld [vmem:[#allocation170_spill] sm:$0xff]  ;;  %v1778_v7 = vsel %vm1737_vm4, %v1721_v4, %v9663_v6  ;;  %v9673_v61 = vld [vmem:[#allocation28_spill] sm:$0xff]  ;;  %v9674_v4 = vld [vmem:[#allocation173_spill] sm:$0xff] }
 0x316   :  { %v1073_v30 = vpop.permute.xlu1 %1072  ;;  %v3704_v53 = vrot.slane %v3690_v21, %v7022_v40  ;;  %v1537_v58 = vpop.permute.xlu0 %1536  ;;  %v1751_v60 = vsel %vm1737_vm4, %v1694_v19, %v9662_v36  ;;  %v1835_v25 = vsel %vm1794_vm6, %v1778_v7, %v9665_v46  ;;  %v9666_v47 = vld [vmem:[#allocation10_spill] sm:$0xff] }
 0x317   :  { %v2092_v45 = vsel %vm2079_vm11, %v2035_v59, %v1537_v58  ;;  %v1808_v31 = vsel %vm1794_vm6, %v1751_v60, %v9666_v47  ;;  %v1892_v22 = vsel %vm1851_vm7, %v1835_v25, %v9667_v29  ;;  %v9668_v59 = vld [vmem:[#allocation69_spill] sm:$0xff] }
 0x318   :  { %1206 = vrot.lane.b32.xlu1 %v4965_v32, %s5014_s15  ;;  %v2397_v54 = vrot.slane %v2092_v45, %v7022_v40  ;;  %v3705_v52 = vcombine.low %v3697_v23, %v3704_v53  ;;  %v2390_v2 = vcombine.high %v2092_v45, %v2092_v45  ;;  %v1865_v58 = vsel %vm1851_vm7, %v1808_v31, %v9668_v59  ;;  %v9670_v45 = vld [vmem:[#allocation271_spill] sm:$0xff] }
 0x319   :  { %1432 = vrot.lane.b32.xlu0 %v9655_v39, %s5017_s19  ;;  %v1949_v55 = vsel %vm1908_vm8, %v1892_v22, %v1073_v30  ;;  %v1922_v32 = vsel %vm1908_vm8, %v1865_v58, %v9670_v45  ;;  %v4972_v58 = vld [vmem:[%s8905_s0 + $0xd8] sm:$0xff]  ;;  %v9679_v45 = vld [vmem:[#allocation51_spill] sm:$0xff] }
 0x31a   :  { %v1191_v3 = vpop.permute.xlu1 %1190  ;;  %v2405_v9 = vcombine.high %v2397_v54, %v2397_v54  ;;  %4838 = vmatmul.mubr.msk.f32.gmra.mrb[16].mxu1 %vm3961_vm12, %v3705_v52  ;;  %v1417_v27 = vpop.permute.xlu0 %1416  ;;  %v2404_v23 = vrot.slane %v2390_v2, %v7022_v40  ;;  %v4970_v2 = vld [vmem:[%s8905_s0 + $0x1c8] sm:$0xff] }
 0x31b   :  { %4840 = vmatprep.mubr.msk.f32.mxu1 %vm5018_vm3, %v9539_v34  ;;  %v2062_v0 = vsel %vm2022_vm10, %v2005_v1, %v1417_v27 }
 0x31c   :  { %1606 = vrot.lane.b32.xlu1 %v9658_v38, %s5016_s18  ;;  %v3299_v57 = vcombine.low %v2397_v54, %v2405_v9  ;;  %v1979_v54 = vsel %vm1965_vm9, %v1922_v32, %v1191_v3  ;;  %v2406_v33 = vcombine.high %v2404_v23, %v2404_v23 }
 0x31d   :  { %1260 = vrot.lane.b32.xlu0 %v4966_v11, %s5014_s15 }
 0x31e   :  { %v1591_v24 = vpop.permute.xlu1 %1590  ;;  %v3313_v42 = vrot.slane %v3299_v57, %v7022_v40  ;;  %v1245_v44 = vpop.permute.xlu0 %1244  ;;  %v4969_v57 = vld [vmem:[%s8905_s0 + $0xd0] sm:$0xff]  ;;  %v3315_v19 = vcombine.low %v2404_v23, %v2406_v33  ;;  %v9681_v33 = vld [vmem:[#allocation195_spill] sm:$0xff] }
 0x31f   :  { %v2119_v15 = vsel %vm2079_vm11, %v2062_v0, %v1591_v24  ;;  %v2006_v10 = vsel %vm1965_vm9, %v1949_v55, %v1245_v44 }
 0x320   :  { %v2836_v17 = vcombine.high %v2119_v15, %v2119_v15  ;;  %v2843_v49 = vrot.slane %v2119_v15, %v7022_v40  ;;  %1434 = vrot.lane.b32.xlu1 %v9661_v16, %s5017_s19  ;;  %v3314_v18 = vcombine.low %v3306_v28, %v3313_v42  ;;  %v4971_v42 = vld [vmem:[%s8905_s0 + $0x70] sm:$0xff]  ;;  %v9672_v15 = vld [vmem:[#allocation87_spill] sm:$0xff]  ;;  %v9675_v16 = vld [vmem:[#allocation13_spill] sm:$0xff]  ;;  %v3323_v60 = vrot.slane %v3315_v19, %v7022_v40 }
 0x321   :  { %1380 = vrot.lane.b32.xlu0 %v9664_v43, %s5017_s19  ;;  %v1695_v44 = vsel %vm1680_vm5, %v4971_v42, %v9672_v15  ;;  %v9676_v43 = vld [vmem:[#allocation76_spill] sm:$0xff]  ;;  %v9686_v42 = vld [vmem:[#allocation54_spill] sm:$0xff] }
 0x322   :  { %v2850_v13 = vrot.slane %v2836_v17, %v7022_v40  ;;  %v2851_v41 = vcombine.high %v2843_v49, %v2843_v49  ;;  %v3706_v12 = vcombine.low %v2835_v26, %v2843_v49  ;;  %v1419_v21 = vpop.permute.xlu1 %1418  ;;  %4769 = vmatmul.mubr.msk.f32.gmra.mrb[20].mxu0 %vm3961_vm12, %v3314_v18  ;;  %v1365_v53 = vpop.permute.xlu0 %1364  ;;  %v1752_v26 = vsel %vm1737_vm4, %v1695_v44, %v9674_v4  ;;  %v9687_v15 = vld [vmem:[#allocation172_spill] sm:$0xff] }
 0x323   :  { %4771 = vmatprep.mubr.msk.f32.mxu0 %vm5018_vm3, %v9539_v34  ;;  %v2063_v52 = vsel %vm2022_vm10, %v2006_v10, %v1419_v21  ;;  %v2036_v35 = vsel %vm2022_vm10, %v1979_v54, %v1365_v53  ;;  %v1809_v36 = vsel %vm1794_vm6, %v1752_v26, %v9675_v16  ;;  %v9678_v21 = vld [vmem:[#allocation104_spill] sm:$0xff]  ;;  %v4973_v10 = vld [vmem:[%s8905_s0 + $0x168] sm:$0xff] }
 0x324   :  { %v3707_v56 = vcombine.low %v2851_v41, %v2850_v13  ;;  %1608 = vrot.lane.b32.xlu1 %v9669_v37, %s5016_s18  ;;  %v3714_v39 = vrot.slane %v3706_v12, %v7022_v40  ;;  %v1866_v18 = vsel %vm1851_vm7, %v1809_v36, %v9676_v43  ;;  %v9677_v13 = vld [vmem:[#allocation274_spill] sm:$0xff]  ;;  %v9689_v4 = vld [vmem:[#allocation12_spill] sm:$0xff]  ;;  %v9690_v36 = vld [vmem:[#allocation73_spill] sm:$0xff] }
 0x325   :  { %1554 = vrot.lane.b32.xlu0 %v9671_v8, %s5016_s18  ;;  %v1923_v41 = vsel %vm1908_vm8, %v1866_v18, %v9677_v13  ;;  %v9680_v8 = vld [vmem:[#allocation135_spill] sm:$0xff]  ;;  %v9692_v43 = vld [vmem:[#allocation101_spill] sm:$0xff]  ;;  %v4976_v18 = vld [vmem:[%s8905_s0 + $0x170] sm:$0xff] }
 0x326   :  { %v3721_v30 = vrot.slane %v3707_v56, %v7022_v40  ;;  %v1593_v20 = vpop.permute.xlu1 %1592  ;;  %v1539_v14 = vpop.permute.xlu0 %1538  ;;  %v1722_v54 = vsel %vm1680_vm5, %v4973_v10, %v9680_v8 }
 0x327   :  { %v2120_v48 = vsel %vm2079_vm11, %v2063_v52, %v1593_v20  ;;  %v2093_v62 = vsel %vm2079_vm11, %v2036_v35, %v1539_v14  ;;  %v1779_v35 = vsel %vm1737_vm4, %v1722_v54, %v9681_v33  ;;  %v9683_v14 = vld [vmem:[#allocation39_spill] sm:$0xff] }
 0x328   :  { %v2852_v9 = vcombine.high %v2120_v48, %v2120_v48  ;;  %v2859_v27 = vrot.slane %v2120_v48, %v7022_v40  ;;  %1090 = vrot.lane.b32.xlu1 %v9658_v38, %s5012_s4  ;;  %v3722_v3 = vcombine.low %v3714_v39, %v3721_v30  ;;  %v2414_v1 = vrot.slane %v2093_v62, %v7022_v40  ;;  %v9682_v48 = vld [vmem:[#allocation150_spill] sm:$0xff] }
 0x329   :  { %1208 = vrot.lane.b32.xlu0 %v4969_v57, %s5014_s15  ;;  %v2407_v12 = vcombine.high %v2093_v62, %v2093_v62  ;;  %v4974_v62 = vld [vmem:[%s8905_s0 + $0x1d0] sm:$0xff] }
 0x32a   :  { %v2866_v11 = vrot.slane %v2852_v9, %v7022_v40  ;;  %v2867_v5 = vcombine.high %v2859_v27, %v2859_v27  ;;  %v1075_v50 = vpop.permute.xlu1 %1074  ;;  %4841 = vmatmul.mubr.msk.f32.gmra.mrb[18].mxu1 %vm3961_vm12, %v3722_v3  ;;  %v2422_v0 = vcombine.high %v2414_v1, %v2414_v1  ;;  %v1193_v24 = vpop.permute.xlu0 %1192  ;;  %v1836_v9 = vsel %vm1794_vm6, %v1779_v35, %v9683_v14  ;;  %v9684_v3 = vld [vmem:[#allocation254_spill] sm:$0xff] }
 0x32b   :  { %4843 = vmatprep.mubr.msk.f32.mxu1 %vm5018_vm3, %v9539_v34  ;;  %v1980_v31 = vsel %vm1965_vm9, %v1923_v41, %v1193_v24  ;;  %v2421_v55 = vrot.slane %v2407_v12, %v7022_v40  ;;  %v4975_v24 = vld [vmem:[%s8905_s0 + $0x78] sm:$0xff]  ;;  %v4977_v12 = vld [vmem:[%s8905_s0 + $0xe0] sm:$0xff] }
 0x32c   :  { %v2868_v38 = vcombine.high %v2866_v11, %v2866_v11  ;;  %v3723_v28 = vcombine.low %v2859_v27, %v2867_v5  ;;  %1262 = vrot.lane.b32.xlu1 %v4970_v2, %s5014_s15  ;;  %v3316_v51 = vcombine.low %v2414_v1, %v2422_v0  ;;  %v1893_v1 = vsel %vm1851_vm7, %v1836_v9, %v9684_v3  ;;  %v9698_v3 = vld [vmem:[#allocation91_spill] sm:$0xff] }
 0x32d   :  { %1382 = vrot.lane.b32.xlu0 %v9673_v61, %s5017_s19 }
 0x32e   :  { %v3724_v17 = vcombine.low %v2866_v11, %v2868_v38  ;;  %v1247_v49 = vpop.permute.xlu1 %1246  ;;  %v3330_v6 = vrot.slane %v3316_v51, %v7022_v40  ;;  %v3731_v46 = vrot.slane %v3723_v28, %v7022_v40  ;;  %v1950_v11 = vsel %vm1908_vm8, %v1893_v1, %v1075_v50  ;;  %v9685_v38 = vld [vmem:[#allocation86_spill] sm:$0xff]  ;;  %v9688_v51 = vld [vmem:[#allocation27_spill] sm:$0xff] }
 0x32f   :  { %v1367_v7 = vpop.permute.xlu0 %1366  ;;  %v1696_v28 = vsel %vm1680_vm5, %v4975_v24, %v9685_v38  ;;  %v2007_v2 = vsel %vm1965_vm9, %v1950_v11, %v1247_v49 }
 0x330   :  { %v3738_v25 = vrot.slane %v3724_v17, %v7022_v40  ;;  %1092 = vrot.lane.b32.xlu1 %v9669_v37, %s5012_s4  ;;  %v3331_v47 = vcombine.low %v3323_v60, %v3330_v6  ;;  %v2037_v23 = vsel %vm2022_vm10, %v1980_v31, %v1367_v7  ;;  %v1753_v50 = vsel %vm1737_vm4, %v1696_v28, %v9687_v15  ;;  %v9691_v6 = vld [vmem:[#allocation273_spill] sm:$0xff] }
 0x331   :  { %1556 = vrot.lane.b32.xlu0 %v9678_v21, %s5016_s18  ;;  %v1810_v26 = vsel %vm1794_vm6, %v1753_v50, %v9689_v4  ;;  %v9694_v21 = vld [vmem:[#allocation198_spill] sm:$0xff] }
 0x332   :  { %v7854_v29 = vpop.permute.xlu1 %1076  ;;  %v3739_v22 = vcombine.low %v3731_v46, %v3738_v25  ;;  %4772 = vmatmul.mubr.msk.f32.gmra.mrb[22].mxu0 %vm3961_vm12, %v3331_v47  ;;  %v1867_v49 = vsel %vm1851_vm7, %v1810_v26, %v9690_v36  ;;  %v9693_v46 = vld [vmem:[#allocation140_spill] sm:$0xff] }
 0x333   :  { %v1541_v53 = vpop.permute.xlu0 %1540  ;;  %4774 = vmatprep.mubr.msk.f32.mxu0 %vm5018_vm3, %v9539_v34  ;;  %v1924_v7 = vsel %vm1908_vm8, %v1867_v49, %v9691_v6  ;;  %v1723_v25 = vsel %vm1680_vm5, %v4976_v18, %v9693_v46  ;;  %v9703_v26 = vld [vmem:[#allocation276_spill] sm:$0xff]  ;;  %v9704_v49 = vld [vmem:[#allocation246_spill] sm:$0xff]  ;;  %v4980_v46 = vld [vmem:[%s8905_s0 + $0x178] sm:$0xff] }
 0x334   :  { %v2094_v59 = vsel %vm2079_vm11, %v2037_v23, %v1541_v53  ;;  %1210 = vrot.lane.b32.xlu1 %v4972_v58, %s5014_s15  ;;  %4844 = vmatmul.mubr.msk.f32.gmra.mrb[20].mxu1 %vm3961_vm12, %v3739_v22  ;;  %v1780_v47 = vsel %vm1737_vm4, %v1723_v25, %v9694_v21  ;;  %v9695_v23 = vld [vmem:[#allocation223_spill] sm:$0xff]  ;;  %v4981_v21 = vld [vmem:[%s8905_s0 + $0x1e0] sm:$0xff] }
 0x335   :  { %v2423_v56 = vcombine.high %v2094_v59, %v2094_v59  ;;  %v2430_v37 = vrot.slane %v2094_v59, %v7022_v40  ;;  %1436 = vrot.lane.b32.xlu0 %v9679_v45, %s5017_s19  ;;  %4846 = vmatprep.mubr.msk.f32.mxu1 %vm5018_vm3, %v9539_v34  ;;  %v1837_v53 = vsel %vm1794_vm6, %v1780_v47, %v9695_v23  ;;  %v9705_v25 = vld [vmem:[#allocation139_spill] sm:$0xff] }
 0x336   :  { %v1195_v32 = vpop.permute.xlu1 %1194  ;;  %v8000_v47 = vld [vmem:[%s8905_s0 + $0x1e8] sm:$0xff] }
 0x337   :  { %v2437_v39 = vrot.slane %v2423_v56, %v7022_v40  ;;  %v2438_v30 = vcombine.high %v2430_v37, %v2430_v37  ;;  %v3332_v52 = vcombine.low %v2421_v55, %v2430_v37  ;;  %v1421_v20 = vpop.permute.xlu0 %1420  ;;  %v1981_v13 = vsel %vm1965_vm9, %v1924_v7, %v1195_v32  ;;  %v9696_v55 = vld [vmem:[#allocation257_spill] sm:$0xff] }
 0x338   :  { %1610 = vrot.lane.b32.xlu1 %v9682_v48, %s5016_s18  ;;  %v2064_v44 = vsel %vm2022_vm10, %v2007_v2, %v1421_v20  ;;  %v1894_v56 = vsel %vm1851_vm7, %v1837_v53, %v9696_v55 }
 0x339   :  { %v3333_v27 = vcombine.low %v2438_v30, %v2437_v39  ;;  %1264 = vrot.lane.b32.xlu0 %v4974_v62, %s5014_s15  ;;  %v3340_v5 = vrot.slane %v3332_v52, %v7022_v40  ;;  %v2439_v37 = vcombine.high %v2437_v39, %v2437_v39  ;;  %v1951_v10 = vsel %vm1908_vm8, %v1894_v56, %v7854_v29  ;;  %v9697_v30 = vld [vmem:[#allocation157_spill] sm:$0xff]  ;;  %v4979_v62 = vld [vmem:[%s8905_s0 + $0x80] sm:$0xff] }
 0x33a   :  { %v1595_v57 = vpop.permute.xlu1 %1594  ;;  %v4978_v29 = vld [vmem:[%s8905_s0 + $0x1d8] sm:$0xff]  ;;  %v1697_v1 = vsel %vm1680_vm5, %v4979_v62, %v9698_v3  ;;  %v9713_v3 = vld [vmem:[#allocation154_spill] sm:$0xff] }
 0x33b   :  { %v3347_v19 = vrot.slane %v3333_v27, %v7022_v40  ;;  %v1249_v0 = vpop.permute.xlu0 %1248  ;;  %v2121_v17 = vsel %vm2079_vm11, %v2064_v44, %v1595_v57 }
 0x33c   :  { %1438 = vrot.lane.b32.xlu1 %v9686_v42, %s5017_s19  ;;  %v2876_v41 = vrot.slane %v2121_v17, %v7022_v40  ;;  %v2869_v8 = vcombine.high %v2121_v17, %v2121_v17  ;;  %v2008_v52 = vsel %vm1965_vm9, %v1951_v10, %v1249_v0  ;;  %v9700_v0 = vld [vmem:[#allocation175_spill] sm:$0xff] }
 0x33d   :  { %1384 = vrot.lane.b32.xlu0 %v9688_v51, %s5017_s19  ;;  %v3348_v61 = vcombine.low %v3340_v5, %v3347_v19  ;;  %v9699_v19 = vld [vmem:[#allocation218_spill] sm:$0xff]  ;;  %v1754_v24 = vsel %vm1737_vm4, %v1697_v1, %v9700_v0  ;;  %v9701_v42 = vld [vmem:[#allocation15_spill] sm:$0xff] }
 0x33e   :  { %v1423_v16 = vpop.permute.xlu1 %1422  ;;  %v2884_v54 = vcombine.high %v2876_v41, %v2876_v41  ;;  %v2883_v57 = vrot.slane %v2869_v8, %v7022_v40  ;;  %v1811_v15 = vsel %vm1794_vm6, %v1754_v24, %v9701_v42  ;;  %v9702_v51 = vld [vmem:[#allocation238_spill] sm:$0xff] }
 0x33f   :  { %4775 = vmatmul.mubr.msk.f32.gmra.mrb[24].mxu0 %vm3961_vm12, %v3348_v61  ;;  %v1369_v60 = vpop.permute.xlu0 %1368  ;;  %v2065_v14 = vsel %vm2022_vm10, %v2008_v52, %v1423_v16  ;;  %v1868_v61 = vsel %vm1851_vm7, %v1811_v15, %v9702_v51  ;;  %v8044_v24 = vld [vmem:[%s8907_s2] ss:$0 sm:$0xff] }
 0x340   :  { %1558 = vrot.lane.b32.xlu1 %v9692_v43, %s5016_s18  ;;  %4777 = vmatprep.mubr.msk.f32.mxu0 %vm5018_vm3, %v9539_v34  ;;  %v2038_v31 = vsel %vm2022_vm10, %v1981_v13, %v1369_v60  ;;  %v3740_v11 = vcombine.low %v2876_v41, %v2884_v54  ;;  %v1925_v17 = vsel %vm1908_vm8, %v1868_v61, %v9703_v26  ;;  %v4983_v54 = vld [vmem:[%s8905_s0 + $0x180] sm:$0xff] }
 0x341   :  { %1212 = vrot.lane.b32.xlu0 %v4977_v12, %s5014_s15  ;;  %v1724_v13 = vsel %vm1680_vm5, %v4980_v46, %v9705_v25 }
 0x342   :  { %v1543_v22 = vpop.permute.xlu1 %1542  ;;  %v3748_v16 = vrot.slane %v3740_v11, %v7022_v40 }
 0x343   :  { %v2095_v59 = vsel %vm2079_vm11, %v2038_v31, %v1543_v22  ;;  %v1197_v58 = vpop.permute.xlu0 %1196  ;;  %v8003_v31 = vrot.slane %v8000_v47, 2  ;;  %v989_v22 = vrot.slane %v4981_v21, 2 }
 0x344   :  { %v2440_v45 = vcombine.high %v2095_v59, %v2095_v59  ;;  %v2447_v32 = vrot.slane %v2095_v59, %v7022_v40  ;;  %1094 = vrot.lane.b32.xlu1 %v9682_v48, %s5012_s4  ;;  %v1982_v60 = vsel %vm1965_vm9, %v1925_v17, %v1197_v58  ;;  %v9706_v59 = vld [vmem:[#allocation53_spill] sm:$0xff] }
 0x345   :  { %1612 = vrot.lane.b32.xlu0 %v9697_v30, %s5016_s18  ;;  %v9707_v58 = vld [vmem:[#allocation197_spill] sm:$0xff]  ;;  %v8036_v1 = vsel %vm387_vm1, %v989_v22, %v8003_v31 }
 0x346   :  { %v2454_v20 = vrot.slane %v2440_v45, %v7022_v40  ;;  %v2455_v33 = vcombine.high %v2447_v32, %v2447_v32  ;;  %v3349_v39 = vcombine.low %v2439_v37, %v2447_v32  ;;  %v7946_v35 = vpop.permute.xlu1 %1078  ;;  %v1781_v55 = vsel %vm1737_vm4, %v1724_v13, %v9707_v58  ;;  %v9708_v37 = vld [vmem:[#allocation42_spill] sm:$0xff] }
 0x347   :  { %v1597_v9 = vpop.permute.xlu0 %1596  ;;  %v1838_v45 = vsel %vm1794_vm6, %v1781_v55, %v9708_v37 }
 0x348   :  { %v3350_v48 = vcombine.low %v2455_v33, %v2454_v20  ;;  %v2122_v27 = vsel %vm2079_vm11, %v2065_v14, %v1597_v9  ;;  %1266 = vrot.lane.b32.xlu1 %v4978_v29, %s5014_s15  ;;  %v3357_v38 = vrot.slane %v3349_v39, %v7022_v40  ;;  %v9710_v20 = vld [vmem:[#allocation256_spill] sm:$0xff]  ;;  %v9711_v9 = vld [vmem:[#allocation233_spill] sm:$0xff] }
 0x349   :  { %v7961_v5 = vrot.slane %v2122_v27, %v7022_v40  ;;  %1386 = vrot.lane.b32.xlu0 %v9699_v19, %s5017_s19  ;;  %v2885_v41 = vcombine.high %v2122_v27, %v2122_v27  ;;  %v1895_v33 = vsel %vm1851_vm7, %v1838_v45, %v9710_v20  ;;  %v9717_v20 = vld [vmem:[#allocation90_spill] sm:$0xff] }
 0x34a   :  { %v3364_v28 = vrot.slane %v3350_v48, %v7022_v40  ;;  %v1251_v2 = vpop.permute.xlu1 %1250  ;;  %v9712_v48 = vld [vmem:[#allocation200_spill] sm:$0xff]  ;;  %v1952_v29 = vsel %vm1908_vm8, %v1895_v33, %v7946_v35  ;;  %v9715_v35 = vld [vmem:[#allocation258_spill] sm:$0xff] }
 0x34b   :  { %v3741_v50 = vcombine.low %v2883_v57, %v7961_v5  ;;  %v1371_v44 = vpop.permute.xlu0 %1370  ;;  %v2899_v39 = vrot.slane %v2885_v41, %v7022_v40  ;;  %v2900_v14 = vcombine.high %v7961_v5, %v7961_v5  ;;  %v9714_v57 = vld [vmem:[#allocation225_spill] sm:$0xff]  ;;  %v2009_v5 = vsel %vm1965_vm9, %v1952_v29, %v1251_v2 }
 0x34c   :  { %1096 = vrot.lane.b32.xlu1 %v9697_v30, %s5012_s4  ;;  %v3365_v4 = vcombine.low %v3357_v38, %v3364_v28  ;;  %v2039_v7 = vsel %vm2022_vm10, %v1982_v60, %v1371_v44  ;;  %v9709_v30 = vld [vmem:[#allocation144_spill] sm:$0xff] }
 0x34d   :  { %v3755_v36 = vrot.slane %v3741_v50, %v7022_v40  ;;  %1560 = vrot.lane.b32.xlu0 %v9704_v49, %s5016_s18  ;;  %v1725_v52 = vsel %vm1680_vm5, %v4983_v54, %v9709_v30  ;;  %v3757_v50 = vcombine.low %v2900_v14, %v2899_v39  ;;  %v2901_v51 = vcombine.high %v2899_v39, %v2899_v39  ;;  %v4984_v49 = vld [vmem:[%s8905_s0 + $0xe8] sm:$0xff] }
 0x34e   :  { %v1081_v6 = vpop.permute.xlu1 %1080  ;;  %4778 = vmatmul.mubr.msk.f32.gmra.mrb[26].mxu0 %vm3961_vm12, %v3365_v4  ;;  %v1782_v27 = vsel %vm1737_vm4, %v1725_v52, %v9712_v48  ;;  %v44_v4 = vld [vmem:[%s8905_s0 + $0xf0] sm:$0xff]  ;;  %v4985_v52 = vld [vmem:[%s8905_s0 + $0x88] sm:$0xff]  ;;  %v9718_v48 = vld [vmem:[#allocation174_spill] sm:$0xff] }
 0x34f   :  { %v1545_v43 = vpop.permute.xlu0 %1544  ;;  %v3756_v18 = vcombine.low %v3748_v16, %v3755_v36  ;;  %4780 = vmatprep.mubr.msk.f32.mxu0 %vm5018_vm3, %v9539_v34  ;;  %v1839_v11 = vsel %vm1794_vm6, %v1782_v27, %v9714_v57  ;;  %v3765_v58 = vrot.slane %v3757_v50, %v7022_v40  ;;  %v1698_v33 = vsel %vm1680_vm5, %v4985_v52, %v9717_v20  ;;  %v9723_v50 = vld [vmem:[#allocation275_spill] sm:$0xff] }
 0x350   :  { %v2096_v12 = vsel %vm2079_vm11, %v2039_v7, %v1545_v43  ;;  %1268 = vrot.lane.b32.xlu1 %v4981_v21, %s5014_s15  ;;  %v1896_v38 = vsel %vm1851_vm7, %v1839_v11, %v9715_v35  ;;  %v1506_v39 = vrot.slane %v44_v4, 2  ;;  %v4986_v11 = vld [vmem:[%s8905_s0 + $0x90] sm:$0xff] }
 0x351   :  { %v2456_v23 = vcombine.high %v2096_v12, %v2096_v12  ;;  %v2463_v53 = vrot.slane %v2096_v12, %v7022_v40  ;;  %1440 = vrot.lane.b32.xlu0 %v9706_v59, %s5017_s19  ;;  %4847 = vmatmul.mubr.msk.f32.gmra.mrb[22].mxu1 %vm3961_vm12, %v3756_v18  ;;  %v1953_v44 = vsel %vm1908_vm8, %v1896_v38, %v1081_v6  ;;  %v8068_v18 = vld [vmem:[%s8905_s0 + $0xf8] sm:$0xff]  ;;  %v1332_v12 = vrot.slane %v44_v4, 1 }
 0x352   :  { %v1253_v56 = vpop.permute.xlu1 %1252  ;;  %4849 = vmatprep.mubr.msk.f32.mxu1 %vm5018_vm3, %v9539_v34  ;;  %v1333_v37 = vrot.slane %v8068_v18, 1 }
 0x353   :  { %v2470_v32 = vrot.slane %v2456_v23, %v7022_v40  ;;  %v2471_v10 = vcombine.high %v2463_v53, %v2463_v53  ;;  %v1425_v8 = vpop.permute.xlu0 %1424  ;;  %v2010_v7 = vsel %vm1965_vm9, %v1953_v44, %v1253_v56 }
 0x354   :  { %1442 = vrot.lane.b32.xlu1 %v9711_v9, %s5017_s19  ;;  %v2066_v42 = vsel %vm2022_vm10, %v2009_v5, %v1425_v8  ;;  %v1334_v14 = vsel %vm134_vm0, %v1332_v12, %v1333_v37  ;;  %v1507_v9 = vrot.slane %v8068_v18, 2  ;;  %v9720_v5 = vld [vmem:[#allocation95_spill] sm:$0xff]  ;;  %v9729_v12 = vld [vmem:[#allocation277_spill] sm:$0xff] }
 0x355   :  { %v2472_v62 = vcombine.high %v2470_v32, %v2470_v32  ;;  %1614 = vrot.lane.b32.xlu0 %v9713_v3, %s5016_s18  ;;  %v3366_v19 = vcombine.low %v2463_v53, %v2471_v10  ;;  %v9716_v53 = vld [vmem:[#allocation215_spill] sm:$0xff] }
 0x356   :  { %v1427_v0 = vpop.permute.xlu1 %1426 }
 0x357   :  { %v3367_v28 = vcombine.low %v2470_v32, %v2472_v62  ;;  %v1599_v15 = vpop.permute.xlu0 %1598  ;;  %v3374_v6 = vrot.slane %v3366_v19, %v7022_v40  ;;  %v2067_v46 = vsel %vm2022_vm10, %v2010_v7, %v1427_v0  ;;  %v9719_v62 = vld [vmem:[#allocation14_spill] sm:$0xff]  ;;  %v1699_v19 = vsel %vm1680_vm5, %v4986_v11, %v9720_v5  ;;  %v9721_v0 = vld [vmem:[#allocation80_spill] sm:$0xff] }
 0x358   :  { %v2123_v2 = vsel %vm2079_vm11, %v2066_v42, %v1599_v15  ;;  %1616 = vrot.lane.b32.xlu1 %v8036_v1, %s5016_s18  ;;  %v4130_v61 = vpop.f32.mrb[0].mxu0  ;;  %v9722_v42 = vld [vmem:[#allocation177_spill] sm:$0xff] }
 0x359   :  { %v3381_v26 = vrot.slane %v3367_v28, %v7022_v40  ;;  %v2902_v17 = vcombine.high %v2123_v2, %v2123_v2  ;;  %v2909_v16 = vrot.slane %v2123_v2, %v7022_v40  ;;  %v4131_v36 = vadd.f32 %v8044_v24, %v4130_v61  ;;  %1214 = vrot.lane.b32.xlu0 %v4984_v49, %s5014_s15  ;;  %v4740_v60 = vpop.f32.mrb[1].mxu0  ;;  %v9725_v61 = vld [vmem:[#allocation212_spill] sm:$0xff]  ;;  %v9726_v49 = vld [vmem:[#allocation143_spill] sm:$0xff] }
 0x35a   :  { %v1601_v43 = vpop.permute.xlu1 %1600  ;;  %v1756_v15 = vsel %vm1737_vm4, %v1699_v19, %v9722_v42  ;;  %v1508_v2 = vsel %vm387_vm1, %v1506_v39, %v1507_v9 }
 0x35b   :  { %v3758_v25 = vcombine.low %v2901_v51, %v2909_v16  ;;  %v4423_v13 = vcombine.high %v4131_v36, %v4131_v36  ;;  %v1199_v41 = vpop.permute.xlu0 %1198  ;;  %v2916_v21 = vrot.slane %v2902_v17, %v7022_v40  ;;  %v2917_v22 = vcombine.high %v2909_v16, %v2909_v16  ;;  %v9724_v51 = vld [vmem:[#allocation243_spill] sm:$0xff] }
 0x35c   :  { %v8073_v23 = vsel %vm2079_vm11, %v2067_v46, %v1601_v43  ;;  %1388 = vrot.lane.b32.xlu1 %v9716_v53, %s5017_s19  ;;  %v3382_v59 = vcombine.low %v3374_v6, %v3381_v26  ;;  %v9727_v6 = vld [vmem:[#allocation240_spill] sm:$0xff] }
 0x35d   :  { %v3772_v55 = vrot.slane %v3758_v25, %v7022_v40  ;;  %v4473_v56 = vcombine.low %v4131_v36, %v4423_v13  ;;  %1098 = vrot.lane.b32.xlu0 %v9713_v3, %s5012_s4  ;;  %v2925_v45 = vrot.slane %v8073_v23, %v7022_v40  ;;  %v3774_v54 = vcombine.low %v2917_v22, %v2916_v21  ;;  %v4987_v36 = vld [vmem:[%s8905_s0 + $0x188] sm:$0xff] }
 0x35e   :  { %4781 = vmatmul.mubr.msk.f32.gmra.mrb[28].mxu0 %vm3961_vm12, %v3382_v59  ;;  %v1373_v32 = vpop.permute.xlu1 %1372  ;;  %v1726_v60 = vsel %vm1680_vm5, %v4987_v36, %v9726_v49  ;;  %v2918_v43 = vcombine.high %v8073_v23, %v8073_v23  ;;  %v9728_v13 = vld [vmem:[#allocation199_spill] sm:$0xff] }
 0x35f   :  { %4569 = vst [vmem:[%s8908_s3] sm:$0xff] %v4473_v56  ;;  %v8088_v10 = vpop.permute.xlu0 %1082  ;;  %v3773_v8 = vcombine.low %v3765_v58, %v3772_v55  ;;  %4783 = vmatprep.mubr.msk.f32.mxu0 %vm5018_vm3, %v9539_v34  ;;  %v2933_v30 = vcombine.high %v2925_v45, %v2925_v45  ;;  %v3782_v38 = vrot.slane %v3774_v54, %v7022_v40  ;;  %v9730_v58 = vld [vmem:[#allocation230_spill] sm:$0xff]  ;;  %v76_v55 = vld [vmem:[%s8905_s0 + $0x1f0] sm:$0xff]  ;;  %v8160_v56 = vld [vmem:[%s8905_s0 + $0x1f8] sm:$0xff] }
 0x360   :  { %1270 = vrot.lane.b32.xlu1 %v8000_v47, %s5014_s15  ;;  %v1755_v47 = vsel %vm1737_vm4, %v1698_v33, %v9718_v48  ;;  %v2932_v20 = vrot.slane %v2918_v43, %v7022_v40  ;;  %v9733_v43 = vld [vmem:[#allocation94_spill] sm:$0xff] }
 0x361   :  { %1216 = vrot.lane.b32.xlu0 %v44_v4, %s5014_s15  ;;  %4850 = vmatmul.mubr.msk.f32.gmra.mrb[24].mxu1 %vm3961_vm12, %v3773_v8  ;;  %v3775_v27 = vcombine.low %v2925_v45, %v2933_v30  ;;  %v1812_v3 = vsel %vm1794_vm6, %v1755_v47, %v9719_v62  ;;  %v1813_v4 = vsel %vm1794_vm6, %v1756_v15, %v9725_v61  ;;  %v9731_v45 = vld [vmem:[#allocation224_spill] sm:$0xff]  ;;  %v9732_v30 = vld [vmem:[#allocation110_spill] sm:$0xff]  ;;  %v1335_v62 = vrot.slane %v76_v55, 1 }
 0x362   :  { %v1255_v29 = vpop.permute.xlu1 %1254  ;;  %4852 = vmatprep.mubr.msk.f32.mxu1 %vm5018_vm3, %v9539_v34  ;;  %v1869_v35 = vsel %vm1851_vm7, %v1812_v3, %v9721_v0  ;;  %v1870_v7 = vsel %vm1851_vm7, %v1813_v4, %v9727_v6  ;;  %v1336_v3 = vrot.slane %v8160_v56, 1  ;;  %v2934_v42 = vcombine.high %v2932_v20, %v2932_v20 }
 0x363   :  { %v1201_v57 = vpop.permute.xlu0 %1200  ;;  %v3789_v28 = vrot.slane %v3775_v27, %v7022_v40  ;;  %v1926_v44 = vsel %vm1908_vm8, %v1869_v35, %v9723_v50  ;;  %v1927_v21 = vsel %vm1908_vm8, %v1870_v7, %v9729_v12  ;;  %v4988_v7 = vld [vmem:[%s8905_s0 + $0x98] sm:$0xff] }
 0x364   :  { %1390 = vrot.lane.b32.xlu1 %v1334_v14, %s5017_s19  ;;  %v1983_v26 = vsel %vm1965_vm9, %v1926_v44, %v1199_v41  ;;  %v1783_v41 = vsel %vm1737_vm4, %v1726_v60, %v9728_v13  ;;  %v1984_v53 = vsel %vm1965_vm9, %v1927_v21, %v1201_v57  ;;  %v3791_v49 = vcombine.low %v2932_v20, %v2934_v42  ;;  %v9734_v13 = vld [vmem:[#allocation176_spill] sm:$0xff] }
 0x365   :  { %1562 = vrot.lane.b32.xlu0 %v9724_v51, %s5016_s18  ;;  %v3790_v16 = vcombine.low %v3782_v38, %v3789_v28  ;;  %v2040_v46 = vsel %vm2022_vm10, %v1983_v26, %v1373_v32  ;;  %v1840_v32 = vsel %vm1794_vm6, %v1783_v41, %v9731_v45  ;;  %v1509_v26 = vrot.slane %v76_v55, 2  ;;  %v4989_v20 = vld [vmem:[%s8905_s0 + $0x190] sm:$0xff] }
 0x366   :  { %v1375_v17 = vpop.permute.xlu1 %1374  ;;  %v1897_v52 = vsel %vm1851_vm7, %v1840_v32, %v9732_v30 }
 0x367   :  { %v1547_v25 = vpop.permute.xlu0 %1546  ;;  %4853 = vmatmul.mubr.msk.f32.gmra.mrb[26].mxu1 %vm3961_vm12, %v3790_v16  ;;  %v2041_v8 = vsel %vm2022_vm10, %v1984_v53, %v1375_v17  ;;  %v1954_v57 = vsel %vm1908_vm8, %v1897_v52, %v8088_v10  ;;  %v1510_v17 = vrot.slane %v8160_v56, 2 }
 0x368   :  { %v2097_v22 = vsel %vm2079_vm11, %v2040_v46, %v1547_v25  ;;  %1564 = vrot.lane.b32.xlu1 %v1508_v2, %s5016_s18  ;;  %4855 = vmatprep.mubr.msk.f32.mxu1 %vm5018_vm3, %v9539_v34  ;;  %v2011_v35 = vsel %vm1965_vm9, %v1954_v57, %v1255_v29  ;;  %v1337_v29 = vsel %vm134_vm0, %v1335_v62, %v1336_v3  ;;  %v9739_v62 = vld [vmem:[#allocation202_spill] sm:$0xff] }
 0x369   :  { %v2473_v59 = vcombine.high %v2097_v22, %v2097_v22  ;;  %v2480_v23 = vrot.slane %v2097_v22, %v7022_v40  ;;  %1444 = vrot.lane.b32.xlu0 %v9730_v58, %s5017_s19  ;;  %v1700_v46 = vsel %vm1680_vm5, %v4988_v7, %v9733_v43  ;;  %v1511_v21 = vsel %vm387_vm1, %v1509_v26, %v1510_v17  ;;  %v9735_v22 = vld [vmem:[#allocation211_spill] sm:$0xff] }
 0x36a   :  { %v1549_v54 = vpop.permute.xlu1 %1548  ;;  %v1757_v41 = vsel %vm1737_vm4, %v1700_v46, %v9734_v13  ;;  %v9743_v46 = vld [vmem:[#allocation179_spill] sm:$0xff] }
 0x36b   :  { %v2488_v33 = vcombine.high %v2480_v23, %v2480_v23  ;;  %v2098_v39 = vsel %vm2079_vm11, %v2041_v8, %v1549_v54  ;;  %v1429_v14 = vpop.permute.xlu0 %1428  ;;  %v2487_v48 = vrot.slane %v2473_v59, %v7022_v40  ;;  %v1814_v53 = vsel %vm1794_vm6, %v1757_v41, %v9735_v22 }
 0x36c   :  { %v8173_v47 = vrot.slane %v2098_v39, %v7022_v40  ;;  %v4135_v27 = vpop.f32.mrb[2].mxu0  ;;  %1100 = vrot.lane.b32.xlu1 %v8036_v1, %s5012_s4  ;;  %v2068_v15 = vsel %vm2022_vm10, %v2011_v35, %v1429_v14  ;;  %v2489_v25 = vcombine.high %v2098_v39, %v2098_v39  ;;  %v9740_v35 = vld [vmem:[#allocation227_spill] sm:$0xff] }
 0x36d   :  { %v3383_v11 = vcombine.low %v2480_v23, %v2488_v33  ;;  %v4136_v5 = vadd.f32 %v8044_v24, %v4135_v27  ;;  %v4743_v19 = vpop.f32.mrb[3].mxu0  ;;  %1618 = vrot.lane.b32.xlu0 %v8003_v31, %s5016_s18  ;;  %v4255_v0 = vpop.f32.mrb[0].mxu1  ;;  %v9736_v23 = vld [vmem:[#allocation239_spill] sm:$0xff]  ;;  %v9738_v33 = vld [vmem:[#allocation148_spill] sm:$0xff] }
 0x36e   :  { %v3384_v38 = vcombine.low %v2487_v48, %v8173_v47  ;;  %v8185_v28 = vpop.permute.xlu1 %1084  ;;  %v4815_v1 = vpop.f32.mrb[1].mxu1  ;;  %v1871_v58 = vsel %vm1851_vm7, %v1814_v53, %v9736_v23  ;;  %v2503_v54 = vrot.slane %v2489_v25, %v7022_v40  ;;  %v2504_v30 = vcombine.high %v8173_v47, %v8173_v47 }
 0x36f   :  { %v4424_v50 = vcombine.high %v4136_v5, %v4136_v5  ;;  %v1603_v10 = vpop.permute.xlu0 %1602  ;;  %v3391_v44 = vrot.slane %v3383_v11, %v7022_v40  ;;  %v1727_v39 = vsel %vm1680_vm5, %v4989_v20, %v9738_v33  ;;  %v8249_v11 = vadd.f32 %v8044_v24, %v4255_v0  ;;  %v4990_v0 = vld [vmem:[%s8905_s0 + $0xa0] sm:$0xff] }
 0x370   :  { %v3398_v51 = vrot.slane %v3384_v38, %v7022_v40  ;;  %v8191_v2 = vsel %vm2079_vm11, %v2068_v15, %v1603_v10  ;;  %1272 = vrot.lane.b32.xlu1 %v76_v55, %s5014_s15  ;;  %v3799_v55 = vrot.slane %v3791_v49, %v7022_v40  ;;  %v1784_v57 = vsel %vm1737_vm4, %v1727_v39, %v9739_v62  ;;  %v9741_v10 = vld [vmem:[#allocation99_spill] sm:$0xff]  ;;  %v4991_v62 = vld [vmem:[%s8905_s0 + $0x198] sm:$0xff] }
 0x371   :  { %v4474_v61 = vcombine.low %v4136_v5, %v4424_v50  ;;  %v2942_v4 = vrot.slane %v8191_v2, %v7022_v40  ;;  %1218 = vrot.lane.b32.xlu0 %v8068_v18, %s5014_s15  ;;  %v1841_v38 = vsel %vm1794_vm6, %v1784_v57, %v9740_v35  ;;  %v2505_v15 = vcombine.high %v2503_v54, %v2503_v54  ;;  %v9747_v57 = vld [vmem:[#allocation147_spill] sm:$0xff] }
 0x372   :  { %v8202_v16 = vpop.permute.xlu1 %1256  ;;  %v3399_v36 = vcombine.low %v3391_v44, %v3398_v51  ;;  %v1701_v44 = vsel %vm1680_vm5, %v4990_v0, %v9741_v10  ;;  %v9742_v51 = vld [vmem:[#allocation260_spill] sm:$0xff]  ;;  %v9749_v0 = vld [vmem:[#allocation226_spill] sm:$0xff] }
 0x373   :  { %4570 = vst [vmem:[%s8908_s3 + $0x8] sm:$0xff] %v4474_v61  ;;  %v2950_v60 = vcombine.high %v2942_v4, %v2942_v4  ;;  %v1203_v6 = vpop.permute.xlu0 %1202  ;;  %v2935_v61 = vcombine.high %v8191_v2, %v8191_v2  ;;  %v1758_v2 = vsel %vm1737_vm4, %v1701_v44, %v9743_v46 }
 0x374   :  { %1446 = vrot.lane.b32.xlu1 %v1337_v29, %s5017_s19  ;;  %4784 = vmatmul.mubr.msk.f32.gmra.mrb[30].mxu0 %vm3961_vm12, %v3399_v36  ;;  %v1898_v29 = vsel %vm1851_vm7, %v1841_v38, %v9742_v51  ;;  %v4448_v36 = vcombine.high %v8249_v11, %v8249_v11 }
 0x375   :  { %v3792_v12 = vcombine.low %v2942_v4, %v2950_v60  ;;  %1392 = vrot.lane.b32.xlu0 %v1333_v37, %s5017_s19  ;;  %4786 = vmatprep.mubr.msk.f32.mxu0 %vm5018_vm3, %v9539_v34  ;;  %v9737_v37 = vld [vmem:[#allocation118_spill] sm:$0xff]  ;;  %v1955_v49 = vsel %vm1908_vm8, %v1898_v29, %v8185_v28  ;;  %v2949_v22 = vrot.slane %v2935_v61, %v7022_v40 }
 0x376   :  { %v1431_v59 = vpop.permute.xlu1 %1430  ;;  %v1928_v8 = vsel %vm1908_vm8, %v1871_v58, %v9737_v37 }
 0x377   :  { %v3806_v45 = vrot.slane %v3792_v12, %v7022_v40  ;;  %v1377_v32 = vpop.permute.xlu0 %1376  ;;  %v1985_v14 = vsel %vm1965_vm9, %v1928_v8, %v1203_v6  ;;  %v9746_v8 = vld [vmem:[#allocation279_spill] sm:$0xff] }
 0x378   :  { %v4140_v52 = vpop.f32.mrb[4].mxu0  ;;  %1620 = vrot.lane.b32.xlu1 %v1511_v21, %s5016_s18  ;;  %v2042_v5 = vsel %vm2022_vm10, %v1985_v14, %v1377_v32  ;;  %v9744_v21 = vld [vmem:[#allocation214_spill] sm:$0xff] }
 0x379   :  { %v4141_v48 = vadd.f32 %v8044_v24, %v4140_v52  ;;  %v4746_v27 = vpop.f32.mrb[5].mxu0  ;;  %1566 = vrot.lane.b32.xlu0 %v1507_v9, %s5016_s18  ;;  %v3807_v47 = vcombine.low %v3799_v55, %v3806_v45  ;;  %v3400_v9 = vcombine.low %v2504_v30, %v2503_v54  ;;  %v9745_v45 = vld [vmem:[#allocation242_spill] sm:$0xff] }
 0x37a   :  { %v1551_v19 = vpop.permute.xlu1 %1550 }
 0x37b   :  { %v4425_v1 = vcombine.high %v4141_v48, %v4141_v48  ;;  %v2099_v42 = vsel %vm2079_vm11, %v2042_v5, %v1551_v19  ;;  %4856 = vmatmul.mubr.msk.f32.gmra.mrb[28].mxu1 %vm3961_vm12, %v3807_v47  ;;  %v1205_v18 = vpop.permute.xlu0 %1204  ;;  %v3408_v28 = vrot.slane %v3400_v9, %v7022_v40  ;;  %v1728_v5 = vsel %vm1680_vm5, %v4991_v62, %v9747_v57  ;;  %v9748_v9 = vld [vmem:[#allocation201_spill] sm:$0xff]  ;;  %v9757_v57 = vld [vmem:[#allocation262_spill] sm:$0xff] }
 0x37c   :  { %v8257_v50 = vrot.slane %v2099_v42, %v7022_v40  ;;  %1274 = vrot.lane.b32.xlu1 %v8160_v56, %s5014_s15  ;;  %4858 = vmatprep.mubr.msk.f32.mxu1 %vm5018_vm3, %v9539_v34 }
 0x37d   :  { %v4475_v4 = vcombine.low %v4141_v48, %v4425_v1  ;;  %1102 = vrot.lane.b32.xlu0 %v8003_v31, %s5012_s4  ;;  %v4260_v26 = vpop.f32.mrb[2].mxu1  ;;  %v2012_v31 = vsel %vm1965_vm9, %v1955_v49, %v8202_v16  ;;  %v1815_v16 = vsel %vm1794_vm6, %v1758_v2, %v9744_v21 }
 0x37e   :  { %v3401_v60 = vcombine.low %v2505_v15, %v8257_v50  ;;  %v8280_v6 = vadd.f32 %v8044_v24, %v4260_v26  ;;  %v1087_v7 = vpop.permute.xlu1 %1086  ;;  %v4818_v43 = vpop.f32.mrb[3].mxu1  ;;  %v2069_v13 = vsel %vm2022_vm10, %v2012_v31, %v1431_v59  ;;  %v2506_v59 = vcombine.high %v2099_v42, %v2099_v42 }
 0x37f   :  { %4571 = vst [vmem:[%s8908_s3 + $0x10] sm:$0xff] %v4475_v4  ;;  %v1605_v25 = vpop.permute.xlu0 %1604  ;;  %v1872_v32 = vsel %vm1851_vm7, %v1815_v16, %v9745_v45  ;;  %v2521_v39 = vcombine.high %v8257_v50, %v8257_v50  ;;  %v1785_v15 = vsel %vm1737_vm4, %v1728_v5, %v9748_v9  ;;  %v9750_v4 = vld [vmem:[#allocation259_spill] sm:$0xff]  ;;  %v9759_v9 = vld [vmem:[#allocation278_spill] sm:$0xff] }
 0x380   :  { %v3415_v41 = vrot.slane %v3401_v60, %v7022_v40  ;;  %v4498_v12 = vcombine.low %v4448_v36, %v8280_v6  ;;  %1622 = vrot.lane.b32.xlu1 %v1510_v17, %s5016_s18  ;;  %v2126_v53 = vsel %vm2079_vm11, %v2069_v13, %v1605_v25  ;;  %v1929_v54 = vsel %vm1908_vm8, %v1872_v32, %v9746_v8  ;;  %v9753_v32 = vld [vmem:[#allocation204_spill] sm:$0xff] }
 0x381   :  { %1448 = vrot.lane.b32.xlu0 %v1336_v3, %s5017_s19  ;;  %v2951_v23 = vcombine.high %v2126_v53, %v2126_v53  ;;  %v2958_v58 = vrot.slane %v2126_v53, %v7022_v40  ;;  %v1986_v52 = vsel %vm1965_vm9, %v1929_v54, %v1205_v18  ;;  %v2520_v33 = vrot.slane %v2506_v59, %v7022_v40  ;;  %v4992_v53 = vld [vmem:[%s8905_s0 + $0xa8] sm:$0xff]  ;;  %v9751_v59 = vld [vmem:[#allocation98_spill] sm:$0xff] }
 0x382   :  { %4595 = vst [vmem:[%s8908_s3 + $0xd0] sm:$0xff] %v4498_v12  ;;  %v1259_v17 = vpop.permute.xlu1 %1258  ;;  %v3416_v55 = vcombine.low %v3408_v28, %v3415_v41  ;;  %v1842_v10 = vsel %vm1794_vm6, %v1785_v15, %v9749_v0  ;;  %v4449_v31 = vcombine.high %v8280_v6, %v8280_v6  ;;  %v1702_v6 = vsel %vm1680_vm5, %v4992_v53, %v9751_v59 }
 0x383   :  { %v1379_v37 = vpop.permute.xlu0 %1378  ;;  %v8312_v56 = vrot.slane %v2951_v23, %v7022_v40  ;;  %v2966_v3 = vcombine.high %v2958_v58, %v2958_v58  ;;  %v3808_v30 = vcombine.low %v2949_v22, %v2958_v58  ;;  %v3417_v44 = vcombine.low %v2521_v39, %v2520_v33  ;;  %v4993_v23 = vld [vmem:[%s8905_s0 + $0x1a0] sm:$0xff]  ;;  %v9752_v58 = vld [vmem:[#allocation152_spill] sm:$0xff] }
 0x384   :  { %4787 = vmatmul.mubr.msk.f32.gmra.mrb[32].mxu0 %vm3961_vm12, %v3416_v55  ;;  %v2043_v19 = vsel %vm2022_vm10, %v1986_v52, %v1379_v37  ;;  %v1899_v26 = vsel %vm1851_vm7, %v1842_v10, %v9750_v4 }
 0x385   :  { %v4145_v20 = vpop.f32.mrb[6].mxu0  ;;  %4789 = vmatprep.mubr.msk.f32.mxu0 %vm5018_vm3, %v9539_v34  ;;  %v3809_v14 = vcombine.low %v2966_v3, %v8312_v56  ;;  %v3816_v38 = vrot.slane %v3808_v30, %v7022_v40  ;;  %v1956_v60 = vsel %vm1908_vm8, %v1899_v26, %v1087_v7  ;;  %v3425_v2 = vrot.slane %v3417_v44, %v7022_v40  ;;  %v9754_v30 = vld [vmem:[#allocation178_spill] sm:$0xff] }
 0x386   :  { %v4146_v48 = vadd.f32 %v8044_v24, %v4145_v20  ;;  %v1089_v27 = vpop.permute.xlu1 %1088  ;;  %v4749_v47 = vpop.f32.mrb[7].mxu0  ;;  %v2013_v43 = vsel %vm1965_vm9, %v1956_v60, %v1259_v17  ;;  %v1729_v17 = vsel %vm1680_vm5, %v4993_v23, %v9752_v58  ;;  %v2967_v54 = vcombine.high %v8312_v56, %v8312_v56  ;;  %v9755_v20 = vld [vmem:[#allocation229_spill] sm:$0xff] }
 0x387   :  { %v1553_v35 = vpop.permute.xlu0 %1552  ;;  %v3823_v1 = vrot.slane %v3809_v14, %v7022_v40  ;;  %v1786_v37 = vsel %vm1737_vm4, %v1729_v17, %v9753_v32  ;;  %v1759_v52 = vsel %vm1737_vm4, %v1702_v6, %v9754_v30  ;;  %v9756_v47 = vld [vmem:[#allocation213_spill] sm:$0xff]  ;;  %v9760_v32 = vld [vmem:[#allocation103_spill] sm:$0xff] }
 0x388   :  { %v4426_v42 = vcombine.high %v4146_v48, %v4146_v48  ;;  %v2100_v18 = vsel %vm2079_vm11, %v2043_v19, %v1553_v35  ;;  %v1843_v33 = vsel %vm1794_vm6, %v1786_v37, %v9755_v20  ;;  %v1816_v62 = vsel %vm1794_vm6, %v1759_v52, %v9756_v47  ;;  %v9762_v20 = vld [vmem:[#allocation217_spill] sm:$0xff] }
 0x389   :  { %v2529_v50 = vrot.slane %v2100_v18, %v7022_v40  ;;  %v3824_v61 = vcombine.low %v3816_v38, %v3823_v1  ;;  %v2522_v13 = vcombine.high %v2100_v18, %v2100_v18  ;;  %v1900_v5 = vsel %vm1851_vm7, %v1843_v33, %v9757_v57  ;;  %v9758_v38 = vld [vmem:[#allocation241_spill] sm:$0xff] }
 0x38a   :  { %v4476_v51 = vcombine.low %v4146_v48, %v4426_v42  ;;  %v1207_v29 = vpop.permute.xlu1 %1206  ;;  %v1873_v1 = vsel %vm1851_vm7, %v1816_v62, %v9758_v38  ;;  %v1957_v42 = vsel %vm1908_vm8, %v1900_v5, %v1089_v27  ;;  %v9763_v47 = vld [vmem:[#allocation245_spill] sm:$0xff] }
 0x38b   :  { %v2537_v36 = vcombine.high %v2529_v50, %v2529_v50  ;;  %v1433_v49 = vpop.permute.xlu0 %1432  ;;  %4859 = vmatmul.mubr.msk.f32.gmra.mrb[30].mxu1 %vm3961_vm12, %v3824_v61  ;;  %v2536_v19 = vrot.slane %v2522_v13, %v7022_v40  ;;  %v1930_v15 = vsel %vm1908_vm8, %v1873_v1, %v9759_v9 }
 0x38c   :  { %4572 = vst [vmem:[%s8908_s3 + $0x18] sm:$0xff] %v4476_v51  ;;  %4861 = vmatprep.mubr.msk.f32.mxu1 %vm5018_vm3, %v9539_v34  ;;  %v2070_v25 = vsel %vm2022_vm10, %v2013_v43, %v1433_v49  ;;  %v1987_v10 = vsel %vm1965_vm9, %v1930_v15, %v1207_v29 }
 0x38d   :  { %v3418_v46 = vcombine.low %v2529_v50, %v2537_v36  ;;  %v2538_v26 = vcombine.high %v2536_v19, %v2536_v19 }
 0x38e   :  { %v4265_v7 = vpop.f32.mrb[4].mxu1  ;;  %v1607_v28 = vpop.permute.xlu1 %1606 }
 0x38f   :  { %v3432_v41 = vrot.slane %v3418_v46, %v7022_v40  ;;  %v4266_v12 = vadd.f32 %v8044_v24, %v4265_v7  ;;  %v2127_v21 = vsel %vm2079_vm11, %v2070_v25, %v1607_v28  ;;  %v4821_v16 = vpop.f32.mrb[5].mxu1  ;;  %v1261_v22 = vpop.permute.xlu0 %1260  ;;  %v3434_v6 = vcombine.low %v2536_v19, %v2538_v26  ;;  %v9764_v19 = vld [vmem:[#allocation281_spill] sm:$0xff] }
 0x390   :  { %v2968_v55 = vcombine.high %v2127_v21, %v2127_v21  ;;  %v2975_v45 = vrot.slane %v2127_v21, %v7022_v40  ;;  %v2014_v50 = vsel %vm1965_vm9, %v1957_v42, %v1261_v22 }
 0x391   :  { %v4499_v8 = vcombine.low %v4449_v31, %v4266_v12  ;;  %v3433_v3 = vcombine.low %v3425_v2, %v3432_v41  ;;  %v4450_v28 = vcombine.high %v4266_v12, %v4266_v12 }
 0x392   :  { %v2982_v39 = vrot.slane %v2968_v55, %v7022_v40  ;;  %v2983_v14 = vcombine.high %v2975_v45, %v2975_v45  ;;  %v1435_v48 = vpop.permute.xlu1 %1434  ;;  %v3825_v56 = vcombine.low %v2967_v54, %v2975_v45  ;;  %v4994_v45 = vld [vmem:[%s8905_s0 + $0xb0] sm:$0xff]  ;;  %v9761_v54 = vld [vmem:[#allocation181_spill] sm:$0xff] }
 0x393   :  { %4596 = vst [vmem:[%s8908_s3 + $0xd8] sm:$0xff] %v4499_v8  ;;  %4790 = vmatmul.mubr.msk.f32.gmra.mrb[34].mxu0 %vm3961_vm12, %v3433_v3  ;;  %v1381_v35 = vpop.permute.xlu0 %1380  ;;  %v2071_v51 = vsel %vm2022_vm10, %v2014_v50, %v1435_v48  ;;  %v1703_v37 = vsel %vm1680_vm5, %v4994_v45, %v9760_v32 }
 0x394   :  { %v3826_v18 = vcombine.low %v2983_v14, %v2982_v39  ;;  %4792 = vmatprep.mubr.msk.f32.mxu0 %vm5018_vm3, %v9539_v34  ;;  %v3833_v36 = vrot.slane %v3825_v56, %v7022_v40  ;;  %v2044_v49 = vsel %vm2022_vm10, %v1987_v10, %v1381_v35  ;;  %v1760_v3 = vsel %vm1737_vm4, %v1703_v37, %v9761_v54  ;;  %v9770_v37 = vld [vmem:[#allocation180_spill] sm:$0xff] }
 0x395   :  { %v4150_v0 = vpop.f32.mrb[8].mxu0  ;;  %v1817_v33 = vsel %vm1794_vm6, %v1760_v3, %v9762_v20  ;;  %v3442_v39 = vrot.slane %v3434_v6, %v7022_v40  ;;  %v9771_v3 = vld [vmem:[#allocation216_spill] sm:$0xff] }
 0x396   :  { %v3840_v44 = vrot.slane %v3826_v18, %v7022_v40  ;;  %v4151_v61 = vadd.f32 %v8044_v24, %v4150_v0  ;;  %v1609_v4 = vpop.permute.xlu1 %1608  ;;  %v4752_v27 = vpop.f32.mrb[9].mxu0  ;;  %v1874_v62 = vsel %vm1851_vm7, %v1817_v33, %v9763_v47 }
 0x397   :  { %v2128_v60 = vsel %vm2079_vm11, %v2071_v51, %v1609_v4  ;;  %v1555_v43 = vpop.permute.xlu0 %1554  ;;  %v4270_v46 = vpop.f32.mrb[6].mxu1  ;;  %v1931_v56 = vsel %vm1908_vm8, %v1874_v62, %v9764_v19  ;;  %v9775_v19 = vld [vmem:[#allocation280_spill] sm:$0xff] }
 0x398   :  { %v4427_v2 = vcombine.high %v4151_v61, %v4151_v61  ;;  %v2984_v31 = vcombine.high %v2128_v60, %v2128_v60  ;;  %v2991_v29 = vrot.slane %v2128_v60, %v7022_v40  ;;  %v2101_v25 = vsel %vm2079_vm11, %v2044_v49, %v1555_v43  ;;  %v4824_v7 = vpop.f32.mrb[7].mxu1  ;;  %v4995_v49 = vld [vmem:[%s8905_s0 + $0x1a8] sm:$0xff] }
 0x399   :  { %v2546_v13 = vrot.slane %v2101_v25, %v7022_v40  ;;  %v8402_v41 = vadd.f32 %v8044_v24, %v4270_v46  ;;  %v3841_v21 = vcombine.low %v3833_v36, %v3840_v44  ;;  %v2539_v35 = vcombine.high %v2101_v25, %v2101_v25  ;;  %v9765_v60 = vld [vmem:[#allocation151_spill] sm:$0xff] }
 0x39a   :  { %v4477_v16 = vcombine.low %v4151_v61, %v4427_v2  ;;  %v2998_v22 = vrot.slane %v2984_v31, %v7022_v40  ;;  %v2999_v53 = vcombine.high %v2991_v29, %v2991_v29  ;;  %v1091_v59 = vpop.permute.xlu1 %1090  ;;  %v1730_v43 = vsel %vm1680_vm5, %v4995_v49, %v9765_v60  ;;  %v9766_v25 = vld [vmem:[#allocation203_spill] sm:$0xff] }
 0x39b   :  { %v2554_v23 = vcombine.high %v2546_v13, %v2546_v13  ;;  %v4500_v58 = vcombine.low %v4450_v28, %v8402_v41  ;;  %4862 = vmatmul.mubr.msk.f32.gmra.mrb[32].mxu1 %vm3961_vm12, %v3841_v21  ;;  %v1209_v17 = vpop.permute.xlu0 %1208  ;;  %v2553_v61 = vrot.slane %v2539_v35, %v7022_v40  ;;  %v1787_v7 = vsel %vm1737_vm4, %v1730_v43, %v9766_v25  ;;  %v9767_v28 = vld [vmem:[#allocation228_spill] sm:$0xff] }
 0x39c   :  { %4573 = vst [vmem:[%s8908_s3 + $0x20] sm:$0xff] %v4477_v16  ;;  %v3000_v12 = vcombine.high %v2998_v22, %v2998_v22  ;;  %v3842_v55 = vcombine.low %v2991_v29, %v2999_v53  ;;  %4864 = vmatprep.mubr.msk.f32.mxu1 %vm5018_vm3, %v9539_v34  ;;  %v1988_v42 = vsel %vm1965_vm9, %v1931_v56, %v1209_v17  ;;  %v9768_v16 = vld [vmem:[#allocation261_spill] sm:$0xff]  ;;  %v9776_v35 = vld [vmem:[#allocation232_spill] sm:$0xff] }
 0x39d   :  { %v3435_v8 = vcombine.low %v2546_v13, %v2554_v23  ;;  %4597 = vst [vmem:[%s8908_s3 + $0xe0] sm:$0xff] %v4500_v58  ;;  %v1844_v13 = vsel %vm1794_vm6, %v1787_v7, %v9767_v28 }
 0x39e   :  { %v3843_v30 = vcombine.low %v2998_v22, %v3000_v12  ;;  %v1263_v52 = vpop.permute.xlu1 %1262  ;;  %v3850_v57 = vrot.slane %v3842_v55, %v7022_v40  ;;  %v1901_v22 = vsel %vm1851_vm7, %v1844_v13, %v9768_v16  ;;  %v4996_v12 = vld [vmem:[%s8905_s0 + $0xb8] sm:$0xff]  ;;  %v9769_v55 = vld [vmem:[#allocation102_spill] sm:$0xff] }
 0x39f   :  { %v3449_v14 = vrot.slane %v3435_v8, %v7022_v40  ;;  %v1383_v48 = vpop.permute.xlu0 %1382  ;;  %v1958_v6 = vsel %vm1908_vm8, %v1901_v22, %v1091_v59  ;;  %v1704_v45 = vsel %vm1680_vm5, %v4996_v12, %v9769_v55 }
 0x3a0   :  { %v3857_v5 = vrot.slane %v3843_v30, %v7022_v40  ;;  %v2045_v0 = vsel %vm2022_vm10, %v1988_v42, %v1383_v48  ;;  %v2015_v32 = vsel %vm1965_vm9, %v1958_v6, %v1263_v52  ;;  %v1761_v8 = vsel %vm1737_vm4, %v1704_v45, %v9770_v37  ;;  %v9773_v52 = vld [vmem:[#allocation244_spill] sm:$0xff]  ;;  %v9779_v37 = vld [vmem:[#allocation182_spill] sm:$0xff] }
 0x3a1   :  { %v4155_v38 = vpop.f32.mrb[10].mxu0  ;;  %v3450_v1 = vcombine.low %v3442_v39, %v3449_v14  ;;  %v1818_v30 = vsel %vm1794_vm6, %v1761_v8, %v9771_v3  ;;  %v4997_v39 = vld [vmem:[%s8905_s0 + $0x1b0] sm:$0xff] }
 0x3a2   :  { %v4156_v18 = vadd.f32 %v8044_v24, %v4155_v38  ;;  %v1093_v9 = vpop.permute.xlu1 %1092  ;;  %v4755_v15 = vpop.f32.mrb[11].mxu0  ;;  %v3858_v50 = vcombine.low %v3850_v57, %v3857_v5  ;;  %v9772_v14 = vld [vmem:[#allocation156_spill] sm:$0xff]  ;;  %v1875_v47 = vsel %vm1851_vm7, %v1818_v30, %v9773_v52  ;;  %v9774_v57 = vld [vmem:[#allocation206_spill] sm:$0xff] }
 0x3a3   :  { %4793 = vmatmul.mubr.msk.f32.gmra.mrb[36].mxu0 %vm3961_vm12, %v3450_v1  ;;  %v1557_v10 = vpop.permute.xlu0 %1556  ;;  %v1731_v48 = vsel %vm1680_vm5, %v4997_v39, %v9772_v14  ;;  %v1932_v56 = vsel %vm1908_vm8, %v1875_v47, %v9775_v19  ;;  %v9777_v15 = vld [vmem:[#allocation264_spill] sm:$0xff]  ;;  %v9782_v47 = vld [vmem:[#allocation282_spill] sm:$0xff] }
 0x3a4   :  { %v4428_v44 = vcombine.high %v4156_v18, %v4156_v18  ;;  %v2102_v51 = vsel %vm2079_vm11, %v2045_v0, %v1557_v10  ;;  %4865 = vmatmul.mubr.msk.f32.gmra.mrb[34].mxu1 %vm3961_vm12, %v3858_v50  ;;  %4795 = vmatprep.mubr.msk.f32.mxu0 %vm5018_vm3, %v9539_v34  ;;  %v1788_v5 = vsel %vm1737_vm4, %v1731_v48, %v9774_v57  ;;  %v9780_v30 = vld [vmem:[#allocation220_spill] sm:$0xff] }
 0x3a5   :  { %v2555_v4 = vcombine.high %v2102_v51, %v2102_v51  ;;  %v2562_v27 = vrot.slane %v2102_v51, %v7022_v40  ;;  %4867 = vmatprep.mubr.msk.f32.mxu1 %vm5018_vm3, %v9539_v34  ;;  %v1845_v38 = vsel %vm1794_vm6, %v1788_v5, %v9776_v35  ;;  %v9781_v14 = vld [vmem:[#allocation248_spill] sm:$0xff] }
 0x3a6   :  { %v4478_v26 = vcombine.low %v4156_v18, %v4428_v44  ;;  %v1211_v36 = vpop.permute.xlu1 %1210  ;;  %v1902_v50 = vsel %vm1851_vm7, %v1845_v38, %v9777_v15 }
 0x3a7   :  { %v2569_v46 = vrot.slane %v2555_v4, %v7022_v40  ;;  %v2570_v2 = vcombine.high %v2562_v27, %v2562_v27  ;;  %v3451_v31 = vcombine.low %v2553_v61, %v2562_v27  ;;  %v1437_v29 = vpop.permute.xlu0 %1436  ;;  %v1989_v1 = vsel %vm1965_vm9, %v1932_v56, %v1211_v36 }
 0x3a8   :  { %4574 = vst [vmem:[%s8908_s3 + $0x28] sm:$0xff] %v4478_v26  ;;  %v2072_v54 = vsel %vm2022_vm10, %v2015_v32, %v1437_v29  ;;  %v4451_v61 = vcombine.high %v8402_v41, %v8402_v41  ;;  %v1959_v4 = vsel %vm1908_vm8, %v1902_v50, %v1093_v9 }
 0x3a9   :  { %v3452_v21 = vcombine.low %v2570_v2, %v2569_v46  ;;  %v3459_v23 = vrot.slane %v3451_v31, %v7022_v40  ;;  %v2571_v60 = vcombine.high %v2569_v46, %v2569_v46 }
 0x3aa   :  { %v1611_v53 = vpop.permute.xlu1 %1610 }
 0x3ab   :  { %v3466_v58 = vrot.slane %v3452_v21, %v7022_v40  ;;  %v1265_v17 = vpop.permute.xlu0 %1264  ;;  %v2129_v20 = vsel %vm2079_vm11, %v2072_v54, %v1611_v53 }
 0x3ac   :  { %v3008_v42 = vrot.slane %v2129_v20, %v7022_v40  ;;  %v3001_v29 = vcombine.high %v2129_v20, %v2129_v20  ;;  %v2016_v7 = vsel %vm1965_vm9, %v1959_v4, %v1265_v17  ;;  %v9778_v17 = vld [vmem:[#allocation106_spill] sm:$0xff] }
 0x3ad   :  { %v3467_v59 = vcombine.low %v3459_v23, %v3466_v58  ;;  %v4998_v58 = vld [vmem:[%s8905_s0 + $0xc0] sm:$0xff] }
 0x3ae   :  { %v1439_v33 = vpop.permute.xlu1 %1438  ;;  %v3016_v25 = vcombine.high %v3008_v42, %v3008_v42  ;;  %v1705_v12 = vsel %vm1680_vm5, %v4998_v58, %v9778_v17  ;;  %v3015_v55 = vrot.slane %v3001_v29, %v7022_v40  ;;  %v9787_v29 = vld [vmem:[#allocation263_spill] sm:$0xff]  ;;  %v9788_v58 = vld [vmem:[#allocation208_spill] sm:$0xff] }
 0x3af   :  { %4796 = vmatmul.mubr.msk.f32.gmra.mrb[38].mxu0 %vm3961_vm12, %v3467_v59  ;;  %v1385_v62 = vpop.permute.xlu0 %1384  ;;  %v2073_v22 = vsel %vm2022_vm10, %v2016_v7, %v1439_v33  ;;  %v1762_v8 = vsel %vm1737_vm4, %v1705_v12, %v9779_v37  ;;  %v9789_v37 = vld [vmem:[#allocation235_spill] sm:$0xff] }
 0x3b0   :  { %4798 = vmatprep.mubr.msk.f32.mxu0 %vm5018_vm3, %v9539_v34  ;;  %v2046_v0 = vsel %vm2022_vm10, %v1989_v1, %v1385_v62  ;;  %v3859_v45 = vcombine.low %v3008_v42, %v3016_v25  ;;  %v1819_v20 = vsel %vm1794_vm6, %v1762_v8, %v9780_v30  ;;  %v4999_v42 = vld [vmem:[%s8905_s0 + $0x1b8] sm:$0xff] }
 0x3b1   :  { %v4160_v18 = vpop.f32.mrb[12].mxu0  ;;  %v1876_v48 = vsel %vm1851_vm7, %v1819_v20, %v9781_v14  ;;  %v9790_v20 = vld [vmem:[#allocation265_spill] sm:$0xff] }
 0x3b2   :  { %v4161_v10 = vadd.f32 %v8044_v24, %v4160_v18  ;;  %v1559_v44 = vpop.permute.xlu1 %1558  ;;  %v4758_v51 = vpop.f32.mrb[13].mxu0  ;;  %v1933_v62 = vsel %vm1908_vm8, %v1876_v48, %v9782_v47  ;;  %v3867_v57 = vrot.slane %v3859_v45, %v7022_v40  ;;  %v9783_v18 = vld [vmem:[#allocation155_spill] sm:$0xff] }
 0x3b3   :  { %v2103_v27 = vsel %vm2079_vm11, %v2046_v0, %v1559_v44  ;;  %v1213_v26 = vpop.permute.xlu0 %1212  ;;  %v4275_v36 = vpop.f32.mrb[8].mxu1  ;;  %v1732_v15 = vsel %vm1680_vm5, %v4999_v42, %v9783_v18  ;;  %v9784_v44 = vld [vmem:[#allocation205_spill] sm:$0xff] }
 0x3b4   :  { %v4429_v49 = vcombine.high %v4161_v10, %v4161_v10  ;;  %v2572_v43 = vcombine.high %v2103_v27, %v2103_v27  ;;  %v2579_v2 = vrot.slane %v2103_v27, %v7022_v40  ;;  %v4827_v31 = vpop.f32.mrb[9].mxu1  ;;  %v8503_v28 = vadd.f32 %v8044_v24, %v4275_v36  ;;  %v5000_v36 = vld [vmem:[%s8905_s0 + $0x1c0] sm:$0xff] }
 0x3b5   :  { %v1990_v19 = vsel %vm1965_vm9, %v1933_v62, %v1213_v26  ;;  %v1789_v51 = vsel %vm1737_vm4, %v1732_v15, %v9784_v44 }
 0x3b6   :  { %v4479_v41 = vcombine.low %v4161_v10, %v4429_v49  ;;  %v2586_v9 = vrot.slane %v2572_v43, %v7022_v40  ;;  %v2587_v13 = vcombine.high %v2579_v2, %v2579_v2  ;;  %v3468_v21 = vcombine.low %v2571_v60, %v2579_v2  ;;  %v1095_v16 = vpop.permute.xlu1 %1094  ;;  %v9785_v49 = vld [vmem:[#allocation159_spill] sm:$0xff] }
 0x3b7   :  { %v4501_v46 = vcombine.low %v4451_v61, %v8503_v28  ;;  %v1613_v53 = vpop.permute.xlu0 %1612  ;;  %v1733_v60 = vsel %vm1680_vm5, %v5000_v36, %v9785_v49  ;;  %v9786_v43 = vld [vmem:[#allocation231_spill] sm:$0xff] }
 0x3b8   :  { %4575 = vst [vmem:[%s8908_s3 + $0x30] sm:$0xff] %v4479_v41  ;;  %v3469_v6 = vcombine.low %v2587_v13, %v2586_v9  ;;  %v2130_v23 = vsel %vm2079_vm11, %v2073_v22, %v1613_v53  ;;  %v3476_v54 = vrot.slane %v3468_v21, %v7022_v40  ;;  %v1846_v2 = vsel %vm1794_vm6, %v1789_v51, %v9786_v43 }
 0x3b9   :  { %4598 = vst [vmem:[%s8908_s3 + $0xe8] sm:$0xff] %v4501_v46  ;;  %v3024_v32 = vrot.slane %v2130_v23, %v7022_v40  ;;  %v3017_v50 = vcombine.high %v2130_v23, %v2130_v23  ;;  %v1903_v25 = vsel %vm1851_vm7, %v1846_v2, %v9787_v29  ;;  %v4452_v22 = vcombine.high %v8503_v28, %v8503_v28  ;;  %v9791_v29 = vld [vmem:[#allocation105_spill] sm:$0xff] }
 0x3ba   :  { %v3483_v59 = vrot.slane %v3469_v6, %v7022_v40  ;;  %v1267_v3 = vpop.permute.xlu1 %1266  ;;  %v1790_v17 = vsel %vm1737_vm4, %v1733_v60, %v9788_v58  ;;  %v1960_v12 = vsel %vm1908_vm8, %v1903_v25, %v1095_v16 }
 0x3bb   :  { %v3860_v33 = vcombine.low %v3015_v55, %v3024_v32  ;;  %v1387_v39 = vpop.permute.xlu0 %1386  ;;  %v3031_v46 = vrot.slane %v3017_v50, %v7022_v40  ;;  %v3032_v53 = vcombine.high %v3024_v32, %v3024_v32  ;;  %v1847_v8 = vsel %vm1794_vm6, %v1790_v17, %v9789_v37  ;;  %v9795_v17 = vld [vmem:[#allocation247_spill] sm:$0xff] }
 0x3bc   :  { %v3484_v52 = vcombine.low %v3476_v54, %v3483_v59  ;;  %v2047_v35 = vsel %vm2022_vm10, %v1990_v19, %v1387_v39  ;;  %v2017_v54 = vsel %vm1965_vm9, %v1960_v12, %v1267_v3  ;;  %v1904_v32 = vsel %vm1851_vm7, %v1847_v8, %v9790_v20  ;;  %v9797_v8 = vld [vmem:[#allocation125_spill] sm:$0xff] }
 0x3bd   :  { %v3874_v5 = vrot.slane %v3860_v33, %v7022_v40  ;;  %v3876_v14 = vcombine.low %v3032_v53, %v3031_v46  ;;  %v3033_v3 = vcombine.high %v3031_v46, %v3031_v46 }
 0x3be   :  { %v1097_v56 = vpop.permute.xlu1 %1096  ;;  %4799 = vmatmul.mubr.msk.f32.gmra.mrb[40].mxu0 %vm3961_vm12, %v3484_v52 }
 0x3bf   :  { %v1561_v38 = vpop.permute.xlu0 %1560  ;;  %v3875_v1 = vcombine.low %v3867_v57, %v3874_v5  ;;  %4801 = vmatprep.mubr.msk.f32.mxu0 %vm5018_vm3, %v9539_v34  ;;  %v4165_v10 = vpop.f32.mrb[14].mxu0  ;;  %v1961_v48 = vsel %vm1908_vm8, %v1904_v32, %v1097_v56  ;;  %v9799_v32 = vld [vmem:[#allocation250_spill] sm:$0xff] }
 0x3c0   :  { %v2104_v0 = vsel %vm2079_vm11, %v2047_v35, %v1561_v38  ;;  %v4166_v27 = vadd.f32 %v8044_v24, %v4165_v10  ;;  %v4761_v26 = vpop.f32.mrb[15].mxu0 }
 0x3c1   :  { %v2588_v61 = vcombine.high %v2104_v0, %v2104_v0  ;;  %v2595_v4 = vrot.slane %v2104_v0, %v7022_v40  ;;  %4868 = vmatmul.mubr.msk.f32.gmra.mrb[36].mxu1 %vm3961_vm12, %v3875_v1 }
 0x3c2   :  { %v1269_v31 = vpop.permute.xlu1 %1268  ;;  %4870 = vmatprep.mubr.msk.f32.mxu1 %vm5018_vm3, %v9539_v34  ;;  %v4430_v9 = vcombine.high %v4166_v27, %v4166_v27 }
 0x3c3   :  { %v2602_v7 = vrot.slane %v2588_v61, %v7022_v40  ;;  %v2603_v41 = vcombine.high %v2595_v4, %v2595_v4  ;;  %v1441_v13 = vpop.permute.xlu0 %1440  ;;  %v4280_v21 = vpop.f32.mrb[10].mxu1  ;;  %v2018_v62 = vsel %vm1965_vm9, %v1961_v48, %v1269_v31  ;;  %v5001_v31 = vld [vmem:[%s8905_s0 + $0xc8] sm:$0xff] }
 0x3c4   :  { %v4281_v6 = vadd.f32 %v8044_v24, %v4280_v21  ;;  %v4830_v23 = vpop.f32.mrb[11].mxu1  ;;  %v4480_v45 = vcombine.low %v4166_v27, %v4430_v9  ;;  %v2074_v16 = vsel %vm2022_vm10, %v2017_v54, %v1441_v13  ;;  %v1706_v25 = vsel %vm1680_vm5, %v5001_v31, %v9791_v29 }
 0x3c5   :  { %v2604_v55 = vcombine.high %v2602_v7, %v2602_v7  ;;  %v3485_v59 = vcombine.low %v2595_v4, %v2603_v41  ;;  %v3884_v4 = vrot.slane %v3876_v14, %v7022_v40  ;;  %v9794_v23 = vld [vmem:[#allocation108_spill] sm:$0xff] }
 0x3c6   :  { %v4502_v28 = vcombine.low %v4452_v22, %v4281_v6  ;;  %v1443_v30 = vpop.permute.xlu1 %1442  ;;  %4576 = vst [vmem:[%s8908_s3 + $0x38] sm:$0xff] %v4480_v45  ;;  %v4453_v38 = vcombine.high %v4281_v6, %v4281_v6  ;;  %v9793_v22 = vld [vmem:[#allocation219_spill] sm:$0xff]  ;;  %v5002_v6 = vld [vmem:[%s8905_s0 + $0xd0] sm:$0xff] }
 0x3c7   :  { %v3486_v33 = vcombine.low %v2602_v7, %v2604_v55  ;;  %v1615_v39 = vpop.permute.xlu0 %1614  ;;  %v3493_v35 = vrot.slane %v3485_v59, %v7022_v40  ;;  %v2075_v56 = vsel %vm2022_vm10, %v2018_v62, %v1443_v30  ;;  %v9792_v7 = vld [vmem:[#allocation25_spill] sm:$0xff]  ;;  %v1707_v58 = vsel %vm1680_vm5, %v5002_v6, %v9794_v23  ;;  %v9796_v45 = vld [vmem:[#allocation184_spill] sm:$0xff]  ;;  %v9798_v59 = vld [vmem:[#allocation222_spill] sm:$0xff] }
 0x3c8   :  { %4599 = vst [vmem:[%s8908_s3 + $0xf0] sm:$0xff] %v4502_v28  ;;  %v2131_v52 = vsel %vm2079_vm11, %v2074_v16, %v1615_v39  ;;  %v1763_v41 = vsel %vm1737_vm4, %v1706_v25, %v9792_v7  ;;  %v1764_v37 = vsel %vm1737_vm4, %v1707_v58, %v9796_v45  ;;  %v8643_v62 = vld [vmem:[%s8907_s2] ss:$0 sm:$0xff] }
 0x3c9   :  { %v3500_v47 = vrot.slane %v3486_v33, %v7022_v40  ;;  %v3034_v57 = vcombine.high %v2131_v52, %v2131_v52  ;;  %v3041_v5 = vrot.slane %v2131_v52, %v7022_v40  ;;  %v4285_v19 = vpop.f32.mrb[12].mxu1  ;;  %v1820_v46 = vsel %vm1794_vm6, %v1763_v41, %v9793_v22 }
 0x3ca   :  { %v8589_v1 = vadd.f32 %v8044_v24, %v4285_v19  ;;  %v1617_v42 = vpop.permute.xlu1 %1616  ;;  %v4833_v18 = vpop.f32.mrb[13].mxu1  ;;  %v1877_v12 = vsel %vm1851_vm7, %v1820_v46, %v9795_v17  ;;  %v1821_v28 = vsel %vm1794_vm6, %v1764_v37, %v9798_v59  ;;  %v5004_v19 = vld [vmem:[%s8905_s0 + $0x1c8] sm:$0xff]  ;;  %v5005_v37 = vld [vmem:[%s8905_s0 + $0xd8] sm:$0xff]  ;;  %v5006_v59 = vld [vmem:[%s8905_s0 + $0x1d0] sm:$0xff] }
 0x3cb   :  { %v3048_v15 = vrot.slane %v3034_v57, %v7022_v40  ;;  %v3049_v50 = vcombine.high %v3041_v5, %v3041_v5  ;;  %v3877_v0 = vcombine.low %v3033_v3, %v3041_v5  ;;  %v2132_v10 = vsel %vm2079_vm11, %v2075_v56, %v1617_v42  ;;  %v1215_v44 = vpop.permute.xlu0 %1214  ;;  %v9800_v3 = vld [vmem:[#allocation284_spill] sm:$0xff] }
 0x3cc   :  { %v4503_v51 = vcombine.low %v4453_v38, %v8589_v1  ;;  %v3057_v61 = vrot.slane %v2132_v10, %v7022_v40  ;;  %v3501_v26 = vcombine.low %v3493_v35, %v3500_v47  ;;  %v1934_v54 = vsel %vm1908_vm8, %v1877_v12, %v9797_v8  ;;  %v9801_v35 = vld [vmem:[#allocation158_spill] sm:$0xff]  ;;  %v9805_v8 = vld [vmem:[#allocation107_spill] sm:$0xff] }
 0x3cd   :  { %v3891_v27 = vrot.slane %v3877_v0, %v7022_v40  ;;  %v3893_v24 = vcombine.low %v3049_v50, %v3048_v15  ;;  %v1991_v30 = vsel %vm1965_vm9, %v1934_v54, %v1215_v44  ;;  %v1878_v33 = vsel %vm1851_vm7, %v1821_v28, %v9799_v32  ;;  %v9802_v15 = vld [vmem:[#allocation207_spill] sm:$0xff]  ;;  %v9806_v28 = vld [vmem:[#allocation161_spill] sm:$0xff] }
 0x3ce   :  { %4600 = vst [vmem:[%s8908_s3 + $0xf8] sm:$0xff] %v4503_v51  ;;  %v3065_v36 = vcombine.high %v3057_v61, %v3057_v61  ;;  %v1389_v49 = vpop.permute.xlu1 %1388  ;;  %4802 = vmatmul.mubr.msk.f32.gmra.mrb[42].mxu0 %vm3961_vm12, %v3501_v26  ;;  %v3050_v16 = vcombine.high %v2132_v10, %v2132_v10  ;;  %v1935_v52 = vsel %vm1908_vm8, %v1878_v33, %v9800_v3  ;;  %v9803_v51 = vld [vmem:[#allocation234_spill] sm:$0xff] }
 0x3cf   :  { %v1099_v60 = vpop.permute.xlu0 %1098  ;;  %v3892_v43 = vcombine.low %v3884_v4, %v3891_v27  ;;  %4804 = vmatprep.mubr.msk.f32.mxu0 %vm5018_vm3, %v9539_v34  ;;  %v3901_v9 = vrot.slane %v3893_v24, %v7022_v40  ;;  %v2048_v39 = vsel %vm2022_vm10, %v1991_v30, %v1389_v49  ;;  %v1734_v38 = vsel %vm1680_vm5, %v5004_v19, %v9801_v35  ;;  %v9811_v19 = vld [vmem:[#allocation237_spill] sm:$0xff] }
 0x3d0   :  { %v3894_v2 = vcombine.low %v3057_v61, %v3065_v36  ;;  %v1791_v50 = vsel %vm1737_vm4, %v1734_v38, %v9802_v15  ;;  %v3064_v4 = vrot.slane %v3050_v16, %v7022_v40  ;;  %v9804_v36 = vld [vmem:[#allocation117_spill] sm:$0xff]  ;;  %v4454_v22 = vcombine.high %v8589_v1, %v8589_v1 }
 0x3d1   :  { %4871 = vmatmul.mubr.msk.f32.gmra.mrb[38].mxu1 %vm3961_vm12, %v3892_v43  ;;  %v1848_v61 = vsel %vm1794_vm6, %v1791_v50, %v9803_v51  ;;  %v1708_v54 = vsel %vm1680_vm5, %v5005_v37, %v9805_v8  ;;  %v1735_v30 = vsel %vm1680_vm5, %v5006_v59, %v9806_v28  ;;  %v5007_v16 = vld [vmem:[%s8905_s0 + $0x1d8] sm:$0xff]  ;;  %v2661_v51 = vrot.slane %v7087_v63, %v7022_v40 }
 0x3d2   :  { %v3908_v13 = vrot.slane %v3894_v2, %v7022_v40  ;;  %v1271_v21 = vpop.permute.xlu1 %1270  ;;  %4873 = vmatprep.mubr.msk.f32.mxu1 %vm5018_vm3, %v9539_v34  ;;  %v1905_v49 = vsel %vm1851_vm7, %v1848_v61, %v9804_v36  ;;  %v3066_v46 = vcombine.high %v3064_v4, %v3064_v4  ;;  %v9813_v15 = vld [vmem:[#allocation249_spill] sm:$0xff]  ;;  %v9815_v36 = vld [vmem:[#allocation236_spill] sm:$0xff] }
 0x3d3   :  { %v1217_v53 = vpop.permute.xlu0 %1216  ;;  %v1962_v29 = vsel %vm1908_vm8, %v1905_v49, %v1099_v60 }
 0x3d4   :  { %v3909_v55 = vcombine.low %v3901_v9, %v3908_v13  ;;  %v1992_v56 = vsel %vm1965_vm9, %v1935_v52, %v1217_v53  ;;  %v2019_v7 = vsel %vm1965_vm9, %v1962_v29, %v1271_v21  ;;  %v9809_v52 = vld [vmem:[#allocation210_spill] sm:$0xff] }
 0x3d6   :  { %v1391_v20 = vpop.permute.xlu1 %1390  ;;  %4874 = vmatmul.mubr.msk.f32.gmra.mrb[40].mxu1 %vm3961_vm12, %v3909_v55 }
 0x3d7   :  { %v1563_v14 = vpop.permute.xlu0 %1562  ;;  %v4170_v48 = vpop.f32.mrb[16].mxu0  ;;  %4876 = vmatprep.mubr.msk.f32.mxu1 %vm5018_vm3, %v9539_v34  ;;  %v2049_v0 = vsel %vm2022_vm10, %v1992_v56, %v1391_v20  ;;  %v3910_v20 = vcombine.low %v3064_v4, %v3066_v46  ;;  %v9817_v46 = vld [vmem:[#allocation267_spill] sm:$0xff] }
 0x3d8   :  { %v2105_v47 = vsel %vm2079_vm11, %v2048_v39, %v1563_v14  ;;  %v4171_v57 = vadd.f32 %v8643_v62, %v4170_v48  ;;  %v4764_v5 = vpop.f32.mrb[17].mxu0  ;;  %v9807_v39 = vld [vmem:[#allocation160_spill] sm:$0xff]  ;;  %v9808_v48 = vld [vmem:[#allocation183_spill] sm:$0xff] }
 0x3d9   :  { %v2605_v42 = vcombine.high %v2105_v47, %v2105_v47  ;;  %v2612_v18 = vrot.slane %v2105_v47, %v7022_v40  ;;  %v1736_v14 = vsel %vm1680_vm5, %v5007_v16, %v9807_v39  ;;  %v1765_v3 = vsel %vm1737_vm4, %v1708_v54, %v9808_v48 }
 0x3da   :  { %v4431_v10 = vcombine.high %v4171_v57, %v4171_v57  ;;  %v1565_v44 = vpop.permute.xlu1 %1564  ;;  %v1792_v47 = vsel %vm1737_vm4, %v1735_v30, %v9809_v52  ;;  %v3918_v61 = vrot.slane %v3910_v20, %v7022_v40 }
 0x3db   :  { %v2620_v27 = vcombine.high %v2612_v18, %v2612_v18  ;;  %v2106_v26 = vsel %vm2079_vm11, %v2049_v0, %v1565_v44  ;;  %v1445_v24 = vpop.permute.xlu0 %1444  ;;  %v2619_v43 = vrot.slane %v2605_v42, %v7022_v40  ;;  %v1849_v35 = vsel %vm1794_vm6, %v1792_v47, %v9811_v19  ;;  %v9812_v42 = vld [vmem:[#allocation209_spill] sm:$0xff]  ;;  %v9814_v0 = vld [vmem:[#allocation268_spill] sm:$0xff] }
 0x3dc   :  { %v4481_v2 = vcombine.low %v4171_v57, %v4431_v10  ;;  %v8664_v31 = vrot.slane %v2106_v26, %v7022_v40  ;;  %v2076_v53 = vsel %vm2022_vm10, %v2019_v7, %v1445_v24  ;;  %v9810_v57 = vld [vmem:[#allocation221_spill] sm:$0xff]  ;;  %v2621_v38 = vcombine.high %v2106_v26, %v2106_v26 }
 0x3dd   :  { %v3502_v25 = vcombine.low %v2612_v18, %v2620_v27  ;;  %v4290_v9 = vpop.f32.mrb[14].mxu1  ;;  %v1822_v5 = vsel %vm1794_vm6, %v1765_v3, %v9810_v57  ;;  %v1793_v18 = vsel %vm1737_vm4, %v1736_v14, %v9812_v42  ;;  %v1906_v10 = vsel %vm1851_vm7, %v1849_v35, %v9814_v0 }
 0x3de   :  { %4577 = vst [vmem:[%s8908_s3 + $0x40] sm:$0xff] %v4481_v2  ;;  %v3503_v41 = vcombine.low %v2619_v43, %v8664_v31  ;;  %v1101_v13 = vpop.permute.xlu1 %1100  ;;  %v8676_v6 = vadd.f32 %v8643_v62, %v4290_v9  ;;  %v4836_v60 = vpop.f32.mrb[15].mxu1  ;;  %v1879_v50 = vsel %vm1851_vm7, %v1822_v5, %v9813_v15  ;;  %v1850_v49 = vsel %vm1794_vm6, %v1793_v18, %v9815_v36  ;;  %v9816_v43 = vld [vmem:[#allocation283_spill] sm:$0xff] }
 0x3df   :  { %v1619_v23 = vpop.permute.xlu0 %1618  ;;  %v3510_v21 = vrot.slane %v3502_v25, %v7022_v40  ;;  %v1936_v2 = vsel %vm1908_vm8, %v1879_v50, %v9816_v43  ;;  %v1963_v29 = vsel %vm1908_vm8, %v1906_v10, %v1101_v13  ;;  %v2635_v63 = vrot.slane %v2621_v38, %v7022_v40 }
 0x3e0   :  { %v3517_v58 = vrot.slane %v3503_v41, %v7022_v40  ;;  %v2133_v17 = vsel %vm2079_vm11, %v2076_v53, %v1619_v23  ;;  %v4504_v12 = vcombine.low %v4454_v22, %v8676_v6  ;;  %v2636_v41 = vcombine.high %v8664_v31, %v8664_v31 }
 0x3e1   :  { %v3074_v55 = vrot.slane %v2133_v17, %v7022_v40  ;;  %v3067_v4 = vcombine.high %v2133_v17, %v2133_v17  ;;  %v1907_v53 = vsel %vm1851_vm7, %v1850_v49, %v9817_v46  ;;  %v2637_v59 = vcombine.high %v2635_v63, %v2635_v63 }
 0x3e2   :  { %v1273_v45 = vpop.permute.xlu1 %1272  ;;  %v3518_v1 = vcombine.low %v3510_v21, %v3517_v58  ;;  %4601 = vst [vmem:[%s8908_s3 + $0x100] sm:$0xff] %v4504_v12  ;;  %v2669_v58 = vcombine.high %v2661_v51, %v2661_v51  ;;  %v3519_v54 = vcombine.low %v2636_v41, %v2635_v63  ;;  %v4455_v20 = vcombine.high %v8676_v6, %v8676_v6 }
 0x3e3   :  { %v3082_v32 = vcombine.high %v3074_v55, %v3074_v55  ;;  %v1219_v33 = vpop.permute.xlu0 %1218  ;;  %v2020_v9 = vsel %vm1965_vm9, %v1963_v29, %v1273_v45  ;;  %v3081_v17 = vrot.slane %v3067_v4, %v7022_v40 }
 0x3e4   :  { %4805 = vmatmul.mubr.msk.f32.gmra.mrb[44].mxu0 %vm3961_vm12, %v3518_v1  ;;  %v1993_v60 = vsel %vm1965_vm9, %v1936_v2, %v1219_v33  ;;  %v3537_v19 = vcombine.low %v2661_v51, %v2669_v58  ;;  %v3527_v38 = vrot.slane %v3519_v54, %v7022_v40 }
 0x3e5   :  { %v3911_v56 = vcombine.low %v3074_v55, %v3082_v32  ;;  %4807 = vmatprep.mubr.msk.f32.mxu0 %vm5018_vm3, %v9539_v34 }
 0x3e6   :  { %v1447_v44 = vpop.permute.xlu1 %1446 }
 0x3e7   :  { %v3925_v27 = vrot.slane %v3911_v56, %v7022_v40  ;;  %v1393_v26 = vpop.permute.xlu0 %1392  ;;  %v4175_v24 = vpop.f32.mrb[18].mxu0  ;;  %v2077_v23 = vsel %vm2022_vm10, %v2020_v9, %v1447_v44 }
 0x3e8   :  { %v4176_v25 = vadd.f32 %v8643_v62, %v4175_v24  ;;  %v4767_v7 = vpop.f32.mrb[19].mxu0  ;;  %v2050_v12 = vsel %vm2022_vm10, %v1993_v60, %v1393_v26  ;;  %v3551_v26 = vrot.slane %v3537_v19, %v7022_v40 }
 0x3e9   :  { %v3926_v22 = vcombine.low %v3918_v61, %v3925_v27 }
 0x3ea   :  { %v4432_v21 = vcombine.high %v4176_v25, %v4176_v25  ;;  %v1621_v13 = vpop.permute.xlu1 %1620 }
 0x3eb   :  { %v2134_v55 = vsel %vm2079_vm11, %v2077_v23, %v1621_v13  ;;  %4877 = vmatmul.mubr.msk.f32.gmra.mrb[42].mxu1 %vm3961_vm12, %v3926_v22  ;;  %v1567_v31 = vpop.permute.xlu0 %1566 }
 0x3ec   :  { %v4482_v45 = vcombine.low %v4176_v25, %v4432_v21  ;;  %v3083_v1 = vcombine.high %v2134_v55, %v2134_v55  ;;  %v3090_v37 = vrot.slane %v2134_v55, %v7022_v40  ;;  %v2107_v8 = vsel %vm2079_vm11, %v2050_v12, %v1567_v31  ;;  %4879 = vmatprep.mubr.msk.f32.mxu1 %vm5018_vm3, %v9539_v34 }
 0x3ed   :  { %v2638_v28 = vcombine.high %v2107_v8, %v2107_v8  ;;  %v2645_v30 = vrot.slane %v2107_v8, %v7022_v40  ;;  %v4295_v39 = vpop.f32.mrb[16].mxu1 }
 0x3ee   :  { %4578 = vst [vmem:[%s8908_s3 + $0x48] sm:$0xff] %v4482_v45  ;;  %v3097_v32 = vrot.slane %v3083_v1, %v7022_v40  ;;  %v3098_v33 = vcombine.high %v3090_v37, %v3090_v37  ;;  %v3927_v16 = vcombine.low %v3081_v17, %v3090_v37  ;;  %v1275_v14 = vpop.permute.xlu1 %1274  ;;  %v4296_v47 = vadd.f32 %v8643_v62, %v4295_v39  ;;  %v4839_v57 = vpop.f32.mrb[17].mxu1 }
 0x3ef   :  { %v2652_v48 = vrot.slane %v2638_v28, %v7022_v40  ;;  %v2653_v3 = vcombine.high %v2645_v30, %v2645_v30  ;;  %v3520_v52 = vcombine.low %v2637_v59, %v2645_v30  ;;  %v1103_v5 = vpop.permute.xlu0 %1102 }
 0x3f0   :  { %v3928_v6 = vcombine.low %v3098_v33, %v3097_v32  ;;  %v1964_v35 = vsel %vm1908_vm8, %v1907_v53, %v1103_v5  ;;  %v4505_v18 = vcombine.low %v4455_v20, %v4296_v47  ;;  %v3935_v15 = vrot.slane %v3927_v16, %v7022_v40 }
 0x3f1   :  { %v3534_v56 = vrot.slane %v3520_v52, %v7022_v40  ;;  %v3536_v42 = vcombine.low %v2653_v3, %v2652_v48  ;;  %v2021_v44 = vsel %vm1965_vm9, %v1964_v35, %v1275_v14  ;;  %v3099_v36 = vcombine.high %v3097_v32, %v3097_v32 }
 0x3f2   :  { %v3942_v50 = vrot.slane %v3928_v6, %v7022_v40  ;;  %v1623_v0 = vpop.permute.xlu1 %1622  ;;  %4602 = vst [vmem:[%s8908_s3 + $0x108] sm:$0xff] %v4505_v18  ;;  %v4456_v13 = vcombine.high %v4296_v47, %v4296_v47 }
 0x3f3   :  { %v3544_v10 = vrot.slane %v3536_v42, %v7022_v40  ;;  %v1449_v51 = vpop.permute.xlu0 %1448  ;;  %v3535_v61 = vcombine.low %v3527_v38, %v3534_v56 }
 0x3f4   :  { %v2078_v4 = vsel %vm2022_vm10, %v2021_v44, %v1449_v51  ;;  %v3943_v27 = vcombine.low %v3935_v15, %v3942_v50 }
 0x3f5   :  { %v2135_v24 = vsel %vm2079_vm11, %v2078_v4, %v1623_v0  ;;  %4808 = vmatmul.mubr.msk.f32.gmra.mrb[46].mxu0 %vm3961_vm12, %v3535_v61  ;;  %v4180_v2 = vpop.f32.mrb[20].mxu0  ;;  %v3552_v7 = vcombine.low %v3544_v10, %v3551_v26 }
 0x3f6   :  { %v3100_v49 = vcombine.high %v2135_v24, %v2135_v24  ;;  %v3107_v43 = vrot.slane %v2135_v24, %v7022_v40  ;;  %4880 = vmatmul.mubr.msk.f32.gmra.mrb[44].mxu1 %vm3961_vm12, %v3943_v27  ;;  %4810 = vmatprep.mubr.msk.f32.mxu0 %vm5018_vm3, %v9539_v34  ;;  %v4181_v29 = vadd.f32 %v8643_v62, %v4180_v2  ;;  %v4770_v25 = vpop.f32.mrb[21].mxu0 }
 0x3f7   :  { %4882 = vmatprep.mubr.msk.f32.mxu1 %vm5018_vm3, %v9539_v34 }
 0x3f8   :  { %v3114_v63 = vrot.slane %v3100_v49, %v7022_v40  ;;  %v3115_v41 = vcombine.high %v3107_v43, %v3107_v43  ;;  %v3944_v9 = vcombine.low %v3099_v36, %v3107_v43  ;;  %v4433_v22 = vcombine.high %v4181_v29, %v4181_v29 }
 0x3f9   :  { %4811 = vmatmul.mubr.msk.f32.gmra.mrb[48].mxu0 %vm3961_vm12, %v3552_v7 }
 0x3fa   :  { %v3945_v46 = vcombine.low %v3115_v41, %v3114_v63  ;;  %v4483_v53 = vcombine.low %v4181_v29, %v4433_v22  ;;  %v3952_v60 = vrot.slane %v3944_v9, %v7022_v40 }
 0x3fc   :  { %v3959_v23 = vrot.slane %v3945_v46, %v7022_v40  ;;  %4579 = vst [vmem:[%s8908_s3 + $0x50] sm:$0xff] %v4483_v53 }
 0x3fd   :  { %v4300_v21 = vpop.f32.mrb[18].mxu1 }
 0x3fe   :  { %v4301_v34 = vadd.f32 %v8643_v62, %v4300_v21  ;;  %v4842_v58 = vpop.f32.mrb[19].mxu1  ;;  %v3960_v17 = vcombine.low %v3952_v60, %v3959_v23 }
 0x400   :  { %v4506_v12 = vcombine.low %v4456_v13, %v4301_v34  ;;  %4883 = vmatmul.mubr.msk.f32.gmra.mrb[46].mxu1 %vm3961_vm12, %v3960_v17  ;;  %v4457_v1 = vcombine.high %v4301_v34, %v4301_v34 }
 0x402   :  { %4603 = vst [vmem:[%s8908_s3 + $0x110] sm:$0xff] %v4506_v12 }
 0x405   :  { %v4185_v55 = vpop.f32.mrb[22].mxu0 }
 0x406   :  { %v4186_v40 = vadd.f32 %v8643_v62, %v4185_v55  ;;  %v4773_v31 = vpop.f32.mrb[23].mxu0 }
 0x407   :  { %v4305_v45 = vpop.f32.mrb[20].mxu1 }
 0x408   :  { %v4306_v37 = vadd.f32 %v8643_v62, %v4305_v45  ;;  %v4845_v8 = vpop.f32.mrb[21].mxu1  ;;  %v4434_v54 = vcombine.high %v4186_v40, %v4186_v40 }
 0x40a   :  { %v4507_v59 = vcombine.low %v4457_v1, %v4306_v37  ;;  %v4484_v28 = vcombine.low %v4186_v40, %v4434_v54  ;;  %v4458_v47 = vcombine.high %v4306_v37, %v4306_v37 }
 0x40c   :  { %4604 = vst [vmem:[%s8908_s3 + $0x118] sm:$0xff] %v4507_v59  ;;  %4580 = vst [vmem:[%s8908_s3 + $0x58] sm:$0xff] %v4484_v28 }
 0x412   :  { %v4190_v30 = vpop.f32.mrb[24].mxu0 }
 0x413   :  { %v4191_v20 = vadd.f32 %v8643_v62, %v4190_v30  ;;  %v4776_v32 = vpop.f32.mrb[25].mxu0 }
 0x415   :  { %v4435_v33 = vcombine.high %v4191_v20, %v4191_v20 }
 0x417   :  { %v4485_v16 = vcombine.low %v4191_v20, %v4435_v33 }
 0x419   :  { %4581 = vst [vmem:[%s8908_s3 + $0x60] sm:$0xff] %v4485_v16 }
 0x421   :  { %v4195_v39 = vpop.f32.mrb[26].mxu0 }
 0x422   :  { %v4196_v14 = vadd.f32 %v8643_v62, %v4195_v39  ;;  %v4779_v48 = vpop.f32.mrb[27].mxu0 }
 0x424   :  { %v4436_v3 = vcombine.high %v4196_v14, %v4196_v14  ;;  %v4310_v52 = vpop.f32.mrb[22].mxu1 }
 0x425   :  { %v4311_v57 = vadd.f32 %v8643_v62, %v4310_v52  ;;  %v4848_v5 = vpop.f32.mrb[23].mxu1 }
 0x426   :  { %v4486_v19 = vcombine.low %v4196_v14, %v4436_v3 }
 0x427   :  { %v4508_v6 = vcombine.low %v4458_v47, %v4311_v57  ;;  %v4459_v15 = vcombine.high %v4311_v57, %v4311_v57 }
 0x428   :  { %4582 = vst [vmem:[%s8908_s3 + $0x68] sm:$0xff] %v4486_v19 }
 0x429   :  { %4605 = vst [vmem:[%s8908_s3 + $0x120] sm:$0xff] %v4508_v6 }
 0x431   :  { %v4200_v35 = vpop.f32.mrb[28].mxu0 }
 0x432   :  { %v4201_v38 = vadd.f32 %v8643_v62, %v4200_v35  ;;  %v4782_v56 = vpop.f32.mrb[29].mxu0 }
 0x434   :  { %v4437_v42 = vcombine.high %v4201_v38, %v4201_v38  ;;  %v4315_v18 = vpop.f32.mrb[24].mxu1 }
 0x435   :  { %v4316_v50 = vadd.f32 %v8643_v62, %v4315_v18  ;;  %v4851_v0 = vpop.f32.mrb[25].mxu1 }
 0x436   :  { %v4487_v10 = vcombine.low %v4201_v38, %v4437_v42 }
 0x437   :  { %v4509_v44 = vcombine.low %v4459_v15, %v4316_v50  ;;  %v4460_v61 = vcombine.high %v4316_v50, %v4316_v50 }
 0x438   :  { %4583 = vst [vmem:[%s8908_s3 + $0x70] sm:$0xff] %v4487_v10 }
 0x439   :  { %4606 = vst [vmem:[%s8908_s3 + $0x128] sm:$0xff] %v4509_v44 }
 0x43a   :  { %v4320_v51 = vpop.f32.mrb[26].mxu1 }
 0x43b   :  { %v4321_v4 = vadd.f32 %v8643_v62, %v4320_v51  ;;  %v4854_v27 = vpop.f32.mrb[27].mxu1 }
 0x43d   :  { %v4510_v26 = vcombine.low %v4460_v61, %v4321_v4  ;;  %v4461_v25 = vcombine.high %v4321_v4, %v4321_v4 }
 0x43f   :  { %4607 = vst [vmem:[%s8908_s3 + $0x130] sm:$0xff] %v4510_v26 }
 0x447   :  { %v4205_v24 = vpop.f32.mrb[30].mxu0 }
 0x448   :  { %v4206_v36 = vadd.f32 %v8643_v62, %v4205_v24  ;;  %v4785_v49 = vpop.f32.mrb[31].mxu0 }
 0x44a   :  { %v4438_v43 = vcombine.high %v4206_v36, %v4206_v36 }
 0x44c   :  { %v4488_v2 = vcombine.low %v4206_v36, %v4438_v43 }
 0x44e   :  { %4584 = vst [vmem:[%s8908_s3 + $0x78] sm:$0xff] %v4488_v2  ;;  %v4325_v29 = vpop.f32.mrb[28].mxu1 }
 0x44f   :  { %v4326_v7 = vadd.f32 %v8643_v62, %v4325_v29  ;;  %v4857_v63 = vpop.f32.mrb[29].mxu1 }
 0x451   :  { %v4511_v41 = vcombine.low %v4461_v25, %v4326_v7  ;;  %v4462_v21 = vcombine.high %v4326_v7, %v4326_v7 }
 0x453   :  { %4608 = vst [vmem:[%s8908_s3 + $0x138] sm:$0xff] %v4511_v41 }
 0x457   :  { %v4210_v9 = vpop.f32.mrb[32].mxu0 }
 0x458   :  { %v4211_v22 = vadd.f32 %v8643_v62, %v4210_v9  ;;  %v4788_v46 = vpop.f32.mrb[33].mxu0 }
 0x45a   :  { %v4439_v53 = vcombine.high %v4211_v22, %v4211_v22 }
 0x45c   :  { %v4489_v60 = vcombine.low %v4211_v22, %v4439_v53 }
 0x45e   :  { %4585 = vst [vmem:[%s8908_s3 + $0x80] sm:$0xff] %v4489_v60  ;;  %v4330_v23 = vpop.f32.mrb[30].mxu1 }
 0x45f   :  { %v4331_v13 = vadd.f32 %v8643_v62, %v4330_v23  ;;  %v4860_v34 = vpop.f32.mrb[31].mxu1 }
 0x461   :  { %v4512_v58 = vcombine.low %v4462_v21, %v4331_v13  ;;  %v4463_v1 = vcombine.high %v4331_v13, %v4331_v13 }
 0x463   :  { %4609 = vst [vmem:[%s8908_s3 + $0x140] sm:$0xff] %v4512_v58 }
 0x466   :  { %v4215_v17 = vpop.f32.mrb[34].mxu0 }
 0x467   :  { %v4216_v12 = vadd.f32 %v8643_v62, %v4215_v17  ;;  %v4791_v55 = vpop.f32.mrb[35].mxu0 }
 0x469   :  { %v4440_v40 = vcombine.high %v4216_v12, %v4216_v12 }
 0x46b   :  { %v4490_v31 = vcombine.low %v4216_v12, %v4440_v40 }
 0x46d   :  { %4586 = vst [vmem:[%s8908_s3 + $0x88] sm:$0xff] %v4490_v31 }
 0x46e   :  { %v4335_v45 = vpop.f32.mrb[32].mxu1 }
 0x46f   :  { %v4336_v37 = vadd.f32 %v8643_v62, %v4335_v45  ;;  %v4863_v8 = vpop.f32.mrb[33].mxu1 }
 0x471   :  { %v4513_v54 = vcombine.low %v4463_v1, %v4336_v37  ;;  %v4464_v32 = vcombine.high %v4336_v37, %v4336_v37 }
 0x473   :  { %4610 = vst [vmem:[%s8908_s3 + $0x148] sm:$0xff] %v4513_v54 }
 0x476   :  { %v4220_v59 = vpop.f32.mrb[36].mxu0 }
 0x477   :  { %v4221_v28 = vadd.f32 %v8643_v62, %v4220_v59  ;;  %v4794_v30 = vpop.f32.mrb[37].mxu0  ;;  %v4340_v20 = vpop.f32.mrb[34].mxu1 }
 0x478   :  { %v4341_v33 = vadd.f32 %v8643_v62, %v4340_v20  ;;  %v4866_v16 = vpop.f32.mrb[35].mxu1 }
 0x479   :  { %v4441_v39 = vcombine.high %v4221_v28, %v4221_v28 }
 0x47a   :  { %v4514_v14 = vcombine.low %v4464_v32, %v4341_v33  ;;  %v4465_v42 = vcombine.high %v4341_v33, %v4341_v33 }
 0x47b   :  { %v4491_v48 = vcombine.low %v4221_v28, %v4441_v39 }
 0x47c   :  { %4611 = vst [vmem:[%s8908_s3 + $0x150] sm:$0xff] %v4514_v14 }
 0x47d   :  { %4587 = vst [vmem:[%s8908_s3 + $0x90] sm:$0xff] %v4491_v48 }
 0x482   :  { %v4225_v3 = vpop.f32.mrb[38].mxu0 }
 0x483   :  { %v4226_v52 = vadd.f32 %v8643_v62, %v4225_v3  ;;  %v4797_v47 = vpop.f32.mrb[39].mxu0 }
 0x485   :  { %v4442_v57 = vcombine.high %v4226_v52, %v4226_v52 }
 0x487   :  { %v4492_v5 = vcombine.low %v4226_v52, %v4442_v57 }
 0x489   :  { %4588 = vst [vmem:[%s8908_s3 + $0x98] sm:$0xff] %v4492_v5 }
 0x491   :  { %v4230_v19 = vpop.f32.mrb[40].mxu0 }
 0x492   :  { %v4231_v6 = vadd.f32 %v8643_v62, %v4230_v19  ;;  %v4800_v35 = vpop.f32.mrb[41].mxu0 }
 0x494   :  { %v4443_v38 = vcombine.high %v4231_v6, %v4231_v6  ;;  %v4345_v56 = vpop.f32.mrb[36].mxu1 }
 0x495   :  { %v4346_v18 = vadd.f32 %v8643_v62, %v4345_v56  ;;  %v4869_v15 = vpop.f32.mrb[37].mxu1 }
 0x496   :  { %v4493_v50 = vcombine.low %v4231_v6, %v4443_v38 }
 0x497   :  { %v4515_v0 = vcombine.low %v4465_v42, %v4346_v18  ;;  %v4466_v4 = vcombine.high %v4346_v18, %v4346_v18 }
 0x498   :  { %4589 = vst [vmem:[%s8908_s3 + $0xa0] sm:$0xff] %v4493_v50 }
 0x499   :  { %4612 = vst [vmem:[%s8908_s3 + $0x158] sm:$0xff] %v4515_v0 }
 0x4a1   :  { %v4235_v10 = vpop.f32.mrb[42].mxu0 }
 0x4a2   :  { %v4236_v44 = vadd.f32 %v8643_v62, %v4235_v10  ;;  %v4803_v51 = vpop.f32.mrb[43].mxu0 }
 0x4a4   :  { %v4350_v61 = vpop.f32.mrb[38].mxu1  ;;  %v4444_v27 = vcombine.high %v4236_v44, %v4236_v44 }
 0x4a5   :  { %v4351_v26 = vadd.f32 %v8643_v62, %v4350_v61  ;;  %v4872_v24 = vpop.f32.mrb[39].mxu1 }
 0x4a6   :  { %v4494_v36 = vcombine.low %v4236_v44, %v4444_v27 }
 0x4a7   :  { %v4516_v49 = vcombine.low %v4466_v4, %v4351_v26  ;;  %v4467_v2 = vcombine.high %v4351_v26, %v4351_v26 }
 0x4a8   :  { %4590 = vst [vmem:[%s8908_s3 + $0xa8] sm:$0xff] %v4494_v36 }
 0x4a9   :  { %4613 = vst [vmem:[%s8908_s3 + $0x160] sm:$0xff] %v4516_v49  ;;  %v4355_v43 = vpop.f32.mrb[40].mxu1 }
 0x4aa   :  { %v4356_v29 = vadd.f32 %v8643_v62, %v4355_v43  ;;  %v4875_v25 = vpop.f32.mrb[41].mxu1 }
 0x4ac   :  { %v4517_v7 = vcombine.low %v4467_v2, %v4356_v29  ;;  %v4468_v60 = vcombine.high %v4356_v29, %v4356_v29 }
 0x4ae   :  { %4614 = vst [vmem:[%s8908_s3 + $0x168] sm:$0xff] %v4517_v7 }
 0x4b7   :  { %v4240_v63 = vpop.f32.mrb[44].mxu0 }
 0x4b8   :  { %v4241_v41 = vadd.f32 %v8643_v62, %v4240_v63  ;;  %v4806_v9 = vpop.f32.mrb[45].mxu0 }
 0x4ba   :  { %v4445_v22 = vcombine.high %v4241_v41, %v4241_v41 }
 0x4bc   :  { %v4495_v46 = vcombine.low %v4241_v41, %v4445_v22 }
 0x4be   :  { %4591 = vst [vmem:[%s8908_s3 + $0xb0] sm:$0xff] %v4495_v46  ;;  %v4360_v53 = vpop.f32.mrb[42].mxu1 }
 0x4bf   :  { %v4361_v23 = vadd.f32 %v8643_v62, %v4360_v53  ;;  %v4878_v21 = vpop.f32.mrb[43].mxu1 }
 0x4c1   :  { %v4518_v13 = vcombine.low %v4468_v60, %v4361_v23  ;;  %v4469_v55 = vcombine.high %v4361_v23, %v4361_v23 }
 0x4c3   :  { %4615 = vst [vmem:[%s8908_s3 + $0x170] sm:$0xff] %v4518_v13 }
 0x4c8   :  { %v4245_v34 = vpop.f32.mrb[46].mxu0 }
 0x4c9   :  { %v4246_v58 = vadd.f32 %v8643_v62, %v4245_v34  ;;  %v4809_v17 = vpop.f32.mrb[47].mxu0  ;;  %v4365_v12 = vpop.f32.mrb[44].mxu1 }
 0x4ca   :  { %v4366_v40 = vadd.f32 %v8643_v62, %v4365_v12  ;;  %v4881_v31 = vpop.f32.mrb[45].mxu1 }
 0x4cb   :  { %v4446_v45 = vcombine.high %v4246_v58, %v4246_v58 }
 0x4cc   :  { %v4519_v1 = vcombine.low %v4469_v55, %v4366_v40  ;;  %v4250_v37 = vpop.f32.mrb[48].mxu0  ;;  %v4470_v32 = vcombine.high %v4366_v40, %v4366_v40 }
 0x4cd   :  { %v4496_v8 = vcombine.low %v4246_v58, %v4446_v45  ;;  %v4251_v54 = vadd.f32 %v8643_v62, %v4250_v37  ;;  %v4812_v59 = vpop.f32.mrb[49].mxu0 }
 0x4ce   :  { %4616 = vst [vmem:[%s8908_s3 + $0x178] sm:$0xff] %v4519_v1 }
 0x4cf   :  { %4592 = vst [vmem:[%s8908_s3 + $0xb8] sm:$0xff] %v4496_v8  ;;  %v4447_v28 = vcombine.high %v4251_v54, %v4251_v54  ;;  %4593 = vst [vmem:[%s8908_s3 + $0xc0] sm:$0xf] %v4251_v54 }
 0x4d1   :  { %v4497_v30 = vcombine.low %v4447_v28, %v8249_v11 }
 0x4d3   :  { %4594 = vst [vmem:[%s8908_s3 + $0xc8] sm:$0xff] %v4497_v30  ;;  %v4370_v20 = vpop.f32.mrb[46].mxu1 }
 0x4d4   :  { %v4371_v33 = vadd.f32 %v8643_v62, %v4370_v20  ;;  %v4884_v16 = vpop.f32.mrb[47].mxu1 }
 0x4d6   :  { %v4471_v39 = vcombine.high %v4371_v33, %v4371_v33  ;;  %v4520_v14 = vcombine.low %v4470_v32, %v4371_v33 }
 0x4d8   :  { %4617 = vst [vmem:[%s8908_s3 + $0x180] sm:$0xff] %v4520_v14  ;;  %4618 = vst [vmem:[%s8908_s3 + $0x188] sm:$0xf] %v4471_v39 }

</bundles_post_ra>
